<compile_context>
chip_gen: v5e
topology: v5e:2x2
jax: 0.10.0
libtpu: 0.0.40
codegen_flags: <defaults>
</compile_context>

<pallas_src>
import functools

import jax
import jax.numpy as jnp
from jax.experimental import pallas as pl
from jax.experimental.pallas import tpu as pltpu


# ----------------------------------------------------------------------------
# Fused forward kernel: one batch element per grid step, everything in VMEM.
# ----------------------------------------------------------------------------
def fused_kernel(x_ref, wenc_ref, benc_ref, wdec_ref, bdec_ref,
                 wseg_ref, bseg_ref, w1_ref, b1_ref, w2_ref, b2_ref,
                 seg_ref, cls_ref,
                 xpad_s, fpad_s, *, H, W):
    HW = H * W
    cin = x_ref.shape[-1]          # 3
    c_enc = wenc_ref.shape[-1]     # 64
    c_dec = wdec_ref.shape[-1]     # 128 (logical 16, zero-padded for lanes)

    # ---- zero-pad the input inside VMEM (no HBM-side jnp.pad) ----------------
    xpad_s[...] = jnp.zeros(xpad_s.shape, xpad_s.dtype)
    xpad_s[1:H + 1, 1:W + 1, :] = x_ref[0]

    # ---- encoder stage: 3x3 conv (3 -> 64) + ReLU ----------------------------
    # 9 accumulated bf16 MXU matmuls, f32 accumulator (see header comment).
    acc_e = jnp.zeros((HW, c_enc), jnp.float32)
    for dy in range(3):
        for dx in range(3):
            tap = xpad_s[dy:dy + H, dx:dx + W, :].reshape(HW, cin)
            acc_e = acc_e + jnp.dot(tap.astype(jnp.bfloat16),
                                    wenc_ref[dy, dx],
                                    preferred_element_type=jnp.float32)
    feat = jnp.maximum(acc_e + benc_ref[...], 0.0)            # (HW, 64) f32

    # ---- decoder stage: 3x3 conv (64 -> 16, lane-padded to 128) + ReLU -------
    # Encoder features stay VMEM-resident (scratch), never round-trip to HBM.
    fpad_s[...] = jnp.zeros(fpad_s.shape, fpad_s.dtype)
    fpad_s[1:H + 1, 1:W + 1, :] = feat.reshape(H, W, c_enc)

    acc_d = jnp.zeros((HW, c_dec), jnp.float32)
    for dy in range(3):
        for dx in range(3):
            tap = fpad_s[dy:dy + H, dx:dx + W, :].reshape(HW, c_enc)
            acc_d = acc_d + jnp.dot(tap.astype(jnp.bfloat16),
                                    wdec_ref[dy, dx],
                                    preferred_element_type=jnp.float32)
    # Padded channels have zero weight+bias -> stay exactly 0 after ReLU.
    seg_feat = jnp.maximum(acc_d + bdec_ref[...], 0.0)        # (HW, 128) f32

    # ---- segmentation head: 1x1 conv (16 -> 1) + sigmoid, lane-dense output --
    # Aligned (HW,128)->(128,HW) transpose (XLU), then VPU multiply + sublane
    # reduce: avoids an M=1 MXU matmul and yields the (1, HW) lane-dense row
    # directly (no lane-1 masked stores).
    segT = seg_feat.T                                          # (128, HW)
    seg_logits = jnp.sum(segT * wseg_ref[...], axis=0, keepdims=True)  # (1, HW)
    seg_logits = seg_logits + bseg_ref[...]
    seg_ref[...] = jax.nn.sigmoid(seg_logits).reshape(1, 1, HW)

    # ---- classification head: GAP -> Linear(16,64) -> ReLU -> Dropout(eval)
    #      -> Linear(64,4).  (M=1 dots; negligible either way at these sizes.)
    pooled = jnp.mean(seg_feat, axis=0, keepdims=True)         # (1, 128)
    h = jnp.dot(pooled, w1_ref[...], preferred_element_type=jnp.float32)
    h = jnp.maximum(h + b1_ref[...], 0.0)
    # TODO(synk): Dropout(0.2) is identity in eval/inference mode; training-mode
    # stochastic dropout is not implemented here.
    logits = jnp.dot(h, w2_ref[...], preferred_element_type=jnp.float32)
    logits = logits + b2_ref[...]
    cls_ref[...] = logits.reshape(1, 1, 4)


def fused_forward(x_nhwc, p):
    N, H, W, Cin = x_nhwc.shape
    HW = H * W
    kernel = functools.partial(fused_kernel, H=H, W=W)
    # TODO(synk): for large images (>=256^2) add a spatial row-tile grid axis
    # with a 1-row halo (and an explicit vmem_limit_bytes) so the per-step
    # feature block fits v7x's 64 MiB VMEM and feeds both TensorCores even at
    # batch 1.  At 16x16 a per-image grid is sufficient.
    seg, cls = pl.pallas_call(
        kernel,
        out_shape=(
            jax.ShapeDtypeStruct((N, 1, HW), jnp.float32),   # seg (lane-dense)
            jax.ShapeDtypeStruct((N, 1, 4), jnp.float32),    # cls logits
        ),
        grid=(N,),
        in_specs=[
            pl.BlockSpec((1, H, W, Cin), lambda n: (n, 0, 0, 0)),   # x
            pl.BlockSpec((3, 3, Cin, 64), lambda n: (0, 0, 0, 0)),  # enc_w bf16
            pl.BlockSpec((1, 64), lambda n: (0, 0)),                # enc_b
            pl.BlockSpec((3, 3, 64, 128), lambda n: (0, 0, 0, 0)),  # dec_w bf16
            pl.BlockSpec((1, 128), lambda n: (0, 0)),               # dec_b
            pl.BlockSpec((128, 1), lambda n: (0, 0)),               # segf_w
            pl.BlockSpec((1, 1), lambda n: (0, 0)),                 # segf_b
            pl.BlockSpec((128, 64), lambda n: (0, 0)),              # fc1_w
            pl.BlockSpec((1, 64), lambda n: (0, 0)),                # fc1_b
            pl.BlockSpec((64, 4), lambda n: (0, 0)),                # fc2_w
            pl.BlockSpec((1, 4), lambda n: (0, 0)),                 # fc2_b
        ],
        out_specs=(
            pl.BlockSpec((1, 1, HW), lambda n: (n, 0, 0)),
            pl.BlockSpec((1, 1, 4), lambda n: (n, 0, 0)),
        ),
        scratch_shapes=[
            pltpu.VMEM((H + 2, W + 2, Cin), jnp.float32),   # padded input
            pltpu.VMEM((H + 2, W + 2, 64), jnp.float32),    # padded enc feat
        ],
        compiler_params=pltpu.CompilerParams(
            dimension_semantics=("parallel",)),
    )(x_nhwc,
      p["enc_w"], p["enc_b"], p["dec_w"], p["dec_b"],
      p["segf_w"], p["segf_b"], p["fc1_w"], p["fc1_b"],
      p["fc2_w"], p["fc2_b"])
    return seg, cls


# ----------------------------------------------------------------------------
# Parameter construction (deterministic, synthetic).
# ----------------------------------------------------------------------------
def init_params(key):
    ks = jax.random.split(key, 6)

    def he(k, shape, fan_in):
        return jax.random.normal(k, shape, jnp.float32) * jnp.sqrt(2.0 / fan_in)

    # Simplified encoder stage (stand-in for ResNet34 encoder): 3x3, 3 -> 64.
    enc_w = he(ks[0], (3, 3, 3, 64), 3 * 9)
    # Simplified decoder stage (stand-in for UNet decoder): 3x3, 64 -> 16,
    # output channels zero-padded 16 -> 128 for lane density (math unchanged).
    dec_w16 = he(ks[1], (3, 3, 64, 16), 64 * 9)
    dec_w = jnp.zeros((3, 3, 64, 128), jnp.float32).at[..., :16].set(dec_w16)
    # seg_final: Conv2d(16, 1, kernel_size=1) -> column vector, zero-padded.
    segf_w16 = he(ks[2], (16, 1), 16)
    segf_w = jnp.zeros((128, 1), jnp.float32).at[:16].set(segf_w16)
    # Classification head: Linear(16, 64) (rows zero-padded to 128), Linear(64, 4).
    fc1_w16 = he(ks[3], (16, 64), 16)
    fc1_w = jnp.zeros((128, 64), jnp.float32).at[:16].set(fc1_w16)
    fc2_w = he(ks[4], (64, 4), 64)

    return {
        "enc_w": enc_w.astype(jnp.bfloat16),
        "enc_b": jnp.zeros((1, 64), jnp.float32),
        "dec_w": dec_w.astype(jnp.bfloat16),
        "dec_b": jnp.zeros((1, 128), jnp.float32),
        "segf_w": segf_w,                       # (128, 1) f32
        "segf_b": jnp.zeros((1, 1), jnp.float32),
        "fc1_w": fc1_w,                         # (128, 64) f32
        "fc1_b": jnp.zeros((1, 64), jnp.float32),
        "fc2_w": fc2_w,                         # (64, 4) f32
        "fc2_b": jnp.zeros((1, 4), jnp.float32),
    }


@jax.jit
def thyroid_multitask_forward(params, x_nchw):
    N, _, H, W = x_nchw.shape
    # NCHW (PyTorch) -> NHWC (kernel layout).  Tiny at these sizes.
    # TODO(synk): read NCHW directly inside the kernel to drop this pass for
    # large images.
    x = jnp.transpose(x_nchw, (0, 2, 3, 1)).astype(jnp.float32)

    seg_flat, cls = fused_forward(x, params)

    # (N, 1, H*W) -> (N, 1, H, W): pure row-major reshape, no transpose pass.
    seg_mask = seg_flat.reshape(N, 1, H, W)
    cls_logits = cls[:, 0, :]                  # (N, 4)
    return seg_mask, cls_logits


if __name__ == "__main__":
    key = jax.random.PRNGKey(0)
    pkey, xkey = jax.random.split(key)
    params = init_params(pkey)

    # Small deterministic input: batch=2, 3 channels (RGB), 16x16 spatial.
    x = jax.random.normal(xkey, (2, 3, 16, 16), jnp.float32)

    seg_mask, cls_logits = thyroid_multitask_forward(params, x)
    seg_mask = jax.block_until_ready(seg_mask)
    cls_logits = jax.block_until_ready(cls_logits)

    assert seg_mask.shape == (2, 1, 16, 16), seg_mask.shape
    assert cls_logits.shape == (2, 4), cls_logits.shape
    assert bool(jnp.all(jnp.isfinite(seg_mask)))
    assert bool(jnp.all(jnp.isfinite(cls_logits)))
    assert bool(jnp.all(seg_mask >= 0.0)) and bool(jnp.all(seg_mask <= 1.0))

    print("KERNEL_OK")
</pallas_src>

<mosaic_0001>
module attributes {stable_mosaic.version = 11 : i64} {
  func.func @fused_kernel(%arg0: i32, %arg1: memref<1x16x16x3xf32, #tpu.memory_space<vmem>>, %arg2: memref<3x3x3x64xbf16, #tpu.memory_space<vmem>>, %arg3: memref<1x64xf32, #tpu.memory_space<vmem>>, %arg4: memref<3x3x64x128xbf16, #tpu.memory_space<vmem>>, %arg5: memref<1x128xf32, #tpu.memory_space<vmem>>, %arg6: memref<128x1xf32, #tpu.memory_space<vmem>>, %arg7: memref<1x1xf32, #tpu.memory_space<vmem>>, %arg8: memref<128x64xf32, #tpu.memory_space<vmem>>, %arg9: memref<1x64xf32, #tpu.memory_space<vmem>>, %arg10: memref<64x4xf32, #tpu.memory_space<vmem>>, %arg11: memref<1x4xf32, #tpu.memory_space<vmem>>, %arg12: memref<1x1x256xf32, #tpu.memory_space<vmem>>, %arg13: memref<1x1x4xf32, #tpu.memory_space<vmem>>, %arg14: memref<18x18x3xf32, #tpu.memory_space<vmem>>, %arg15: memref<18x18x64xf32, #tpu.memory_space<vmem>>) attributes {dimension_semantics = [#tpu.dimension_semantics<parallel>], iteration_bounds = array<i64: 2>, scalar_prefetch = 0 : i64, scratch_operands = 2 : i64, tpu.core_type = #tpu.core_type<tc>, window_params = [{transform_indices = @transform_0, window_bounds = array<i64: 1, 16, 16, 3>}, {pipeline_mode = #tpu.pipeline_mode<synchronous>, transform_indices = @transform_1, window_bounds = array<i64: 3, 3, 3, 64>}, {pipeline_mode = #tpu.pipeline_mode<synchronous>, transform_indices = @transform_2, window_bounds = array<i64: 1, 64>}, {pipeline_mode = #tpu.pipeline_mode<synchronous>, transform_indices = @transform_3, window_bounds = array<i64: 3, 3, 64, 128>}, {pipeline_mode = #tpu.pipeline_mode<synchronous>, transform_indices = @transform_4, window_bounds = array<i64: 1, 128>}, {pipeline_mode = #tpu.pipeline_mode<synchronous>, transform_indices = @transform_5, window_bounds = array<i64: 128, 1>}, {pipeline_mode = #tpu.pipeline_mode<synchronous>, transform_indices = @transform_6, window_bounds = array<i64: 1, 1>}, {pipeline_mode = #tpu.pipeline_mode<synchronous>, transform_indices = @transform_7, window_bounds = array<i64: 128, 64>}, {pipeline_mode = #tpu.pipeline_mode<synchronous>, transform_indices = @transform_8, window_bounds = array<i64: 1, 64>}, {pipeline_mode = #tpu.pipeline_mode<synchronous>, transform_indices = @transform_9, window_bounds = array<i64: 64, 4>}, {pipeline_mode = #tpu.pipeline_mode<synchronous>, transform_indices = @transform_10, window_bounds = array<i64: 1, 4>}, {transform_indices = @transform_11, window_bounds = array<i64: 1, 1, 256>}, {transform_indices = @transform_12, window_bounds = array<i64: 1, 1, 4>}]} {
    %cst = arith.constant 0.000000e+00 : f32
    %0 = vector.broadcast %cst : f32 to vector<18x18x3xf32>
    %c0 = arith.constant 0 : index
    %c0_0 = arith.constant 0 : index
    %c0_1 = arith.constant 0 : index
    %1 = vector.load %arg14[%c0, %c0_0, %c0_1] : memref<18x18x3xf32, #tpu.memory_space<vmem>>, vector<18x18x3xf32>
    tpu.vector_store %arg14[%c0, %c0_0, %c0_1], %0 {strides = array<i32>} : memref<18x18x3xf32, #tpu.memory_space<vmem>>, vector<18x18x3xf32>,
    %c0_2 = arith.constant 0 : index
    %c0_3 = arith.constant 0 : index
    %c0_4 = arith.constant 0 : index
    %c0_5 = arith.constant 0 : index
    %2 = vector.load %arg1[%c0_2, %c0_3, %c0_4, %c0_5] : memref<1x16x16x3xf32, #tpu.memory_space<vmem>>, vector<1x16x16x3xf32>
    %3 = vector.shape_cast %2 : vector<1x16x16x3xf32> to vector<16x16x3xf32>
    %c1 = arith.constant 1 : index
    %c1_6 = arith.constant 1 : index
    %c0_7 = arith.constant 0 : index
    %4 = vector.load %arg14[%c1, %c1_6, %c0_7] : memref<18x18x3xf32, #tpu.memory_space<vmem>>, vector<16x16x3xf32>
    tpu.vector_store %arg14[%c1, %c1_6, %c0_7], %3 {strides = array<i32>} : memref<18x18x3xf32, #tpu.memory_space<vmem>>, vector<16x16x3xf32>,
    %cst_8 = arith.constant 0.000000e+00 : f32
    %5 = vector.broadcast %cst_8 : f32 to vector<256x64xf32>
    %c0_9 = arith.constant 0 : index
    %c0_10 = arith.constant 0 : index
    %c0_11 = arith.constant 0 : index
    %6 = vector.load %arg14[%c0_9, %c0_10, %c0_11] : memref<18x18x3xf32, #tpu.memory_space<vmem>>, vector<16x16x3xf32>
    %7 = vector.shape_cast %6 : vector<16x16x3xf32> to vector<256x3xf32>
    %8 = arith.truncf %7 : vector<256x3xf32> to vector<256x3xbf16>
    %c0_12 = arith.constant 0 : index
    %c0_13 = arith.constant 0 : index
    %c0_14 = arith.constant 0 : index
    %c0_15 = arith.constant 0 : index
    %9 = vector.load %arg2[%c0_12, %c0_13, %c0_14, %c0_15] : memref<3x3x3x64xbf16, #tpu.memory_space<vmem>>, vector<1x1x3x64xbf16>
    %10 = vector.shape_cast %9 : vector<1x1x3x64xbf16> to vector<3x64xbf16>
    %cst_16 = arith.constant dense<0.000000e+00> : vector<256x64xf32>
    %11 = tpu.matmul %8, %10, %cst_16 {dimension_numbers = #tpu.dot_dimension_numbers<[1], [0], [0], [1], [0, 0, 1, 1], [], []>} : vector<256x3xbf16>, vector<3x64xbf16>, vector<256x64xf32> -> vector<256x64xf32>
    %12 = arith.addf %5, %11 : vector<256x64xf32>
    %c0_17 = arith.constant 0 : index
    %c1_18 = arith.constant 1 : index
    %c0_19 = arith.constant 0 : index
    %13 = vector.load %arg14[%c0_17, %c1_18, %c0_19] : memref<18x18x3xf32, #tpu.memory_space<vmem>>, vector<16x16x3xf32>
    %14 = vector.shape_cast %13 : vector<16x16x3xf32> to vector<256x3xf32>
    %15 = arith.truncf %14 : vector<256x3xf32> to vector<256x3xbf16>
    %c0_20 = arith.constant 0 : index
    %c1_21 = arith.constant 1 : index
    %c0_22 = arith.constant 0 : index
    %c0_23 = arith.constant 0 : index
    %16 = vector.load %arg2[%c0_20, %c1_21, %c0_22, %c0_23] : memref<3x3x3x64xbf16, #tpu.memory_space<vmem>>, vector<1x1x3x64xbf16>
    %17 = vector.shape_cast %16 : vector<1x1x3x64xbf16> to vector<3x64xbf16>
    %cst_24 = arith.constant dense<0.000000e+00> : vector<256x64xf32>
    %18 = tpu.matmul %15, %17, %cst_24 {dimension_numbers = #tpu.dot_dimension_numbers<[1], [0], [0], [1], [0, 0, 1, 1], [], []>} : vector<256x3xbf16>, vector<3x64xbf16>, vector<256x64xf32> -> vector<256x64xf32>
    %19 = arith.addf %12, %18 : vector<256x64xf32>
    %c0_25 = arith.constant 0 : index
    %c2 = arith.constant 2 : index
    %c0_26 = arith.constant 0 : index
    %20 = vector.load %arg14[%c0_25, %c2, %c0_26] : memref<18x18x3xf32, #tpu.memory_space<vmem>>, vector<16x16x3xf32>
    %21 = vector.shape_cast %20 : vector<16x16x3xf32> to vector<256x3xf32>
    %22 = arith.truncf %21 : vector<256x3xf32> to vector<256x3xbf16>
    %c0_27 = arith.constant 0 : index
    %c2_28 = arith.constant 2 : index
    %c0_29 = arith.constant 0 : index
    %c0_30 = arith.constant 0 : index
    %23 = vector.load %arg2[%c0_27, %c2_28, %c0_29, %c0_30] : memref<3x3x3x64xbf16, #tpu.memory_space<vmem>>, vector<1x1x3x64xbf16>
    %24 = vector.shape_cast %23 : vector<1x1x3x64xbf16> to vector<3x64xbf16>
    %cst_31 = arith.constant dense<0.000000e+00> : vector<256x64xf32>
    %25 = tpu.matmul %22, %24, %cst_31 {dimension_numbers = #tpu.dot_dimension_numbers<[1], [0], [0], [1], [0, 0, 1, 1], [], []>} : vector<256x3xbf16>, vector<3x64xbf16>, vector<256x64xf32> -> vector<256x64xf32>
    %26 = arith.addf %19, %25 : vector<256x64xf32>
    %c1_32 = arith.constant 1 : index
    %c0_33 = arith.constant 0 : index
    %c0_34 = arith.constant 0 : index
    %27 = vector.load %arg14[%c1_32, %c0_33, %c0_34] : memref<18x18x3xf32, #tpu.memory_space<vmem>>, vector<16x16x3xf32>
    %28 = vector.shape_cast %27 : vector<16x16x3xf32> to vector<256x3xf32>
    %29 = arith.truncf %28 : vector<256x3xf32> to vector<256x3xbf16>
    %c1_35 = arith.constant 1 : index
    %c0_36 = arith.constant 0 : index
    %c0_37 = arith.constant 0 : index
    %c0_38 = arith.constant 0 : index
    %30 = vector.load %arg2[%c1_35, %c0_36, %c0_37, %c0_38] : memref<3x3x3x64xbf16, #tpu.memory_space<vmem>>, vector<1x1x3x64xbf16>
    %31 = vector.shape_cast %30 : vector<1x1x3x64xbf16> to vector<3x64xbf16>
    %cst_39 = arith.constant dense<0.000000e+00> : vector<256x64xf32>
    %32 = tpu.matmul %29, %31, %cst_39 {dimension_numbers = #tpu.dot_dimension_numbers<[1], [0], [0], [1], [0, 0, 1, 1], [], []>} : vector<256x3xbf16>, vector<3x64xbf16>, vector<256x64xf32> -> vector<256x64xf32>
    %33 = arith.addf %26, %32 : vector<256x64xf32>
    %c1_40 = arith.constant 1 : index
    %c1_41 = arith.constant 1 : index
    %c0_42 = arith.constant 0 : index
    %34 = vector.load %arg14[%c1_40, %c1_41, %c0_42] : memref<18x18x3xf32, #tpu.memory_space<vmem>>, vector<16x16x3xf32>
    %35 = vector.shape_cast %34 : vector<16x16x3xf32> to vector<256x3xf32>
    %36 = arith.truncf %35 : vector<256x3xf32> to vector<256x3xbf16>
    %c1_43 = arith.constant 1 : index
    %c1_44 = arith.constant 1 : index
    %c0_45 = arith.constant 0 : index
    %c0_46 = arith.constant 0 : index
    %37 = vector.load %arg2[%c1_43, %c1_44, %c0_45, %c0_46] : memref<3x3x3x64xbf16, #tpu.memory_space<vmem>>, vector<1x1x3x64xbf16>
    %38 = vector.shape_cast %37 : vector<1x1x3x64xbf16> to vector<3x64xbf16>
    %cst_47 = arith.constant dense<0.000000e+00> : vector<256x64xf32>
    %39 = tpu.matmul %36, %38, %cst_47 {dimension_numbers = #tpu.dot_dimension_numbers<[1], [0], [0], [1], [0, 0, 1, 1], [], []>} : vector<256x3xbf16>, vector<3x64xbf16>, vector<256x64xf32> -> vector<256x64xf32>
    %40 = arith.addf %33, %39 : vector<256x64xf32>
    %c1_48 = arith.constant 1 : index
    %c2_49 = arith.constant 2 : index
    %c0_50 = arith.constant 0 : index
    %41 = vector.load %arg14[%c1_48, %c2_49, %c0_50] : memref<18x18x3xf32, #tpu.memory_space<vmem>>, vector<16x16x3xf32>
    %42 = vector.shape_cast %41 : vector<16x16x3xf32> to vector<256x3xf32>
    %43 = arith.truncf %42 : vector<256x3xf32> to vector<256x3xbf16>
    %c1_51 = arith.constant 1 : index
    %c2_52 = arith.constant 2 : index
    %c0_53 = arith.constant 0 : index
    %c0_54 = arith.constant 0 : index
    %44 = vector.load %arg2[%c1_51, %c2_52, %c0_53, %c0_54] : memref<3x3x3x64xbf16, #tpu.memory_space<vmem>>, vector<1x1x3x64xbf16>
    %45 = vector.shape_cast %44 : vector<1x1x3x64xbf16> to vector<3x64xbf16>
    %cst_55 = arith.constant dense<0.000000e+00> : vector<256x64xf32>
    %46 = tpu.matmul %43, %45, %cst_55 {dimension_numbers = #tpu.dot_dimension_numbers<[1], [0], [0], [1], [0, 0, 1, 1], [], []>} : vector<256x3xbf16>, vector<3x64xbf16>, vector<256x64xf32> -> vector<256x64xf32>
    %47 = arith.addf %40, %46 : vector<256x64xf32>
    %c2_56 = arith.constant 2 : index
    %c0_57 = arith.constant 0 : index
    %c0_58 = arith.constant 0 : index
    %48 = vector.load %arg14[%c2_56, %c0_57, %c0_58] : memref<18x18x3xf32, #tpu.memory_space<vmem>>, vector<16x16x3xf32>
    %49 = vector.shape_cast %48 : vector<16x16x3xf32> to vector<256x3xf32>
    %50 = arith.truncf %49 : vector<256x3xf32> to vector<256x3xbf16>
    %c2_59 = arith.constant 2 : index
    %c0_60 = arith.constant 0 : index
    %c0_61 = arith.constant 0 : index
    %c0_62 = arith.constant 0 : index
    %51 = vector.load %arg2[%c2_59, %c0_60, %c0_61, %c0_62] : memref<3x3x3x64xbf16, #tpu.memory_space<vmem>>, vector<1x1x3x64xbf16>
    %52 = vector.shape_cast %51 : vector<1x1x3x64xbf16> to vector<3x64xbf16>
    %cst_63 = arith.constant dense<0.000000e+00> : vector<256x64xf32>
    %53 = tpu.matmul %50, %52, %cst_63 {dimension_numbers = #tpu.dot_dimension_numbers<[1], [0], [0], [1], [0, 0, 1, 1], [], []>} : vector<256x3xbf16>, vector<3x64xbf16>, vector<256x64xf32> -> vector<256x64xf32>
    %54 = arith.addf %47, %53 : vector<256x64xf32>
    %c2_64 = arith.constant 2 : index
    %c1_65 = arith.constant 1 : index
    %c0_66 = arith.constant 0 : index
    %55 = vector.load %arg14[%c2_64, %c1_65, %c0_66] : memref<18x18x3xf32, #tpu.memory_space<vmem>>, vector<16x16x3xf32>
    %56 = vector.shape_cast %55 : vector<16x16x3xf32> to vector<256x3xf32>
    %57 = arith.truncf %56 : vector<256x3xf32> to vector<256x3xbf16>
    %c2_67 = arith.constant 2 : index
    %c1_68 = arith.constant 1 : index
    %c0_69 = arith.constant 0 : index
    %c0_70 = arith.constant 0 : index
    %58 = vector.load %arg2[%c2_67, %c1_68, %c0_69, %c0_70] : memref<3x3x3x64xbf16, #tpu.memory_space<vmem>>, vector<1x1x3x64xbf16>
    %59 = vector.shape_cast %58 : vector<1x1x3x64xbf16> to vector<3x64xbf16>
    %cst_71 = arith.constant dense<0.000000e+00> : vector<256x64xf32>
    %60 = tpu.matmul %57, %59, %cst_71 {dimension_numbers = #tpu.dot_dimension_numbers<[1], [0], [0], [1], [0, 0, 1, 1], [], []>} : vector<256x3xbf16>, vector<3x64xbf16>, vector<256x64xf32> -> vector<256x64xf32>
    %61 = arith.addf %54, %60 : vector<256x64xf32>
    %c2_72 = arith.constant 2 : index
    %c2_73 = arith.constant 2 : index
    %c0_74 = arith.constant 0 : index
    %62 = vector.load %arg14[%c2_72, %c2_73, %c0_74] : memref<18x18x3xf32, #tpu.memory_space<vmem>>, vector<16x16x3xf32>
    %63 = vector.shape_cast %62 : vector<16x16x3xf32> to vector<256x3xf32>
    %64 = arith.truncf %63 : vector<256x3xf32> to vector<256x3xbf16>
    %c2_75 = arith.constant 2 : index
    %c2_76 = arith.constant 2 : index
    %c0_77 = arith.constant 0 : index
    %c0_78 = arith.constant 0 : index
    %65 = vector.load %arg2[%c2_75, %c2_76, %c0_77, %c0_78] : memref<3x3x3x64xbf16, #tpu.memory_space<vmem>>, vector<1x1x3x64xbf16>
    %66 = vector.shape_cast %65 : vector<1x1x3x64xbf16> to vector<3x64xbf16>
    %cst_79 = arith.constant dense<0.000000e+00> : vector<256x64xf32>
    %67 = tpu.matmul %64, %66, %cst_79 {dimension_numbers = #tpu.dot_dimension_numbers<[1], [0], [0], [1], [0, 0, 1, 1], [], []>} : vector<256x3xbf16>, vector<3x64xbf16>, vector<256x64xf32> -> vector<256x64xf32>
    %68 = arith.addf %61, %67 : vector<256x64xf32>
    %c0_80 = arith.constant 0 : index
    %c0_81 = arith.constant 0 : index
    %69 = vector.load %arg3[%c0_80, %c0_81] : memref<1x64xf32, #tpu.memory_space<vmem>>, vector<1x64xf32>
    %70 = vector.broadcast %69 : vector<1x64xf32> to vector<256x64xf32>
    %71 = arith.addf %68, %70 : vector<256x64xf32>
    %cst_82 = arith.constant 0.000000e+00 : f32
    %72 = vector.broadcast %cst_82 : f32 to vector<256x64xf32>
    %73 = arith.maximumf %71, %72 : vector<256x64xf32>
    %cst_83 = arith.constant 0.000000e+00 : f32
    %74 = vector.broadcast %cst_83 : f32 to vector<18x18x64xf32>
    %c0_84 = arith.constant 0 : index
    %c0_85 = arith.constant 0 : index
    %c0_86 = arith.constant 0 : index
    %75 = vector.load %arg15[%c0_84, %c0_85, %c0_86] : memref<18x18x64xf32, #tpu.memory_space<vmem>>, vector<18x18x64xf32>
    tpu.vector_store %arg15[%c0_84, %c0_85, %c0_86], %74 {strides = array<i32>} : memref<18x18x64xf32, #tpu.memory_space<vmem>>, vector<18x18x64xf32>,
    %76 = vector.shape_cast %73 : vector<256x64xf32> to vector<16x16x64xf32>
    %c1_87 = arith.constant 1 : index
    %c1_88 = arith.constant 1 : index
    %c0_89 = arith.constant 0 : index
    %77 = vector.load %arg15[%c1_87, %c1_88, %c0_89] : memref<18x18x64xf32, #tpu.memory_space<vmem>>, vector<16x16x64xf32>
    tpu.vector_store %arg15[%c1_87, %c1_88, %c0_89], %76 {strides = array<i32>} : memref<18x18x64xf32, #tpu.memory_space<vmem>>, vector<16x16x64xf32>,
    %cst_90 = arith.constant 0.000000e+00 : f32
    %78 = vector.broadcast %cst_90 : f32 to vector<256x128xf32>
    %c0_91 = arith.constant 0 : index
    %c0_92 = arith.constant 0 : index
    %c0_93 = arith.constant 0 : index
    %79 = vector.load %arg15[%c0_91, %c0_92, %c0_93] : memref<18x18x64xf32, #tpu.memory_space<vmem>>, vector<16x16x64xf32>
    %80 = vector.shape_cast %79 : vector<16x16x64xf32> to vector<256x64xf32>
    %81 = arith.truncf %80 : vector<256x64xf32> to vector<256x64xbf16>
    %c0_94 = arith.constant 0 : index
    %c0_95 = arith.constant 0 : index
    %c0_96 = arith.constant 0 : index
    %c0_97 = arith.constant 0 : index
    %82 = vector.load %arg4[%c0_94, %c0_95, %c0_96, %c0_97] : memref<3x3x64x128xbf16, #tpu.memory_space<vmem>>, vector<1x1x64x128xbf16>
    %83 = vector.shape_cast %82 : vector<1x1x64x128xbf16> to vector<64x128xbf16>
    %cst_98 = arith.constant dense<0.000000e+00> : vector<256x128xf32>
    %84 = tpu.matmul %81, %83, %cst_98 {dimension_numbers = #tpu.dot_dimension_numbers<[1], [0], [0], [1], [0, 0, 1, 1], [], []>} : vector<256x64xbf16>, vector<64x128xbf16>, vector<256x128xf32> -> vector<256x128xf32>
    %85 = arith.addf %78, %84 : vector<256x128xf32>
    %c0_99 = arith.constant 0 : index
    %c1_100 = arith.constant 1 : index
    %c0_101 = arith.constant 0 : index
    %86 = vector.load %arg15[%c0_99, %c1_100, %c0_101] : memref<18x18x64xf32, #tpu.memory_space<vmem>>, vector<16x16x64xf32>
    %87 = vector.shape_cast %86 : vector<16x16x64xf32> to vector<256x64xf32>
    %88 = arith.truncf %87 : vector<256x64xf32> to vector<256x64xbf16>
    %c0_102 = arith.constant 0 : index
    %c1_103 = arith.constant 1 : index
    %c0_104 = arith.constant 0 : index
    %c0_105 = arith.constant 0 : index
    %89 = vector.load %arg4[%c0_102, %c1_103, %c0_104, %c0_105] : memref<3x3x64x128xbf16, #tpu.memory_space<vmem>>, vector<1x1x64x128xbf16>
    %90 = vector.shape_cast %89 : vector<1x1x64x128xbf16> to vector<64x128xbf16>
    %cst_106 = arith.constant dense<0.000000e+00> : vector<256x128xf32>
    %91 = tpu.matmul %88, %90, %cst_106 {dimension_numbers = #tpu.dot_dimension_numbers<[1], [0], [0], [1], [0, 0, 1, 1], [], []>} : vector<256x64xbf16>, vector<64x128xbf16>, vector<256x128xf32> -> vector<256x128xf32>
    %92 = arith.addf %85, %91 : vector<256x128xf32>
    %c0_107 = arith.constant 0 : index
    %c2_108 = arith.constant 2 : index
    %c0_109 = arith.constant 0 : index
    %93 = vector.load %arg15[%c0_107, %c2_108, %c0_109] : memref<18x18x64xf32, #tpu.memory_space<vmem>>, vector<16x16x64xf32>
    %94 = vector.shape_cast %93 : vector<16x16x64xf32> to vector<256x64xf32>
    %95 = arith.truncf %94 : vector<256x64xf32> to vector<256x64xbf16>
    %c0_110 = arith.constant 0 : index
    %c2_111 = arith.constant 2 : index
    %c0_112 = arith.constant 0 : index
    %c0_113 = arith.constant 0 : index
    %96 = vector.load %arg4[%c0_110, %c2_111, %c0_112, %c0_113] : memref<3x3x64x128xbf16, #tpu.memory_space<vmem>>, vector<1x1x64x128xbf16>
    %97 = vector.shape_cast %96 : vector<1x1x64x128xbf16> to vector<64x128xbf16>
    %cst_114 = arith.constant dense<0.000000e+00> : vector<256x128xf32>
    %98 = tpu.matmul %95, %97, %cst_114 {dimension_numbers = #tpu.dot_dimension_numbers<[1], [0], [0], [1], [0, 0, 1, 1], [], []>} : vector<256x64xbf16>, vector<64x128xbf16>, vector<256x128xf32> -> vector<256x128xf32>
    %99 = arith.addf %92, %98 : vector<256x128xf32>
    %c1_115 = arith.constant 1 : index
    %c0_116 = arith.constant 0 : index
    %c0_117 = arith.constant 0 : index
    %100 = vector.load %arg15[%c1_115, %c0_116, %c0_117] : memref<18x18x64xf32, #tpu.memory_space<vmem>>, vector<16x16x64xf32>
    %101 = vector.shape_cast %100 : vector<16x16x64xf32> to vector<256x64xf32>
    %102 = arith.truncf %101 : vector<256x64xf32> to vector<256x64xbf16>
    %c1_118 = arith.constant 1 : index
    %c0_119 = arith.constant 0 : index
    %c0_120 = arith.constant 0 : index
    %c0_121 = arith.constant 0 : index
    %103 = vector.load %arg4[%c1_118, %c0_119, %c0_120, %c0_121] : memref<3x3x64x128xbf16, #tpu.memory_space<vmem>>, vector<1x1x64x128xbf16>
    %104 = vector.shape_cast %103 : vector<1x1x64x128xbf16> to vector<64x128xbf16>
    %cst_122 = arith.constant dense<0.000000e+00> : vector<256x128xf32>
    %105 = tpu.matmul %102, %104, %cst_122 {dimension_numbers = #tpu.dot_dimension_numbers<[1], [0], [0], [1], [0, 0, 1, 1], [], []>} : vector<256x64xbf16>, vector<64x128xbf16>, vector<256x128xf32> -> vector<256x128xf32>
    %106 = arith.addf %99, %105 : vector<256x128xf32>
    %c1_123 = arith.constant 1 : index
    %c1_124 = arith.constant 1 : index
    %c0_125 = arith.constant 0 : index
    %107 = vector.load %arg15[%c1_123, %c1_124, %c0_125] : memref<18x18x64xf32, #tpu.memory_space<vmem>>, vector<16x16x64xf32>
    %108 = vector.shape_cast %107 : vector<16x16x64xf32> to vector<256x64xf32>
    %109 = arith.truncf %108 : vector<256x64xf32> to vector<256x64xbf16>
    %c1_126 = arith.constant 1 : index
    %c1_127 = arith.constant 1 : index
    %c0_128 = arith.constant 0 : index
    %c0_129 = arith.constant 0 : index
    %110 = vector.load %arg4[%c1_126, %c1_127, %c0_128, %c0_129] : memref<3x3x64x128xbf16, #tpu.memory_space<vmem>>, vector<1x1x64x128xbf16>
    %111 = vector.shape_cast %110 : vector<1x1x64x128xbf16> to vector<64x128xbf16>
    %cst_130 = arith.constant dense<0.000000e+00> : vector<256x128xf32>
    %112 = tpu.matmul %109, %111, %cst_130 {dimension_numbers = #tpu.dot_dimension_numbers<[1], [0], [0], [1], [0, 0, 1, 1], [], []>} : vector<256x64xbf16>, vector<64x128xbf16>, vector<256x128xf32> -> vector<256x128xf32>
    %113 = arith.addf %106, %112 : vector<256x128xf32>
    %c1_131 = arith.constant 1 : index
    %c2_132 = arith.constant 2 : index
    %c0_133 = arith.constant 0 : index
    %114 = vector.load %arg15[%c1_131, %c2_132, %c0_133] : memref<18x18x64xf32, #tpu.memory_space<vmem>>, vector<16x16x64xf32>
    %115 = vector.shape_cast %114 : vector<16x16x64xf32> to vector<256x64xf32>
    %116 = arith.truncf %115 : vector<256x64xf32> to vector<256x64xbf16>
    %c1_134 = arith.constant 1 : index
    %c2_135 = arith.constant 2 : index
    %c0_136 = arith.constant 0 : index
    %c0_137 = arith.constant 0 : index
    %117 = vector.load %arg4[%c1_134, %c2_135, %c0_136, %c0_137] : memref<3x3x64x128xbf16, #tpu.memory_space<vmem>>, vector<1x1x64x128xbf16>
    %118 = vector.shape_cast %117 : vector<1x1x64x128xbf16> to vector<64x128xbf16>
    %cst_138 = arith.constant dense<0.000000e+00> : vector<256x128xf32>
    %119 = tpu.matmul %116, %118, %cst_138 {dimension_numbers = #tpu.dot_dimension_numbers<[1], [0], [0], [1], [0, 0, 1, 1], [], []>} : vector<256x64xbf16>, vector<64x128xbf16>, vector<256x128xf32> -> vector<256x128xf32>
    %120 = arith.addf %113, %119 : vector<256x128xf32>
    %c2_139 = arith.constant 2 : index
    %c0_140 = arith.constant 0 : index
    %c0_141 = arith.constant 0 : index
    %121 = vector.load %arg15[%c2_139, %c0_140, %c0_141] : memref<18x18x64xf32, #tpu.memory_space<vmem>>, vector<16x16x64xf32>
    %122 = vector.shape_cast %121 : vector<16x16x64xf32> to vector<256x64xf32>
    %123 = arith.truncf %122 : vector<256x64xf32> to vector<256x64xbf16>
    %c2_142 = arith.constant 2 : index
    %c0_143 = arith.constant 0 : index
    %c0_144 = arith.constant 0 : index
    %c0_145 = arith.constant 0 : index
    %124 = vector.load %arg4[%c2_142, %c0_143, %c0_144, %c0_145] : memref<3x3x64x128xbf16, #tpu.memory_space<vmem>>, vector<1x1x64x128xbf16>
    %125 = vector.shape_cast %124 : vector<1x1x64x128xbf16> to vector<64x128xbf16>
    %cst_146 = arith.constant dense<0.000000e+00> : vector<256x128xf32>
    %126 = tpu.matmul %123, %125, %cst_146 {dimension_numbers = #tpu.dot_dimension_numbers<[1], [0], [0], [1], [0, 0, 1, 1], [], []>} : vector<256x64xbf16>, vector<64x128xbf16>, vector<256x128xf32> -> vector<256x128xf32>
    %127 = arith.addf %120, %126 : vector<256x128xf32>
    %c2_147 = arith.constant 2 : index
    %c1_148 = arith.constant 1 : index
    %c0_149 = arith.constant 0 : index
    %128 = vector.load %arg15[%c2_147, %c1_148, %c0_149] : memref<18x18x64xf32, #tpu.memory_space<vmem>>, vector<16x16x64xf32>
    %129 = vector.shape_cast %128 : vector<16x16x64xf32> to vector<256x64xf32>
    %130 = arith.truncf %129 : vector<256x64xf32> to vector<256x64xbf16>
    %c2_150 = arith.constant 2 : index
    %c1_151 = arith.constant 1 : index
    %c0_152 = arith.constant 0 : index
    %c0_153 = arith.constant 0 : index
    %131 = vector.load %arg4[%c2_150, %c1_151, %c0_152, %c0_153] : memref<3x3x64x128xbf16, #tpu.memory_space<vmem>>, vector<1x1x64x128xbf16>
    %132 = vector.shape_cast %131 : vector<1x1x64x128xbf16> to vector<64x128xbf16>
    %cst_154 = arith.constant dense<0.000000e+00> : vector<256x128xf32>
    %133 = tpu.matmul %130, %132, %cst_154 {dimension_numbers = #tpu.dot_dimension_numbers<[1], [0], [0], [1], [0, 0, 1, 1], [], []>} : vector<256x64xbf16>, vector<64x128xbf16>, vector<256x128xf32> -> vector<256x128xf32>
    %134 = arith.addf %127, %133 : vector<256x128xf32>
    %c2_155 = arith.constant 2 : index
    %c2_156 = arith.constant 2 : index
    %c0_157 = arith.constant 0 : index
    %135 = vector.load %arg15[%c2_155, %c2_156, %c0_157] : memref<18x18x64xf32, #tpu.memory_space<vmem>>, vector<16x16x64xf32>
    %136 = vector.shape_cast %135 : vector<16x16x64xf32> to vector<256x64xf32>
    %137 = arith.truncf %136 : vector<256x64xf32> to vector<256x64xbf16>
    %c2_158 = arith.constant 2 : index
    %c2_159 = arith.constant 2 : index
    %c0_160 = arith.constant 0 : index
    %c0_161 = arith.constant 0 : index
    %138 = vector.load %arg4[%c2_158, %c2_159, %c0_160, %c0_161] : memref<3x3x64x128xbf16, #tpu.memory_space<vmem>>, vector<1x1x64x128xbf16>
    %139 = vector.shape_cast %138 : vector<1x1x64x128xbf16> to vector<64x128xbf16>
    %cst_162 = arith.constant dense<0.000000e+00> : vector<256x128xf32>
    %140 = tpu.matmul %137, %139, %cst_162 {dimension_numbers = #tpu.dot_dimension_numbers<[1], [0], [0], [1], [0, 0, 1, 1], [], []>} : vector<256x64xbf16>, vector<64x128xbf16>, vector<256x128xf32> -> vector<256x128xf32>
    %141 = arith.addf %134, %140 : vector<256x128xf32>
    %c0_163 = arith.constant 0 : index
    %c0_164 = arith.constant 0 : index
    %142 = vector.load %arg5[%c0_163, %c0_164] : memref<1x128xf32, #tpu.memory_space<vmem>>, vector<1x128xf32>
    %143 = vector.broadcast %142 : vector<1x128xf32> to vector<256x128xf32>
    %144 = arith.addf %141, %143 : vector<256x128xf32>
    %cst_165 = arith.constant 0.000000e+00 : f32
    %145 = vector.broadcast %cst_165 : f32 to vector<256x128xf32>
    %146 = arith.maximumf %144, %145 : vector<256x128xf32>
    %147 = tpu.transpose %146, [1, 0] : vector<256x128xf32> -> vector<128x256xf32>
    %c0_166 = arith.constant 0 : index
    %c0_167 = arith.constant 0 : index
    %148 = vector.load %arg6[%c0_166, %c0_167] : memref<128x1xf32, #tpu.memory_space<vmem>>, vector<128x1xf32>
    %149 = vector.broadcast %148 : vector<128x1xf32> to vector<128x256xf32>
    %150 = arith.mulf %147, %149 : vector<128x256xf32>
    %cst_168 = arith.constant dense<0.000000e+00> : vector<256xf32>
    %151 = vector.multi_reduction <add>, %150, %cst_168 [0] : vector<128x256xf32> to vector<256xf32>
    %152 = vector.shape_cast %151 : vector<256xf32> to vector<1x256xf32>
    %c0_169 = arith.constant 0 : index
    %c0_170 = arith.constant 0 : index
    %153 = vector.load %arg7[%c0_169, %c0_170] : memref<1x1xf32, #tpu.memory_space<vmem>>, vector<1x1xf32>
    %154 = vector.broadcast %153 : vector<1x1xf32> to vector<1x256xf32>
    %155 = arith.addf %152, %154 : vector<1x256xf32>
    %156 = arith.negf %155 : vector<1x256xf32>
    %157 = math.exp %156 : vector<1x256xf32>
    %cst_171 = arith.constant 1.000000e+00 : f32
    %158 = vector.broadcast %cst_171 : f32 to vector<1x256xf32>
    %159 = arith.addf %158, %157 : vector<1x256xf32>
    %160 = arith.divf %158, %159 : vector<1x256xf32>
    %161 = vector.shape_cast %160 : vector<1x256xf32> to vector<1x1x256xf32>
    %c0_172 = arith.constant 0 : index
    %c0_173 = arith.constant 0 : index
    %c0_174 = arith.constant 0 : index
    %162 = vector.load %arg12[%c0_172, %c0_173, %c0_174] : memref<1x1x256xf32, #tpu.memory_space<vmem>>, vector<1x1x256xf32>
    tpu.vector_store %arg12[%c0_172, %c0_173, %c0_174], %161 {strides = array<i32>} : memref<1x1x256xf32, #tpu.memory_space<vmem>>, vector<1x1x256xf32>,
    %cst_175 = arith.constant dense<0.000000e+00> : vector<128xf32>
    %163 = vector.multi_reduction <add>, %146, %cst_175 [0] : vector<256x128xf32> to vector<128xf32>
    %164 = vector.shape_cast %163 : vector<128xf32> to vector<1x128xf32>
    %cst_176 = arith.constant 2.560000e+02 : f32
    %165 = vector.broadcast %cst_176 : f32 to vector<1x128xf32>
    %166 = arith.divf %164, %165 : vector<1x128xf32>
    %c0_177 = arith.constant 0 : index
    %c0_178 = arith.constant 0 : index
    %167 = vector.load %arg8[%c0_177, %c0_178] : memref<128x64xf32, #tpu.memory_space<vmem>>, vector<128x64xf32>
    %cst_179 = arith.constant dense<0.000000e+00> : vector<1x64xf32>
    %168 = tpu.matmul %166, %167, %cst_179 {dimension_numbers = #tpu.dot_dimension_numbers<[1], [0], [0], [1], [0, 0, 1, 1], [], []>} : vector<1x128xf32>, vector<128x64xf32>, vector<1x64xf32> -> vector<1x64xf32>
    %c0_180 = arith.constant 0 : index
    %c0_181 = arith.constant 0 : index
    %169 = vector.load %arg9[%c0_180, %c0_181] : memref<1x64xf32, #tpu.memory_space<vmem>>, vector<1x64xf32>
    %170 = arith.addf %168, %169 : vector<1x64xf32>
    %cst_182 = arith.constant 0.000000e+00 : f32
    %171 = vector.broadcast %cst_182 : f32 to vector<1x64xf32>
    %172 = arith.maximumf %170, %171 : vector<1x64xf32>
    %c0_183 = arith.constant 0 : index
    %c0_184 = arith.constant 0 : index
    %173 = vector.load %arg10[%c0_183, %c0_184] : memref<64x4xf32, #tpu.memory_space<vmem>>, vector<64x4xf32>
    %cst_185 = arith.constant dense<0.000000e+00> : vector<1x4xf32>
    %174 = tpu.matmul %172, %173, %cst_185 {dimension_numbers = #tpu.dot_dimension_numbers<[1], [0], [0], [1], [0, 0, 1, 1], [], []>} : vector<1x64xf32>, vector<64x4xf32>, vector<1x4xf32> -> vector<1x4xf32>
    %c0_186 = arith.constant 0 : index
    %c0_187 = arith.constant 0 : index
    %175 = vector.load %arg11[%c0_186, %c0_187] : memref<1x4xf32, #tpu.memory_space<vmem>>, vector<1x4xf32>
    %176 = arith.addf %174, %175 : vector<1x4xf32>
    %177 = vector.shape_cast %176 : vector<1x4xf32> to vector<1x1x4xf32>
    %c0_188 = arith.constant 0 : index
    %c0_189 = arith.constant 0 : index
    %c0_190 = arith.constant 0 : index
    %178 = vector.load %arg13[%c0_188, %c0_189, %c0_190] : memref<1x1x4xf32, #tpu.memory_space<vmem>>, vector<1x1x4xf32>
    tpu.vector_store %arg13[%c0_188, %c0_189, %c0_190], %177 {strides = array<i32>} : memref<1x1x4xf32, #tpu.memory_space<vmem>>, vector<1x1x4xf32>,
    return
  }
  func.func @transform_0(%arg0: i32) -> (i32, i32, i32, i32) {
    %c0_i32 = arith.constant 0 : i32
    %c0_i32_0 = arith.constant 0 : i32
    %c0_i32_1 = arith.constant 0 : i32
    %c0_i32_2 = arith.constant 0 : i32
    return %arg0, %c0_i32, %c0_i32_0, %c0_i32_1 : i32, i32, i32, i32
  }
  func.func @transform_1(%arg0: i32) -> (i32, i32, i32, i32) {
    %c0_i32 = arith.constant 0 : i32
    %c0_i32_0 = arith.constant 0 : i32
    %c0_i32_1 = arith.constant 0 : i32
    %c0_i32_2 = arith.constant 0 : i32
    %c0_i32_3 = arith.constant 0 : i32
    return %c0_i32, %c0_i32_0, %c0_i32_1, %c0_i32_2 : i32, i32, i32, i32
  }
  func.func @transform_2(%arg0: i32) -> (i32, i32) {
    %c0_i32 = arith.constant 0 : i32
    %c0_i32_0 = arith.constant 0 : i32
    %c0_i32_1 = arith.constant 0 : i32
    return %c0_i32, %c0_i32_0 : i32, i32
  }
  func.func @transform_3(%arg0: i32) -> (i32, i32, i32, i32) {
    %c0_i32 = arith.constant 0 : i32
    %c0_i32_0 = arith.constant 0 : i32
    %c0_i32_1 = arith.constant 0 : i32
    %c0_i32_2 = arith.constant 0 : i32
    %c0_i32_3 = arith.constant 0 : i32
    return %c0_i32, %c0_i32_0, %c0_i32_1, %c0_i32_2 : i32, i32, i32, i32
  }
  func.func @transform_4(%arg0: i32) -> (i32, i32) {
    %c0_i32 = arith.constant 0 : i32
    %c0_i32_0 = arith.constant 0 : i32
    %c0_i32_1 = arith.constant 0 : i32
    return %c0_i32, %c0_i32_0 : i32, i32
  }
  func.func @transform_5(%arg0: i32) -> (i32, i32) {
    %c0_i32 = arith.constant 0 : i32
    %c0_i32_0 = arith.constant 0 : i32
    %c0_i32_1 = arith.constant 0 : i32
    return %c0_i32, %c0_i32_0 : i32, i32
  }
  func.func @transform_6(%arg0: i32) -> (i32, i32) {
    %c0_i32 = arith.constant 0 : i32
    %c0_i32_0 = arith.constant 0 : i32
    %c0_i32_1 = arith.constant 0 : i32
    return %c0_i32, %c0_i32_0 : i32, i32
  }
  func.func @transform_7(%arg0: i32) -> (i32, i32) {
    %c0_i32 = arith.constant 0 : i32
    %c0_i32_0 = arith.constant 0 : i32
    %c0_i32_1 = arith.constant 0 : i32
    return %c0_i32, %c0_i32_0 : i32, i32
  }
  func.func @transform_8(%arg0: i32) -> (i32, i32) {
    %c0_i32 = arith.constant 0 : i32
    %c0_i32_0 = arith.constant 0 : i32
    %c0_i32_1 = arith.constant 0 : i32
    return %c0_i32, %c0_i32_0 : i32, i32
  }
  func.func @transform_9(%arg0: i32) -> (i32, i32) {
    %c0_i32 = arith.constant 0 : i32
    %c0_i32_0 = arith.constant 0 : i32
    %c0_i32_1 = arith.constant 0 : i32
    return %c0_i32, %c0_i32_0 : i32, i32
  }
  func.func @transform_10(%arg0: i32) -> (i32, i32) {
    %c0_i32 = arith.constant 0 : i32
    %c0_i32_0 = arith.constant 0 : i32
    %c0_i32_1 = arith.constant 0 : i32
    return %c0_i32, %c0_i32_0 : i32, i32
  }
  func.func @transform_11(%arg0: i32) -> (i32, i32, i32) {
    %c0_i32 = arith.constant 0 : i32
    %c0_i32_0 = arith.constant 0 : i32
    %c0_i32_1 = arith.constant 0 : i32
    return %arg0, %c0_i32, %c0_i32_0 : i32, i32, i32
  }
  func.func @transform_12(%arg0: i32) -> (i32, i32, i32) {
    %c0_i32 = arith.constant 0 : i32
    %c0_i32_0 = arith.constant 0 : i32
    %c0_i32_1 = arith.constant 0 : i32
    return %arg0, %c0_i32, %c0_i32_0 : i32, i32, i32
  }
}

</mosaic_0001>

<bundles_post_ra>
// kernel: thyroid_multitask_forward.1
= control target key start
LH: loop header
LB: loop body
LE: loop exit
PB: predicated region body
PF: predicated region fallthrough
CT: control target
= control target key end

     0   :  { %s8225_s0 = inlined_call_operand.vmem [shape: f32[2,16,16,3], index: 0, kind: input, shape index: {}]   ;;  %s8226_s1 = inlined_call_operand.vmem [shape: bf16[3,3,3,64], index: 1, kind: input, shape index: {}]   ;;  %s8227_s2 = inlined_call_operand.vmem [shape: f32[1,64], index: 2, kind: input, shape index: {}]   ;;  %s8228_s3 = inlined_call_operand.vmem [shape: bf16[3,3,64,128], index: 3, kind: input, shape index: {}]   ;;  %s8229_s4 = inlined_call_operand.vmem [shape: f32[1,128], index: 4, kind: input, shape index: {}]   ;;  %s8230_s5 = inlined_call_operand.vmem [shape: f32[128,1], index: 5, kind: input, shape index: {}]   ;;  %s8231_s6 = inlined_call_operand.<no memory space> [shape: f32[1,1], index: 6, kind: input, shape index: {}]   ;;  %s8232_s7 = inlined_call_operand.vmem [shape: f32[128,64], index: 7, kind: input, shape index: {}]   ;;  %s8233_s8 = inlined_call_operand.vmem [shape: f32[1,64], index: 8, kind: input, shape index: {}]   ;;  %s8234_s9 = inlined_call_operand.vmem [shape: f32[64,4], index: 9, kind: input, shape index: {}]   ;;  %s8235_s10 = inlined_call_operand.vmem [shape: f32[1,4], index: 10, kind: input, shape index: {}]   ;;  %s8236_s11 = inlined_call_operand.vmem [shape: f32[2,1,256], index: 11, kind: output, shape index: {0}]   ;;  %s8237_s12 = inlined_call_operand.hbm [shape: f32[2,1,4], index: 12, kind: output, shape index: {1}]  }
   0x1   :  { %8249 = sst [smem:[#allocation16_spill]] %s8225_s0  ;;  %v18_v0 = vstv %s8231_s6 }
   0x2   :  { %8250 = sst [smem:[#allocation17_spill]] %s8226_s1  ;;  %19 = vst [vmem:[#allocation4] sm:$0x1] %v18_v0 }
   0x3   :  { %20 = vsyncpa [#allocation6], 0 }
   0x4   :  { %22 = vsyncpa [#allocation6 + $0x1], 0  ;;  %s6151_s23 = smov 0   ;;  %s6153_s24 = smov 0  }
   0x5   :  { %s6155_s25 = smov 0   ;;  %s6157_s26 = smov 0  }
   0x6 LB: > { %s6172_s6 = sadd.s32 4294967295, %s6077_s26   ;;  %s5402_s27 = sadd.s32 4294967294, %s6077_s26   ;;  %s6077_s26 = sphi %s6157_s26, %s8287_s26   ;;  %s6073_s25 = sphi %s6155_s25, %s8286_s25   ;;  %s6069_s24 = sphi %s6153_s24, %s8285_s24   ;;  %s6065_s23 = sphi %s6151_s23, %s8284_s23  }
   0x7   : > { %s6176_s28 = sadd.s32 1, %s6077_s26   ;;  %s297_s29 = sadd.s32 1, %s6073_s25 }
   0x8   : > { %s294_s30 = ssub.s32 %s6077_s26, %s6176_s28  ;;  %p307_p0 = scmp.ne.s32.totalorder %s6073_s25, %s6069_s24 }
   0x9   : > { %p295_p1 = scmp.eq.s32.totalorder %s294_s30, 0  ;;  %p308_p2 = scmp.eq.s32.totalorder %s6172_s6, 1 }
   0xa   : > { %p313_p3 = scmp.ne.s32.totalorder %s6069_s24, %s6065_s23  ;;  %p314_p4 = scmp.eq.s32.totalorder %s5402_s27, 1 }
   0xb   : > { %s6187_s13 = scalar_select %p295_p1, %s6073_s25, %s297_s29  }
   0xc   : > { %p6189_p5 = por %p308_p2, %p307_p0  ;;  %p6193_p6 = por %p314_p4, %p313_p3 }
   0xd   : > { %p5405_p7 = scmp.ge.s32.totalorder %s6077_s26, 1  ;;  %p370_p8 = scmp.lt.s32.totalorder %s6077_s26, 3 }
   0xf   : > { %p371_p9 = pnand %p5405_p7, %p370_p8 }
  0x11   : > { %374 = sbr.rel (%p371_p9) target bundleno = 1790 (0x6fe), region = 64 }
  0x16   : > { %s8253_s1 = sld [smem:[#allocation17_spill]]  ;;  %vm693_vm0 = vcmask 1040384   ;;  %vm694_vm1 = vcmask 1041408   ;;  %vm425_vm2 = vcmask 23552   ;;  %v6079_v2 = vmov 65535   ;;  %p415_p10 = scmp.lt.s32.totalorder %s6172_s6, 1 }
  0x17   : > { %v695_v3 = vsel %vm693_vm0, 4294967295, %v6079_v2  ;;  %vm428_vm3 = vcmask 17408   ;;  %v8238_v6 = vmov 0.0   ;;  %s8254_s0 = sld [smem:[#allocation16_spill]]  ;;  %vm2552_vm4 = vcmask 523264   ;;  %s6035_s30 = scalar_lea.hbm %s8237_s12, 2 }
  0x18   : > { %v6206_v5 = vsel %vm694_vm1, %v695_v3, 0  ;;  %426 = vst.msk [vmem:[#allocation2] sm:$0xff] %vm425_vm2, %v8238_v6  ;;  %s6302_s22 = scalar_select %p415_p10, %s6172_s6, 1  ;;  %vm2555_vm5 = vcmask 517120   ;;  %vm5301_vm1 = vcmask 24576  }
  0x19   : > { %427 = vst.msk [vmem:[#allocation2 + $0x8] sm:$0xff] %vm425_vm2, %v8238_v6 }
  0x1a   : > { %429 = vst.msk [vmem:[#allocation2 + $0x10] sm:$0x3] %vm428_vm3, %v8238_v6  ;;  %s5918_s27 = sshll.u32 %s6302_s22, 8  ;;  %s5408_s19 = sshll.u32 %s6302_s22, 1 }
  0x1b   : > { %430 = vst.msk [vmem:[#allocation2 + $0x18] sm:$0xff] %vm425_vm2, %v8238_v6  ;;  %s413_s22 = sand.u32 1, %s6069_s24  }
  0x1c   : > { %v5409_v1 = vld [vmem:[%s8253_s1 + $0x2] sm:$0x3]  ;;  %v594_v4 = vld [vmem:[%s8253_s1] sm:$0x3]  ;;  %431 = vst.msk [vmem:[#allocation2 + $0x20] sm:$0xff] %vm425_vm2, %v8238_v6 }
  0x1d   : > { %v698_v7 = vand.u32 %v5409_v1, %v6206_v5  ;;  %v838_v8 = vand.u32 %v6206_v5, %v594_v4  ;;  %432 = vst.msk [vmem:[#allocation2 + $0x28] sm:$0x3] %vm428_vm3, %v8238_v6  ;;  %v5476_v15 = vld [vmem:[%s8253_s1 + $0x8] sm:$0x3]  ;;  %s6322_s16 = scalar_lea.vmem %s8254_s0, %s5918_s27  ;;  %v5442_v17 = vld [vmem:[%s8253_s1 + $0x4] sm:$0x3]  ;;  %s423_s27 = scalar_lea.vmem %s8236_s11, %s5408_s19 }
  0x1e   : > { %433 = vst.msk [vmem:[#allocation2 + $0x30] sm:$0xff] %vm425_vm2, %v8238_v6  ;;  %v1472_v16 = vand.u32 %v5476_v15, %v6206_v5  ;;  %v5459_v18 = vld [vmem:[%s8253_s1 + $0x6] sm:$0x3]  ;;  %v1028_v19 = vand.u32 %v5442_v17, %v6206_v5  ;;  %v498_v22 = vld [vmem:[%s6322_s16 + $0x88] sm:$0xff]  ;;  %v499_v25 = vld [vmem:[%s6322_s16 + $0x90] sm:$0xff]  ;;  %s414_s0 = scalar_lea.vmem [#allocation5], %s413_s22 }
  0x1f   : > { %707 = vmatpush.bf16.msra.mxu0 %v698_v7  ;;  %847 = vmatpush.bf16.msra.mxu1 %v838_v8  ;;  %434 = vst.msk [vmem:[#allocation2 + $0x38] sm:$0xff] %vm425_vm2, %v8238_v6  ;;  %v546_v9 = vld [vmem:[#allocation2] sm:$0xff]  ;;  %v1250_v20 = vand.u32 %v5459_v18, %v6206_v5  ;;  %v482_v24 = vld [vmem:[%s6322_s16 + $0x8] sm:$0xff]  ;;  %v500_v26 = vld [vmem:[%s6322_s16 + $0x98] sm:$0xff]  ;;  %s5308_s19 = scalar_lea.sflag [#allocation6], %s413_s22 }
  0x20   : > { %5955 = vmatpush.bf16.msra.mxu2 %v698_v7  ;;  %5956 = vmatpush.bf16.msra.mxu3 %v838_v8  ;;  %v595_v10 = vld [vmem:[#allocation2 + $0x1] sm:$0xff]  ;;  %435 = vst.msk [vmem:[#allocation2 + $0x40] sm:$0x3] %vm428_vm3, %v8238_v6  ;;  %v483_v27 = vld [vmem:[%s6322_s16 + $0x10] sm:$0xff]  ;;  %v484_v28 = vld [vmem:[%s6322_s16 + $0x18] sm:$0xff] }
  0x21   : > { %v547_v11 = vld [vmem:[#allocation2 + $0x8] sm:$0xff]  ;;  %436 = vst.msk [vmem:[#allocation2 + $0x48] sm:$0xff] %vm425_vm2, %v8238_v6  ;;  %v497_v21 = vld [vmem:[%s6322_s16 + $0x80] sm:$0xff]  ;;  %v503_v45 = vld [vmem:[%s6322_s16 + $0xb0] sm:$0xff] }
  0x22   : > { %v596_v12 = vld [vmem:[#allocation2 + $0x9] sm:$0xff]  ;;  %v578_v13 = vpack.c.bf16 %v547_v11, %v546_v9  ;;  %437 = vst.msk [vmem:[#allocation2 + $0x50] sm:$0xff] %vm425_vm2, %v8238_v6  ;;  %v481_v23 = vld [vmem:[%s6322_s16] sm:$0xff]  ;;  %v504_v46 = vld [vmem:[%s6322_s16 + $0xb8] sm:$0xff] }
  0x23   : > { %v627_v14 = vpack.c.bf16 %v596_v12, %v595_v10  ;;  %438 = vst.msk [vmem:[#allocation2 + $0x58] sm:$0x3] %vm428_vm3, %v8238_v6  ;;  %1481 = vmatpush.bf16.msrb.mxu0 %v1472_v16  ;;  %v501_v29 = vld [vmem:[%s6322_s16 + $0xa0] sm:$0xff]  ;;  %v502_v30 = vld [vmem:[%s6322_s16 + $0xa8] sm:$0xff]  ;;  %v487_v59 = vld [vmem:[%s6322_s16 + $0x30] sm:$0xff] }
  0x24   : > { %5426 = vmatmul.msk.bf16.vlgmr.msra.gmra.mxu1 %vm425_vm2, %v578_v13  ;;  %439 = vst.msk [vmem:[#allocation2 + $0x60] sm:$0xff] %vm425_vm2, %v8238_v6  ;;  %1037 = vmatpush.bf16.msrb.mxu2 %v1028_v19  ;;  %v485_v41 = vld [vmem:[%s6322_s16 + $0x20] sm:$0xff]  ;;  %v486_v44 = vld [vmem:[%s6322_s16 + $0x28] sm:$0xff]  ;;  %v488_v60 = vld [vmem:[%s6322_s16 + $0x38] sm:$0xff] }
  0x25   : > { %5410 = vmatmul.msk.bf16.vlgmr.msra.gmra.mxu0 %vm425_vm2, %v627_v14  ;;  %440 = vst.msk [vmem:[#allocation2 + $0x68] sm:$0xff] %vm425_vm2, %v8238_v6  ;;  %1259 = vmatpush.bf16.msrb.mxu3 %v1250_v20  ;;  %v505_v61 = vld [vmem:[%s6322_s16 + $0xc0] sm:$0xff]  ;;  %v506_v62 = vld [vmem:[%s6322_s16 + $0xc8] sm:$0xff]  ;;  %v507_v15 = vld [vmem:[%s6322_s16 + $0xd0] sm:$0xff] }
  0x26   : > { %441 = vst.msk [vmem:[#allocation2 + $0x70] sm:$0x3] %vm428_vm3, %v8238_v6  ;;  %v489_v13 = vld [vmem:[%s6322_s16 + $0x40] sm:$0xff]  ;;  %v490_v14 = vld [vmem:[%s6322_s16 + $0x48] sm:$0xff]  ;;  %v508_v16 = vld [vmem:[%s6322_s16 + $0xd8] sm:$0xff] }
  0x27   : > { %442 = vst.msk [vmem:[#allocation2 + $0x78] sm:$0xff] %vm425_vm2, %v8238_v6 }
  0x28   : > { %443 = vst.msk [vmem:[#allocation2 + $0x80] sm:$0xff] %vm425_vm2, %v8238_v6 }
  0x29   : > { %444 = vst.msk [vmem:[#allocation2 + $0x88] sm:$0x3] %vm428_vm3, %v8238_v6 }
  0x2a   : > { %445 = vst.msk [vmem:[#allocation2 + $0x90] sm:$0xff] %vm425_vm2, %v8238_v6 }
  0x2b   : > { %446 = vst.msk [vmem:[#allocation2 + $0x98] sm:$0xff] %vm425_vm2, %v8238_v6 }
  0x2c   : > { %447 = vst.msk [vmem:[#allocation2 + $0xa0] sm:$0x3] %vm428_vm3, %v8238_v6 }
  0x2d   : > { %448 = vst.msk [vmem:[#allocation2 + $0xa8] sm:$0xff] %vm425_vm2, %v8238_v6 }
  0x2e   : > { %449 = vst.msk [vmem:[#allocation2 + $0xb0] sm:$0xff] %vm425_vm2, %v8238_v6 }
  0x2f   : > { %450 = vst.msk [vmem:[#allocation2 + $0xb8] sm:$0x3] %vm428_vm3, %v8238_v6 }
  0x30   : > { %451 = vst.msk [vmem:[#allocation2 + $0xc0] sm:$0xff] %vm425_vm2, %v8238_v6 }
  0x31   : > { %452 = vst.msk [vmem:[#allocation2 + $0xc8] sm:$0xff] %vm425_vm2, %v8238_v6 }
  0x32   : > { %453 = vst.msk [vmem:[#allocation2 + $0xd0] sm:$0x3] %vm428_vm3, %v8238_v6 }
  0x33   : > { %454 = vst.msk [vmem:[#allocation2 + $0xd8] sm:$0xff] %vm425_vm2, %v8238_v6 }
  0x34   : > { %455 = vst.msk [vmem:[#allocation2 + $0xe0] sm:$0xff] %vm425_vm2, %v8238_v6 }
  0x35   : > { %456 = vst.msk [vmem:[#allocation2 + $0xe8] sm:$0x3] %vm428_vm3, %v8238_v6 }
  0x36   : > { %457 = vst.msk [vmem:[#allocation2 + $0xf0] sm:$0xff] %vm425_vm2, %v8238_v6 }
  0x37   : > { %458 = vst.msk [vmem:[#allocation2 + $0xf8] sm:$0xff] %vm425_vm2, %v8238_v6 }
  0x38   : > { %459 = vst.msk [vmem:[#allocation2 + $0x100] sm:$0x3] %vm428_vm3, %v8238_v6 }
  0x39   : > { %460 = vst.msk [vmem:[#allocation2 + $0x108] sm:$0xff] %vm425_vm2, %v8238_v6 }
  0x3a   : > { %461 = vst.msk [vmem:[#allocation2 + $0x110] sm:$0xff] %vm425_vm2, %v8238_v6 }
  0x3b   : > { %462 = vst.msk [vmem:[#allocation2 + $0x118] sm:$0x3] %vm428_vm3, %v8238_v6 }
  0x3c   : > { %463 = vst.msk [vmem:[#allocation2 + $0x120] sm:$0xff] %vm425_vm2, %v8238_v6 }
  0x3d   : > { %464 = vst.msk [vmem:[#allocation2 + $0x128] sm:$0xff] %vm425_vm2, %v8238_v6 }
  0x3e   : > { %465 = vst.msk [vmem:[#allocation2 + $0x130] sm:$0x3] %vm428_vm3, %v8238_v6 }
  0x3f   : > { %466 = vst.msk [vmem:[#allocation2 + $0x138] sm:$0xff] %vm425_vm2, %v8238_v6 }
  0x40   : > { %467 = vst.msk [vmem:[#allocation2 + $0x140] sm:$0xff] %vm425_vm2, %v8238_v6 }
  0x41   : > { %468 = vst.msk [vmem:[#allocation2 + $0x148] sm:$0x3] %vm428_vm3, %v8238_v6 }
  0x42   : > { %469 = vst.msk [vmem:[#allocation2 + $0x150] sm:$0xff] %vm425_vm2, %v8238_v6 }
  0x43   : > { %470 = vst.msk [vmem:[#allocation2 + $0x158] sm:$0xff] %vm425_vm2, %v8238_v6 }
  0x44   : > { %471 = vst.msk [vmem:[#allocation2 + $0x160] sm:$0x3] %vm428_vm3, %v8238_v6 }
  0x45   : > { %472 = vst.msk [vmem:[#allocation2 + $0x168] sm:$0xff] %vm425_vm2, %v8238_v6 }
  0x46   : > { %473 = vst.msk [vmem:[#allocation2 + $0x170] sm:$0xff] %vm425_vm2, %v8238_v6 }
  0x47   : > { %474 = vst.msk [vmem:[#allocation2 + $0x178] sm:$0x3] %vm428_vm3, %v8238_v6 }
  0x48   : > { %475 = vst.msk [vmem:[#allocation2 + $0x180] sm:$0xff] %vm425_vm2, %v8238_v6 }
  0x49   : > { %476 = vst.msk [vmem:[#allocation2 + $0x188] sm:$0xff] %vm425_vm2, %v8238_v6 }
  0x4a   : > { %477 = vst.msk [vmem:[#allocation2 + $0x190] sm:$0x3] %vm428_vm3, %v8238_v6 }
  0x4b   : > { %478 = vst.msk [vmem:[#allocation2 + $0x198] sm:$0xff] %vm425_vm2, %v8238_v6 }
  0x4c   : > { %479 = vst.msk [vmem:[#allocation2 + $0x1a0] sm:$0xff] %vm425_vm2, %v8238_v6 }
  0x4d   : > { %480 = vst.msk [vmem:[#allocation2 + $0x1a8] sm:$0x3] %vm428_vm3, %v8238_v6 }
  0x4e   : > { %530 = vst.msk [vmem:[#allocation2 + $0xd9] sm:$0xff] %vm425_vm2, %v497_v21 }
  0x4f   : > { %531 = vst.msk [vmem:[#allocation2 + $0xe1] sm:$0xff] %vm425_vm2, %v498_v22 }
  0x50   : > { %514 = vst.msk [vmem:[#allocation2 + $0x19] sm:$0xff] %vm425_vm2, %v481_v23 }
  0x51   : > { %515 = vst.msk [vmem:[#allocation2 + $0x21] sm:$0xff] %vm425_vm2, %v482_v24 }
  0x52   : > { %532 = vst.msk [vmem:[#allocation2 + $0xf1] sm:$0xff] %vm425_vm2, %v499_v25 }
  0x53   : > { %533 = vst.msk [vmem:[#allocation2 + $0xf9] sm:$0xff] %vm425_vm2, %v500_v26 }
  0x54   : > { %516 = vst.msk [vmem:[#allocation2 + $0x31] sm:$0xff] %vm425_vm2, %v483_v27 }
  0x55   : > { %v613_v31 = vld [vmem:[#allocation2 + $0xd9] sm:$0xff]  ;;  %517 = vst.msk [vmem:[#allocation2 + $0x39] sm:$0xff] %vm425_vm2, %v484_v28 }
  0x56   : > { %v564_v32 = vld [vmem:[#allocation2 + $0xd8] sm:$0xff]  ;;  %v614_v33 = vld [vmem:[#allocation2 + $0xe1] sm:$0xff]  ;;  %534 = vst.msk [vmem:[#allocation2 + $0x109] sm:$0xff] %vm425_vm2, %v501_v29  ;;  %v491_v29 = vld [vmem:[%s6322_s16 + $0x50] sm:$0xff] }
  0x57   : > { %v565_v34 = vld [vmem:[#allocation2 + $0xe0] sm:$0xff]  ;;  %v6361_v35 = vpack.c.bf16 %v614_v33, %v613_v31  ;;  %v548_v38 = vld [vmem:[#allocation2 + $0x18] sm:$0xff]  ;;  %535 = vst.msk [vmem:[#allocation2 + $0x111] sm:$0xff] %vm425_vm2, %v502_v30 }
  0x58   : > { %v6363_v36 = vpack.c.bf16 %v565_v34, %v564_v32  ;;  %v597_v37 = vld [vmem:[#allocation2 + $0x19] sm:$0xff]  ;;  %v598_v39 = vld [vmem:[#allocation2 + $0x21] sm:$0xff]  ;;  %518 = vst.msk [vmem:[#allocation2 + $0x49] sm:$0xff] %vm425_vm2, %v485_v41 }
  0x59   : > { %v549_v40 = vld [vmem:[#allocation2 + $0x20] sm:$0xff]  ;;  %5419 = vmatmul.msk.bf16.vlgmr.msra.gmra.mxu2 %vm425_vm2, %v6361_v35  ;;  %v6371_v42 = vpack.c.bf16 %v598_v39, %v597_v37  ;;  %519 = vst.msk [vmem:[#allocation2 + $0x51] sm:$0xff] %vm425_vm2, %v486_v44  ;;  %v615_v47 = vld [vmem:[#allocation2 + $0xf1] sm:$0xff]  ;;  %v510_v32 = vld [vmem:[%s6322_s16 + $0xe8] sm:$0xff] }
  0x5a   : > { %5435 = vmatmul.msk.bf16.vlgmr.msra.gmra.mxu3 %vm425_vm2, %v6363_v36  ;;  %v6373_v43 = vpack.c.bf16 %v549_v40, %v548_v38  ;;  %536 = vst.msk [vmem:[#allocation2 + $0x121] sm:$0xff] %vm425_vm2, %v503_v45  ;;  %v616_v48 = vld [vmem:[#allocation2 + $0xf9] sm:$0xff]  ;;  %v566_v49 = vld [vmem:[#allocation2 + $0xf0] sm:$0xff] }
  0x5b   : > { %5411 = vmatmul.msk.bf16.gmra.mxu0 %vm425_vm2, %v6371_v42  ;;  %537 = vst.msk [vmem:[#allocation2 + $0x129] sm:$0xff] %vm425_vm2, %v504_v46  ;;  %v567_v50 = vld [vmem:[#allocation2 + $0xf8] sm:$0xff]  ;;  %v550_v53 = vld [vmem:[#allocation2 + $0x30] sm:$0xff]  ;;  %v6386_v55 = vpack.c.bf16 %v616_v48, %v615_v47  ;;  %v509_v31 = vld [vmem:[%s6322_s16 + $0xe0] sm:$0xff] }
  0x5c   : > { %5427 = vmatmul.msk.bf16.gmra.mxu1 %vm425_vm2, %v6373_v43  ;;  %v599_v51 = vld [vmem:[#allocation2 + $0x31] sm:$0xff]  ;;  %v600_v52 = vld [vmem:[#allocation2 + $0x39] sm:$0xff]  ;;  %v6388_v56 = vpack.c.bf16 %v567_v50, %v566_v49  ;;  %520 = vst.msk [vmem:[#allocation2 + $0x61] sm:$0xff] %vm425_vm2, %v487_v59  ;;  %v494_v50 = vld [vmem:[%s6322_s16 + $0x68] sm:$0xff] }
  0x5d   : > { %v551_v54 = vld [vmem:[#allocation2 + $0x38] sm:$0xff]  ;;  %v6390_v57 = vpack.c.bf16 %v600_v52, %v599_v51  ;;  %521 = vst.msk [vmem:[#allocation2 + $0x69] sm:$0xff] %vm425_vm2, %v488_v60  ;;  %v617_v63 = vld [vmem:[#allocation2 + $0x109] sm:$0xff]  ;;  %v493_v49 = vld [vmem:[%s6322_s16 + $0x60] sm:$0xff] }
  0x5e   : > { %v6392_v58 = vpack.c.bf16 %v551_v54, %v550_v53  ;;  %538 = vst.msk [vmem:[#allocation2 + $0x139] sm:$0xff] %vm425_vm2, %v505_v61  ;;  %v618_v0 = vld [vmem:[#allocation2 + $0x111] sm:$0xff]  ;;  %v568_v1 = vld [vmem:[#allocation2 + $0x108] sm:$0xff] }
  0x5f   : > { %539 = vst.msk [vmem:[#allocation2 + $0x141] sm:$0xff] %vm425_vm2, %v506_v62  ;;  %v569_v2 = vld [vmem:[#allocation2 + $0x110] sm:$0xff]  ;;  %v552_v7 = vld [vmem:[#allocation2 + $0x48] sm:$0xff]  ;;  %v6410_v9 = vpack.c.bf16 %v618_v0, %v617_v63  ;;  %v492_v30 = vld [vmem:[%s6322_s16 + $0x58] sm:$0xff] }
  0x60   : > { %v601_v3 = vld [vmem:[#allocation2 + $0x49] sm:$0xff]  ;;  %v602_v4 = vld [vmem:[#allocation2 + $0x51] sm:$0xff]  ;;  %v6412_v10 = vpack.c.bf16 %v569_v2, %v568_v1  ;;  %522 = vst.msk [vmem:[#allocation2 + $0x79] sm:$0xff] %vm425_vm2, %v489_v13 }
  0x61   : > { %v553_v8 = vld [vmem:[#allocation2 + $0x50] sm:$0xff]  ;;  %v6414_v11 = vpack.c.bf16 %v602_v4, %v601_v3  ;;  %523 = vst.msk [vmem:[#allocation2 + $0x81] sm:$0xff] %vm425_vm2, %v490_v14  ;;  %v619_v17 = vld [vmem:[#allocation2 + $0x121] sm:$0xff]  ;;  %v496_v4 = vld [vmem:[%s6322_s16 + $0x78] sm:$0xff] }
  0x62   : > { %v6416_v12 = vpack.c.bf16 %v553_v8, %v552_v7  ;;  %540 = vst.msk [vmem:[#allocation2 + $0x151] sm:$0xff] %vm425_vm2, %v507_v15  ;;  %v620_v18 = vld [vmem:[#allocation2 + $0x129] sm:$0xff]  ;;  %v570_v19 = vld [vmem:[#allocation2 + $0x120] sm:$0xff] }
  0x63   : > { %541 = vst.msk [vmem:[#allocation2 + $0x159] sm:$0xff] %vm425_vm2, %v508_v16  ;;  %v571_v20 = vld [vmem:[#allocation2 + $0x128] sm:$0xff]  ;;  %v554_v23 = vld [vmem:[#allocation2 + $0x60] sm:$0xff]  ;;  %v6434_v25 = vpack.c.bf16 %v620_v18, %v619_v17  ;;  %v495_v3 = vld [vmem:[%s6322_s16 + $0x70] sm:$0xff] }
  0x64   : > { %v603_v21 = vld [vmem:[#allocation2 + $0x61] sm:$0xff]  ;;  %v604_v22 = vld [vmem:[#allocation2 + $0x69] sm:$0xff]  ;;  %v6436_v26 = vpack.c.bf16 %v571_v20, %v570_v19  ;;  %524 = vst.msk [vmem:[#allocation2 + $0x91] sm:$0xff] %vm425_vm2, %v491_v29 }
  0x65   : > { %v555_v24 = vld [vmem:[#allocation2 + $0x68] sm:$0xff]  ;;  %v6438_v27 = vpack.c.bf16 %v604_v22, %v603_v21  ;;  %525 = vst.msk [vmem:[#allocation2 + $0x99] sm:$0xff] %vm425_vm2, %v492_v30  ;;  %v621_v33 = vld [vmem:[#allocation2 + $0x139] sm:$0xff] }
  0x66   : > { %v6440_v28 = vpack.c.bf16 %v555_v24, %v554_v23  ;;  %542 = vst.msk [vmem:[#allocation2 + $0x169] sm:$0xff] %vm425_vm2, %v509_v31  ;;  %v622_v34 = vld [vmem:[#allocation2 + $0x141] sm:$0xff]  ;;  %v572_v37 = vld [vmem:[#allocation2 + $0x138] sm:$0xff]  ;;  %v5493_v30 = vld [vmem:[%s8253_s1 + $0xa] sm:$0x3] }
  0x67   : > { %543 = vst.msk [vmem:[#allocation2 + $0x171] sm:$0xff] %vm425_vm2, %v510_v32  ;;  %v573_v38 = vld [vmem:[#allocation2 + $0x140] sm:$0xff]  ;;  %v556_v41 = vld [vmem:[#allocation2 + $0x78] sm:$0xff]  ;;  %v6458_v45 = vpack.c.bf16 %v622_v34, %v621_v33  ;;  %v5510_v31 = vld [vmem:[%s8253_s1 + $0xc] sm:$0x3]  ;;  %v1694_v33 = vand.u32 %v5493_v30, %v6206_v5 }
  0x68   : > { %v605_v39 = vld [vmem:[#allocation2 + $0x79] sm:$0xff]  ;;  %v606_v40 = vld [vmem:[#allocation2 + $0x81] sm:$0xff]  ;;  %v6460_v46 = vpack.c.bf16 %v573_v38, %v572_v37  ;;  %526 = vst.msk [vmem:[#allocation2 + $0xa9] sm:$0xff] %vm425_vm2, %v493_v49  ;;  %v5527_v32 = vld [vmem:[%s8253_s1 + $0xe] sm:$0x3]  ;;  %v1917_v34 = vand.u32 %v5510_v31, %v6206_v5 }
  0x69   : > { %5420 = vmatmul.msk.bf16.gmra.mxu2 %vm425_vm2, %v6386_v55  ;;  %v557_v44 = vld [vmem:[#allocation2 + $0x80] sm:$0xff]  ;;  %v6462_v47 = vpack.c.bf16 %v606_v40, %v605_v39  ;;  %527 = vst.msk [vmem:[#allocation2 + $0xb1] sm:$0xff] %vm425_vm2, %v494_v50  ;;  %v623_v51 = vld [vmem:[#allocation2 + $0x151] sm:$0xff]  ;;  %v2139_v37 = vand.u32 %v5527_v32, %v6206_v5  ;;  %1703 = vmatpush.bf16.msrb.mxu1 %v1694_v33 }
  0x6a   : > { %5436 = vmatmul.msk.bf16.gmra.mxu3 %vm425_vm2, %v6388_v56  ;;  %v6464_v48 = vpack.c.bf16 %v557_v44, %v556_v41  ;;  %v624_v52 = vld [vmem:[#allocation2 + $0x159] sm:$0xff]  ;;  %v574_v53 = vld [vmem:[#allocation2 + $0x150] sm:$0xff]  ;;  %528 = vst.msk [vmem:[#allocation2 + $0xc1] sm:$0xff] %vm425_vm2, %v495_v3  ;;  %1926 = vmatpush.bf16.msra.mxu2 %v1917_v34  ;;  %v929_v40 = vld [vmem:[#allocation2 + $0x2] sm:$0xff] }
  0x6b   : > { %5412 = vmatmul.msk.bf16.gmra.mxu0 %vm425_vm2, %v6390_v57  ;;  %v575_v54 = vld [vmem:[#allocation2 + $0x158] sm:$0xff]  ;;  %v558_v61 = vld [vmem:[#allocation2 + $0x90] sm:$0xff]  ;;  %v6478_v63 = vpack.c.bf16 %v624_v52, %v623_v51  ;;  %529 = vst.msk [vmem:[#allocation2 + $0xc9] sm:$0xff] %vm425_vm2, %v496_v4  ;;  %2148 = vmatpush.bf16.msra.mxu3 %v2139_v37 }
  0x6c   : > { %5428 = vmatmul.msk.bf16.gmra.mxu1 %vm425_vm2, %v6392_v58  ;;  %v607_v59 = vld [vmem:[#allocation2 + $0x91] sm:$0xff]  ;;  %v608_v60 = vld [vmem:[#allocation2 + $0x99] sm:$0xff]  ;;  %v6480_v0 = vpack.c.bf16 %v575_v54, %v574_v53 }
  0x6d   : > { %v559_v62 = vld [vmem:[#allocation2 + $0x98] sm:$0xff]  ;;  %v6482_v1 = vpack.c.bf16 %v608_v60, %v607_v59  ;;  %v625_v14 = vld [vmem:[#allocation2 + $0x169] sm:$0xff] }
  0x6e   : > { %v6484_v2 = vpack.c.bf16 %v559_v62, %v558_v61  ;;  %v626_v15 = vld [vmem:[#allocation2 + $0x171] sm:$0xff]  ;;  %v576_v16 = vld [vmem:[#allocation2 + $0x168] sm:$0xff]  ;;  %v931_v60 = vld [vmem:[#allocation2 + $0x1a] sm:$0xff] }
  0x6f   : > { %v577_v17 = vld [vmem:[#allocation2 + $0x170] sm:$0xff]  ;;  %v560_v20 = vld [vmem:[#allocation2 + $0xa8] sm:$0xff]  ;;  %v6500_v22 = vpack.c.bf16 %v626_v15, %v625_v14 }
  0x70   : > { %v609_v18 = vld [vmem:[#allocation2 + $0xa9] sm:$0xff]  ;;  %v610_v19 = vld [vmem:[#allocation2 + $0xb1] sm:$0xff]  ;;  %v6502_v23 = vpack.c.bf16 %v577_v17, %v576_v16 }
  0x71   : > { %v561_v21 = vld [vmem:[#allocation2 + $0xb0] sm:$0xff]  ;;  %v6504_v24 = vpack.c.bf16 %v610_v19, %v609_v18  ;;  %v611_v44 = vld [vmem:[#allocation2 + $0xc1] sm:$0xff] }
  0x72   : > { %v6506_v29 = vpack.c.bf16 %v561_v21, %v560_v20  ;;  %v5544_v38 = vld [vmem:[%s8253_s1 + $0x10] sm:$0x3]  ;;  %v562_v50 = vld [vmem:[#allocation2 + $0xc0] sm:$0xff]  ;;  %v563_v51 = vld [vmem:[#allocation2 + $0xc8] sm:$0xff]  ;;  %s5321_s1 = sshll.u32 %s414_s0, 4  ;;  %s5322_s1 = int_to_ptr.vmem [resolvable:$true] %s5321_s1 }
  0x73   : > { %v2361_v39 = vand.u32 %v5544_v38, %v6206_v5  ;;  %v930_v41 = vld [vmem:[#allocation2 + $0xa] sm:$0xff]  ;;  %v6534_v54 = vpack.c.bf16 %v563_v51, %v562_v50  ;;  %v932_v61 = vld [vmem:[#allocation2 + $0x22] sm:$0xff]  ;;  %v933_v18 = vld [vmem:[#allocation2 + $0x32] sm:$0xff] }
  0x74   : > { %v612_v49 = vld [vmem:[#allocation2 + $0xc9] sm:$0xff]  ;;  %v961_v52 = vpack.c.bf16 %v930_v41, %v929_v40  ;;  %v962_v62 = vpack.c.bf16 %v932_v61, %v931_v60  ;;  %v934_v19 = vld [vmem:[#allocation2 + $0x3a] sm:$0xff] }
  0x75   : > { %2370 = vmatpush.bf16.msra.mxu0 %v2361_v39  ;;  %v6532_v53 = vpack.c.bf16 %v612_v49, %v611_v44  ;;  %v6561_v30 = vpack.c.bf16 %v934_v19, %v933_v18  ;;  %v935_v41 = vld [vmem:[#allocation2 + $0x4a] sm:$0xff]  ;;  %v936_v44 = vld [vmem:[#allocation2 + $0x52] sm:$0xff] }
  0x76   : > { %v6579_v51 = vpack.c.bf16 %v936_v44, %v935_v41  ;;  %v939_v44 = vld [vmem:[#allocation2 + $0x7a] sm:$0xff] }
  0x79   : > { %5421 = vmatmul.msk.bf16.gmra.mxu2 %vm425_vm2, %v6410_v9 }
  0x7a   : > { %5437 = vmatmul.msk.bf16.gmra.mxu3 %vm425_vm2, %v6412_v10 }
  0x7b   : > { %5413 = vmatmul.msk.bf16.gmra.mxu0 %vm425_vm2, %v6414_v11 }
  0x7c   : > { %5429 = vmatmul.msk.bf16.gmra.mxu1 %vm425_vm2, %v6416_v12 }
  0x89   : > { %5422 = vmatmul.msk.bf16.gmra.mxu2 %vm425_vm2, %v6434_v25 }
  0x8a   : > { %5438 = vmatmul.msk.bf16.gmra.mxu3 %vm425_vm2, %v6436_v26 }
  0x8b   : > { %5414 = vmatmul.msk.bf16.gmra.mxu0 %vm425_vm2, %v6438_v27 }
  0x8c   : > { %5430 = vmatmul.msk.bf16.gmra.mxu1 %vm425_vm2, %v6440_v28 }
  0x99   : > { %5423 = vmatmul.msk.bf16.gmra.mxu2 %vm425_vm2, %v6458_v45 }
  0x9a   : > { %5439 = vmatmul.msk.bf16.gmra.mxu3 %vm425_vm2, %v6460_v46 }
  0x9b   : > { %5415 = vmatmul.msk.bf16.gmra.mxu0 %vm425_vm2, %v6462_v47 }
  0x9c   : > { %5431 = vmatmul.msk.bf16.gmra.mxu1 %vm425_vm2, %v6464_v48 }
  0xa1   : > { %v849_v8 = vpop.f32.mrf.mxu1 }
  0xa2   : > { %v709_v7 = vpop.f32.mrf.mxu0 }
  0xa3   : > { %v6493_v13 = vadd.f32 %v849_v8, %v709_v7 }
  0xa9   : > { %5424 = vmatmul.msk.bf16.gmra.mxu2 %vm425_vm2, %v6478_v63  ;;  %v6545_v59 = vpop.f32.mrf.mxu1 }
  0xaa   : > { %5440 = vmatmul.msk.bf16.gmra.mxu3 %vm425_vm2, %v6480_v0  ;;  %v6543_v5 = vpop.f32.mrf.mxu0 }
  0xab   : > { %5416 = vmatmul.msk.bf16.gmra.mxu0 %vm425_vm2, %v6482_v1  ;;  %v852_v6 = vadd.f32 %v6545_v59, %v6543_v5 }
  0xac   : > { %5432 = vmatmul.msk.bf16.gmra.mxu1 %vm425_vm2, %v6484_v2 }
  0xb9   : > { %5425 = vmatmul.msk.bf16.gmra.mxu2 %vm425_vm2, %v6500_v22 }
  0xba   : > { %5441 = vmatmul.msk.bf16.gmra.mxu3 %vm425_vm2, %v6502_v23 }
  0xbb   : > { %5417 = vmatmul.msk.bf16.gmra.mxu0 %vm425_vm2, %v6504_v24 }
  0xbc   : > { %5433 = vmatmul.msk.bf16.gmra.mxu1 %vm425_vm2, %v6506_v29 }
  0xc9   : > { %5443 = vmatmul.msk.bf16.vlgmr.msrb.gmra.mxu2 %vm425_vm2, %v961_v52 }
  0xca   : > { %5460 = vmatmul.msk.bf16.vlgmr.msrb.gmra.mxu3 %vm425_vm2, %v6373_v43 }
  0xcb   : > { %5418 = vmatmul.msk.bf16.gmra.mxu0 %vm425_vm2, %v6532_v53 }
  0xcc   : > { %5434 = vmatmul.msk.bf16.gmra.mxu1 %vm425_vm2, %v6534_v54 }
  0xd8   : > { %v714_v3 = vpop.f32.mrf.mxu0 }
  0xd9   : > { %v854_v4 = vpop.f32.mrf.mxu1  ;;  %5444 = vmatmul.msk.bf16.gmra.mxu2 %vm425_vm2, %v962_v62 }
  0xda   : > { %5461 = vmatmul.msk.bf16.gmra.mxu3 %vm425_vm2, %v6392_v58  ;;  %v6550_v43 = vadd.f32 %v854_v4, %v714_v3 }
  0xdb   : > { %5477 = vmatmul.msk.bf16.vlgmr.msrb.gmra.mxu0 %vm425_vm2, %v6371_v42 }
  0xdc   : > { %5494 = vmatmul.msk.bf16.vlgmr.msrb.gmra.mxu1 %vm425_vm2, %v962_v62  ;;  %v754_v7 = vpop.f32.mrf.mxu2 }
  0xdd   : > { %v894_v8 = vpop.f32.mrf.mxu3 }
  0xde   : > { %v6555_v14 = vadd.f32 %v894_v8, %v754_v7 }
  0xe0   : > { %v716_v15 = vpop.f32.mrf.mxu0 }
  0xe1   : > { %v856_v16 = vpop.f32.mrf.mxu1 }
  0xe2   : > { %v6557_v17 = vadd.f32 %v856_v16, %v716_v15  ;;  %v937_v15 = vld [vmem:[#allocation2 + $0x62] sm:$0xff]  ;;  %v938_v16 = vld [vmem:[#allocation2 + $0x6a] sm:$0xff] }
  0xe4   : > { %v756_v20 = vpop.f32.mrf.mxu2 }
  0xe5   : > { %v896_v21 = vpop.f32.mrf.mxu3 }
  0xe6   : > { %v6559_v58 = vadd.f32 %v896_v21, %v756_v20  ;;  %v6597_v20 = vpack.c.bf16 %v938_v16, %v937_v15 }
  0xe8   : > { %v719_v31 = vpop.f32.mrf.mxu0 }
  0xe9   : > { %v859_v42 = vpop.f32.mrf.mxu1  ;;  %5445 = vmatmul.msk.bf16.gmra.mxu2 %vm425_vm2, %v6561_v30 }
  0xea   : > { %5462 = vmatmul.msk.bf16.gmra.mxu3 %vm425_vm2, %v6416_v12  ;;  %v6567_v32 = vadd.f32 %v859_v42, %v719_v31 }
  0xeb   : > { %5478 = vmatmul.msk.bf16.gmra.mxu0 %vm425_vm2, %v6390_v57 }
  0xec   : > { %5495 = vmatmul.msk.bf16.gmra.mxu1 %vm425_vm2, %v6561_v30  ;;  %v759_v33 = vpop.f32.mrf.mxu2 }
  0xed   : > { %v899_v34 = vpop.f32.mrf.mxu3 }
  0xee   : > { %v6573_v37 = vadd.f32 %v899_v34, %v759_v33 }
  0xf0   : > { %v721_v38 = vpop.f32.mrf.mxu0 }
  0xf1   : > { %v861_v39 = vpop.f32.mrf.mxu1 }
  0xf2   : > { %v6575_v40 = vadd.f32 %v861_v39, %v721_v38 }
  0xf4   : > { %v761_v49 = vpop.f32.mrf.mxu2 }
  0xf5   : > { %v901_v12 = vpop.f32.mrf.mxu3 }
  0xf6   : > { %v6577_v50 = vadd.f32 %v901_v12, %v761_v49  ;;  %v940_v49 = vld [vmem:[#allocation2 + $0x82] sm:$0xff] }
  0xf8   : > { %v724_v57 = vpop.f32.mrf.mxu0 }
  0xf9   : > { %v864_v52 = vpop.f32.mrf.mxu1  ;;  %5446 = vmatmul.msk.bf16.gmra.mxu2 %vm425_vm2, %v6579_v51 }
  0xfa   : > { %5463 = vmatmul.msk.bf16.gmra.mxu3 %vm425_vm2, %v6440_v28  ;;  %v6585_v60 = vadd.f32 %v864_v52, %v724_v57  ;;  %v6615_v52 = vpack.c.bf16 %v940_v49, %v939_v44 }
  0xfb   : > { %5479 = vmatmul.msk.bf16.gmra.mxu0 %vm425_vm2, %v6414_v11 }
  0xfc   : > { %5496 = vmatmul.msk.bf16.gmra.mxu1 %vm425_vm2, %v6579_v51  ;;  %v764_v61 = vpop.f32.mrf.mxu2 }
  0xfd   : > { %v904_v62 = vpop.f32.mrf.mxu3 }
  0xfe   : > { %v6591_v3 = vadd.f32 %v904_v62, %v764_v61 }
 0x100   : > { %v726_v4 = vpop.f32.mrf.mxu0 }
 0x101   : > { %v866_v7 = vpop.f32.mrf.mxu1 }
 0x102   : > { %v6593_v8 = vadd.f32 %v866_v7, %v726_v4 }
 0x104   : > { %v766_v18 = vpop.f32.mrf.mxu2 }
 0x105   : > { %v906_v28 = vpop.f32.mrf.mxu3 }
 0x106   : > { %v6595_v19 = vadd.f32 %v906_v28, %v766_v18 }
 0x108   : > { %v729_v11 = vpop.f32.mrf.mxu0 }
 0x109   : > { %v869_v21 = vpop.f32.mrf.mxu1  ;;  %5447 = vmatmul.msk.bf16.gmra.mxu2 %vm425_vm2, %v6597_v20 }
 0x10a   : > { %5464 = vmatmul.msk.bf16.gmra.mxu3 %vm425_vm2, %v6464_v48  ;;  %v6603_v31 = vadd.f32 %v869_v21, %v729_v11  ;;  %v941_v11 = vld [vmem:[#allocation2 + $0x92] sm:$0xff]  ;;  %v942_v21 = vld [vmem:[#allocation2 + $0x9a] sm:$0xff] }
 0x10b   : > { %5480 = vmatmul.msk.bf16.gmra.mxu0 %vm425_vm2, %v6438_v27 }
 0x10c   : > { %5497 = vmatmul.msk.bf16.gmra.mxu1 %vm425_vm2, %v6597_v20  ;;  %v769_v42 = vpop.f32.mrf.mxu2 }
 0x10d   : > { %v909_v33 = vpop.f32.mrf.mxu3 }
 0x10e   : > { %v6609_v34 = vadd.f32 %v909_v33, %v769_v42 }
 0x110   : > { %v731_v38 = vpop.f32.mrf.mxu0 }
 0x111   : > { %v871_v39 = vpop.f32.mrf.mxu1 }
 0x112   : > { %v6611_v41 = vadd.f32 %v871_v39, %v731_v38  ;;  %v6633_v38 = vpack.c.bf16 %v942_v21, %v941_v11 }
 0x114   : > { %v771_v12 = vpop.f32.mrf.mxu2 }
 0x115   : > { %v911_v48 = vpop.f32.mrf.mxu3 }
 0x116   : > { %v6613_v57 = vadd.f32 %v911_v48, %v771_v12 }
 0x118   : > { %v734_v27 = vpop.f32.mrf.mxu0 }
 0x119   : > { %v874_v61 = vpop.f32.mrf.mxu1  ;;  %5448 = vmatmul.msk.bf16.gmra.mxu2 %vm425_vm2, %v6615_v52 }
 0x11a   : > { %5465 = vmatmul.msk.bf16.gmra.mxu3 %vm425_vm2, %v6484_v2  ;;  %v6621_v62 = vadd.f32 %v874_v61, %v734_v27 }
 0x11b   : > { %5481 = vmatmul.msk.bf16.gmra.mxu0 %vm425_vm2, %v6462_v47 }
 0x11c   : > { %5498 = vmatmul.msk.bf16.gmra.mxu1 %vm425_vm2, %v6615_v52  ;;  %v774_v4 = vpop.f32.mrf.mxu2 }
 0x11d   : > { %v914_v7 = vpop.f32.mrf.mxu3 }
 0x11e   : > { %v6627_v15 = vadd.f32 %v914_v7, %v774_v4  ;;  %v943_v7 = vld [vmem:[#allocation2 + $0xaa] sm:$0xff] }
 0x120   : > { %v736_v16 = vpop.f32.mrf.mxu0 }
 0x121   : > { %v876_v18 = vpop.f32.mrf.mxu1 }
 0x122   : > { %v6629_v28 = vadd.f32 %v876_v18, %v736_v16  ;;  %v944_v16 = vld [vmem:[#allocation2 + $0xb2] sm:$0xff] }
 0x123   : > { %v6651_v21 = vpack.c.bf16 %v944_v16, %v943_v7  ;;  %v945_v7 = vld [vmem:[#allocation2 + $0xc2] sm:$0xff]  ;;  %v946_v16 = vld [vmem:[#allocation2 + $0xca] sm:$0xff] }
 0x124   : > { %v776_v42 = vpop.f32.mrf.mxu2 }
 0x125   : > { %v916_v2 = vpop.f32.mrf.mxu3 }
 0x126   : > { %v6631_v33 = vadd.f32 %v916_v2, %v776_v42 }
 0x128   : > { %v739_v47 = vpop.f32.mrf.mxu0 }
 0x129   : > { %v879_v39 = vpop.f32.mrf.mxu1  ;;  %5449 = vmatmul.msk.bf16.gmra.mxu2 %vm425_vm2, %v6633_v38 }
 0x12a   : > { %5466 = vmatmul.msk.bf16.gmra.mxu3 %vm425_vm2, %v6506_v29  ;;  %v6639_v44 = vadd.f32 %v879_v39, %v739_v47 }
 0x12b   : > { %5482 = vmatmul.msk.bf16.gmra.mxu0 %vm425_vm2, %v6482_v1 }
 0x12c   : > { %5499 = vmatmul.msk.bf16.gmra.mxu1 %vm425_vm2, %v6633_v38  ;;  %v779_v49 = vpop.f32.mrf.mxu2 }
 0x12d   : > { %v919_v12 = vpop.f32.mrf.mxu3 }
 0x12e   : > { %v6645_v48 = vadd.f32 %v919_v12, %v779_v49 }
 0x130   : > { %8255 = vst [vmem:[#allocation8_spill] sm:$0xff] %v6645_v48  ;;  %v741_v27 = vpop.f32.mrf.mxu0 }
 0x131   : > { %v881_v61 = vpop.f32.mrf.mxu1 }
 0x132   : > { %v6647_v4 = vadd.f32 %v881_v61, %v741_v27 }
 0x134   : > { %v781_v18 = vpop.f32.mrf.mxu2 }
 0x135   : > { %v921_v29 = vpop.f32.mrf.mxu3 }
 0x136   : > { %v6649_v11 = vadd.f32 %v921_v29, %v781_v18 }
 0x138   : > { %8256 = vst [vmem:[#allocation9_spill] sm:$0xff] %v6649_v11  ;;  %v744_v1 = vpop.f32.mrf.mxu0 }
 0x139   : > { %v884_v42 = vpop.f32.mrf.mxu1  ;;  %5450 = vmatmul.msk.bf16.gmra.mxu2 %vm425_vm2, %v6651_v21 }
 0x13a   : > { %5467 = vmatmul.msk.bf16.gmra.mxu3 %vm425_vm2, %v6534_v54  ;;  %v6657_v2 = vadd.f32 %v884_v42, %v744_v1  ;;  %v6669_v1 = vpack.c.bf16 %v946_v16, %v945_v7 }
 0x13b   : > { %5483 = vmatmul.msk.bf16.gmra.mxu0 %vm425_vm2, %v6504_v24 }
 0x13c   : > { %5500 = vmatmul.msk.bf16.gmra.mxu1 %vm425_vm2, %v6651_v21  ;;  %v784_v47 = vpop.f32.mrf.mxu2  ;;  %8259 = vst [vmem:[#allocation12_spill] sm:$0xff] %v6669_v1 }
 0x13d   : > { %v924_v39 = vpop.f32.mrf.mxu3 }
 0x13e   : > { %v6663_v49 = vadd.f32 %v924_v39, %v784_v47  ;;  %v5926_v39 = vld [vmem:[%s8228_s3 + $0x38] sm:$0xff] }
 0x13f   : > { %2830 = vmatpush.bf16.msra.mxu1 %v5926_v39 }
 0x140   : > { %8257 = vst [vmem:[#allocation10_spill] sm:$0xff] %v6663_v49  ;;  %v746_v12 = vpop.f32.mrf.mxu0 }
 0x141   : > { %v886_v27 = vpop.f32.mrf.mxu1 }
 0x142   : > { %v6665_v61 = vadd.f32 %v886_v27, %v746_v12 }
 0x144   : > { %v786_v18 = vpop.f32.mrf.mxu2 }
 0x145   : > { %v926_v54 = vpop.f32.mrf.mxu3 }
 0x146   : > { %v6667_v29 = vadd.f32 %v926_v54, %v786_v18 }
 0x148   : > { %8258 = vst [vmem:[#allocation11_spill] sm:$0xff] %v6667_v29  ;;  %v749_v24 = vpop.f32.mrf.mxu0 }
 0x149   : > { %v889_v42 = vpop.f32.mrf.mxu1  ;;  %5451 = vmatmul.msk.bf16.gmra.mxu2 %vm425_vm2, %v6669_v1 }
 0x14a   : > { %5468 = vmatmul.msk.bf16.gmra.mxu3 %vm425_vm2, %v6363_v36  ;;  %v6675_v47 = vadd.f32 %v889_v42, %v749_v24  ;;  %v947_v24 = vld [vmem:[#allocation2 + $0xda] sm:$0xff]  ;;  %v948_v42 = vld [vmem:[#allocation2 + $0xe2] sm:$0xff] }
 0x14b   : > { %5484 = vmatmul.msk.bf16.gmra.mxu0 %vm425_vm2, %v6532_v53  ;;  %v6689_v11 = vpack.c.bf16 %v948_v42, %v947_v24 }
 0x14c   : > { %5501 = vmatmul.msk.bf16.gmra.mxu1 %vm425_vm2, %v6669_v1  ;;  %v1039_v12 = vpop.f32.mrf.mxu2 }
 0x14d   : > { %v1261_v27 = vpop.f32.mrf.mxu3  ;;  %v1119_v7 = vadd.f32 %v1039_v12, %v6493_v13 }
 0x14f   : > { %v1341_v16 = vadd.f32 %v1261_v27, %v1119_v7 }
 0x150   : > { %v751_v18 = vpop.f32.mrf.mxu0 }
 0x151   : > { %v891_v36 = vpop.f32.mrf.mxu1 }
 0x152   : > { %v6685_v54 = vadd.f32 %v891_v36, %v751_v18  ;;  %v949_v18 = vld [vmem:[#allocation2 + $0xf2] sm:$0xff]  ;;  %v950_v36 = vld [vmem:[#allocation2 + $0xfa] sm:$0xff] }
 0x154   : > { %v1041_v29 = vpop.f32.mrf.mxu2 }
 0x155   : > { %v1263_v53 = vpop.f32.mrf.mxu3  ;;  %v1120_v49 = vadd.f32 %v1041_v29, %v852_v6 }
 0x157   : > { %v1342_v1 = vadd.f32 %v1263_v53, %v1120_v49 }
 0x158   : > { %v1483_v48 = vpop.f32.mrf.mxu0 }
 0x159   : > { %v1705_v39 = vpop.f32.mrf.mxu1  ;;  %5452 = vmatmul.msk.bf16.gmra.mxu2 %vm425_vm2, %v6689_v11  ;;  %v1563_v13 = vadd.f32 %v1483_v48, %v1341_v16 }
 0x15a   : > { %5469 = vmatmul.msk.bf16.gmra.mxu3 %vm425_vm2, %v6388_v56 }
 0x15b   : > { %v6695_v12 = vadd.f32 %v1705_v39, %v1563_v13  ;;  %5485 = vmatmul.msk.bf16.gmra.mxu0 %vm425_vm2, %v6361_v35  ;;  %v971_v35 = vpack.c.bf16 %v950_v36, %v949_v18  ;;  %v952_v18 = vld [vmem:[#allocation2 + $0x112] sm:$0xff] }
 0x15c   : > { %5502 = vmatmul.msk.bf16.gmra.mxu1 %vm425_vm2, %v6689_v11  ;;  %v1044_v6 = vpop.f32.mrf.mxu2 }
 0x15d   : > { %v1266_v5 = vpop.f32.mrf.mxu3  ;;  %v1121_v59 = vadd.f32 %v1044_v6, %v6550_v43 }
 0x15f   : > { %v1343_v49 = vadd.f32 %v1266_v5, %v1121_v59 }
 0x160   : > { %v1485_v29 = vpop.f32.mrf.mxu0 }
 0x161   : > { %v1707_v27 = vpop.f32.mrf.mxu1  ;;  %v1564_v7 = vadd.f32 %v1485_v29, %v1342_v1 }
 0x163   : > { %v6702_v56 = vadd.f32 %v1707_v27, %v1564_v7  ;;  %v951_v7 = vld [vmem:[#allocation2 + $0x10a] sm:$0xff] }
 0x164   : > { %v1046_v48 = vpop.f32.mrf.mxu2 }
 0x165   : > { %v1268_v16 = vpop.f32.mrf.mxu3  ;;  %v1122_v24 = vadd.f32 %v1046_v48, %v6557_v17 }
 0x167   : > { %v1344_v42 = vadd.f32 %v1268_v16, %v1122_v24  ;;  %v972_v16 = vpack.c.bf16 %v952_v18, %v951_v7 }
 0x168   : > { %v1488_v53 = vpop.f32.mrf.mxu0 }
 0x169   : > { %v1710_v39 = vpop.f32.mrf.mxu1  ;;  %5453 = vmatmul.msk.bf16.gmra.mxu2 %vm425_vm2, %v971_v35  ;;  %v1565_v43 = vadd.f32 %v1488_v53, %v1343_v49 }
 0x16a   : > { %5470 = vmatmul.msk.bf16.gmra.mxu3 %vm425_vm2, %v6412_v10 }
 0x16b   : > { %v6708_v13 = vadd.f32 %v1710_v39, %v1565_v43  ;;  %5486 = vmatmul.msk.bf16.gmra.mxu0 %vm425_vm2, %v6386_v55 }
 0x16c   : > { %5503 = vmatmul.msk.bf16.gmra.mxu1 %vm425_vm2, %v971_v35  ;;  %v1049_v1 = vpop.f32.mrf.mxu2 }
 0x16d   : > { %v1271_v6 = vpop.f32.mrf.mxu3  ;;  %v1123_v17 = vadd.f32 %v1049_v1, %v6567_v32 }
 0x16f   : > { %v1345_v5 = vadd.f32 %v1271_v6, %v1123_v17 }
 0x170   : > { %v1490_v59 = vpop.f32.mrf.mxu0 }
 0x171   : > { %v1712_v29 = vpop.f32.mrf.mxu1  ;;  %v1566_v27 = vadd.f32 %v1490_v59, %v1344_v42  ;;  %v953_v59 = vld [vmem:[#allocation2 + $0x122] sm:$0xff] }
 0x173   : > { %v6714_v36 = vadd.f32 %v1712_v29, %v1566_v27  ;;  %v954_v29 = vld [vmem:[#allocation2 + $0x12a] sm:$0xff] }
 0x174   : > { %v1051_v10 = vpop.f32.mrf.mxu2 }
 0x175   : > { %v1273_v49 = vpop.f32.mrf.mxu3  ;;  %v1124_v48 = vadd.f32 %v1051_v10, %v6575_v40 }
 0x177   : > { %v1346_v55 = vadd.f32 %v1273_v49, %v1124_v48  ;;  %v5925_v48 = vld [vmem:[%s8228_s3 + $0x30] sm:$0xff] }
 0x178   : > { %v1493_v24 = vpop.f32.mrf.mxu0  ;;  %2831 = vmatpush.bf16.msra.mxu1 %v5925_v48 }
 0x179   : > { %v1715_v35 = vpop.f32.mrf.mxu1  ;;  %5454 = vmatmul.msk.bf16.gmra.mxu2 %vm425_vm2, %v972_v16  ;;  %v1567_v32 = vadd.f32 %v1493_v24, %v1345_v5 }
 0x17a   : > { %5471 = vmatmul.msk.bf16.gmra.mxu3 %vm425_vm2, %v6436_v26 }
 0x17b   : > { %v6720_v53 = vadd.f32 %v1715_v35, %v1567_v32  ;;  %5487 = vmatmul.msk.bf16.gmra.mxu0 %vm425_vm2, %v6410_v9  ;;  %v973_v9 = vpack.c.bf16 %v954_v29, %v953_v59  ;;  %v511_v35 = vld [vmem:[%s6322_s16 + $0xf0] sm:$0xff]  ;;  %v512_v32 = vld [vmem:[%s6322_s16 + $0xf8] sm:$0xff]  ;;  %s5319_s16 = scalar_lea.hbm %s8237_s12, %s6172_s6 }
 0x17c   : > { %5504 = vmatmul.msk.bf16.gmra.mxu1 %vm425_vm2, %v972_v16  ;;  %v1054_v42 = vpop.f32.mrf.mxu2  ;;  %544 = vst.msk [vmem:[#allocation2 + $0x181] sm:$0xff] %vm425_vm2, %v511_v35  ;;  %s5323_s20 = sshll.u32 %s5319_s16, 4  ;;  %s5324_s20 = int_to_ptr.hbm [resolvable:$true] %s5323_s20 }
 0x17d   : > { %v1276_v39 = vpop.f32.mrf.mxu3  ;;  %v1125_v40 = vadd.f32 %v1054_v42, %v6585_v60  ;;  %545 = vst.msk [vmem:[#allocation2 + $0x189] sm:$0xff] %vm425_vm2, %v512_v32  ;;  %s6029_s21 = sshra.s32 %s5324_s20, 4  ;;  %s6030_s21 = int_to_ptr.hbm [resolvable:$true] %s6029_s21 }
 0x17e   : > { %p6036_p0 = scmp.lt.s32.totalorder %s6030_s21, %s8237_s12 }
 0x17f   : > { %v1347_v43 = vadd.f32 %v1276_v39, %v1125_v40 }
 0x180   : > { %v1495_v1 = vpop.f32.mrf.mxu0 }
 0x181   : > { %v1717_v6 = vpop.f32.mrf.mxu1  ;;  %v1568_v17 = vadd.f32 %v1495_v1, %v1346_v55  ;;  %v956_v1 = vld [vmem:[#allocation2 + $0x142] sm:$0xff] }
 0x183   : > { %v6726_v27 = vadd.f32 %v1717_v6, %v1568_v17 }
 0x184   : > { %v1056_v26 = vpop.f32.mrf.mxu2 }
 0x185   : > { %v1278_v5 = vpop.f32.mrf.mxu3  ;;  %v1126_v7 = vadd.f32 %v1056_v26, %v6593_v8 }
 0x187   : > { %v1348_v18 = vadd.f32 %v1278_v5, %v1126_v7 }
 0x188   : > { %v1498_v10 = vpop.f32.mrf.mxu0 }
 0x189   : > { %v1720_v49 = vpop.f32.mrf.mxu1  ;;  %5455 = vmatmul.msk.bf16.gmra.mxu2 %vm425_vm2, %v973_v9  ;;  %v1569_v60 = vadd.f32 %v1498_v10, %v1347_v43  ;;  %v955_v43 = vld [vmem:[#allocation2 + $0x13a] sm:$0xff] }
 0x18a   : > { %5472 = vmatmul.msk.bf16.gmra.mxu3 %vm425_vm2, %v6460_v46  ;;  %v974_v29 = vpack.c.bf16 %v956_v1, %v955_v43 }
 0x18b   : > { %v6735_v16 = vadd.f32 %v1720_v49, %v1569_v60  ;;  %5488 = vmatmul.msk.bf16.gmra.mxu0 %vm425_vm2, %v6434_v25 }
 0x18c   : > { %5505 = vmatmul.msk.bf16.gmra.mxu1 %vm425_vm2, %v973_v9  ;;  %v1059_v8 = vpop.f32.mrf.mxu2 }
 0x18d   : > { %v1281_v55 = vpop.f32.mrf.mxu3  ;;  %v1127_v24 = vadd.f32 %v1059_v8, %v6603_v31 }
 0x18f   : > { %v1349_v46 = vadd.f32 %v1281_v55, %v1127_v24  ;;  %v957_v55 = vld [vmem:[#allocation2 + $0x152] sm:$0xff] }
 0x190   : > { %v1500_v42 = vpop.f32.mrf.mxu0 }
 0x191   : > { %v1722_v39 = vpop.f32.mrf.mxu1  ;;  %v1570_v40 = vadd.f32 %v1500_v42, %v1348_v18 }
 0x193   : > { %v6745_v25 = vadd.f32 %v1722_v39, %v1570_v40 }
 0x194   : > { %v1061_v6 = vpop.f32.mrf.mxu2 }
 0x195   : > { %v1283_v17 = vpop.f32.mrf.mxu3  ;;  %v1128_v59 = vadd.f32 %v1061_v6, %v6611_v41 }
 0x197   : > { %v1350_v31 = vadd.f32 %v1283_v17, %v1128_v59 }
 0x198   : > { %v1503_v26 = vpop.f32.mrf.mxu0 }
 0x199   : > { %v1725_v5 = vpop.f32.mrf.mxu1  ;;  %5456 = vmatmul.msk.bf16.gmra.mxu2 %vm425_vm2, %v974_v29  ;;  %v1571_v7 = vadd.f32 %v1503_v26, %v1349_v46  ;;  %v1181_v26 = vld [vmem:[#allocation2 + $0x180] sm:$0xff] }
 0x19a   : > { %5473 = vmatmul.msk.bf16.gmra.mxu3 %vm425_vm2, %v6480_v0  ;;  %v958_v0 = vld [vmem:[#allocation2 + $0x15a] sm:$0xff] }
 0x19b   : > { %v6751_v9 = vadd.f32 %v1725_v5, %v1571_v7  ;;  %5489 = vmatmul.msk.bf16.gmra.mxu0 %vm425_vm2, %v6458_v45  ;;  %v975_v46 = vpack.c.bf16 %v958_v0, %v957_v55  ;;  %v1182_v5 = vld [vmem:[#allocation2 + $0x188] sm:$0xff] }
 0x19c   : > { %5506 = vmatmul.msk.bf16.gmra.mxu1 %vm425_vm2, %v974_v29  ;;  %v1064_v18 = vpop.f32.mrf.mxu2 }
 0x19d   : > { %v1286_v10 = vpop.f32.mrf.mxu3  ;;  %v1129_v41 = vadd.f32 %v1064_v18, %v6621_v62 }
 0x19f   : > { %v1351_v49 = vadd.f32 %v1286_v10, %v1129_v41  ;;  %v1198_v41 = vpack.c.bf16 %v1182_v5, %v1181_v26 }
 0x1a0   : > { %v1505_v60 = vpop.f32.mrf.mxu0 }
 0x1a1   : > { %v6757_v48 = vpop.f32.mrf.mxu1  ;;  %v6759_v8 = vadd.f32 %v1505_v60, %v1350_v31  ;;  %v959_v31 = vld [vmem:[#allocation2 + $0x16a] sm:$0xff] }
 0x1a4   : > { %v1066_v24 = vpop.f32.mrf.mxu2 }
 0x1a5   : > { %v1288_v35 = vpop.f32.mrf.mxu3  ;;  %v1130_v32 = vadd.f32 %v1066_v24, %v6629_v28 }
 0x1a7   : > { %v1352_v45 = vadd.f32 %v1288_v35, %v1130_v32 }
 0x1a8   : > { %v1508_v42 = vpop.f32.mrf.mxu0 }
 0x1a9   : > { %v1730_v39 = vpop.f32.mrf.mxu1  ;;  %5457 = vmatmul.msk.bf16.gmra.mxu2 %vm425_vm2, %v975_v46  ;;  %v1573_v62 = vadd.f32 %v1508_v42, %v1351_v49 }
 0x1aa   : > { %5474 = vmatmul.msk.bf16.gmra.mxu3 %vm425_vm2, %v6502_v23  ;;  %v960_v23 = vld [vmem:[#allocation2 + $0x172] sm:$0xff] }
 0x1ab   : > { %v6765_v40 = vadd.f32 %v1730_v39, %v1573_v62  ;;  %5490 = vmatmul.msk.bf16.gmra.mxu0 %vm425_vm2, %v6478_v63  ;;  %v976_v10 = vpack.c.bf16 %v960_v23, %v959_v31  ;;  %v1818_v39 = vld [vmem:[#allocation2 + $0x30] sm:$0xff]  ;;  %v1819_v62 = vld [vmem:[#allocation2 + $0x38] sm:$0xff]  ;;  %v1625_v31 = vld [vmem:[#allocation2 + $0x182] sm:$0xff] }
 0x1ac   : > { %5507 = vmatmul.msk.bf16.gmra.mxu1 %vm425_vm2, %v975_v46  ;;  %v1069_v43 = vpop.f32.mrf.mxu2  ;;  %v1626_v23 = vld [vmem:[#allocation2 + $0x18a] sm:$0xff]  ;;  %v1850_v5 = vpack.c.bf16 %v1819_v62, %v1818_v39 }
 0x1ad   : > { %v1291_v1 = vpop.f32.mrf.mxu3  ;;  %v1131_v28 = vadd.f32 %v1069_v43, %v6639_v44  ;;  %v2040_v43 = vld [vmem:[#allocation2 + $0x31] sm:$0xff]  ;;  %v1820_v39 = vld [vmem:[#allocation2 + $0x48] sm:$0xff] }
 0x1ae   : > { %v1821_v62 = vld [vmem:[#allocation2 + $0x50] sm:$0xff] }
 0x1af   : > { %v1353_v6 = vadd.f32 %v1291_v1, %v1131_v28  ;;  %v2041_v1 = vld [vmem:[#allocation2 + $0x39] sm:$0xff]  ;;  %v1403_v28 = vld [vmem:[#allocation2 + $0x181] sm:$0xff] }
 0x1b0   : > { %v1510_v17 = vpop.f32.mrf.mxu0 }
 0x1b1   : > { %v6771_v59 = vpop.f32.mrf.mxu1  ;;  %v6773_v29 = vadd.f32 %v1510_v17, %v1352_v45 }
 0x1b4   : > { %v1071_v7 = vpop.f32.mrf.mxu2 }
 0x1b5   : > { %v1293_v18 = vpop.f32.mrf.mxu3  ;;  %v1132_v63 = vadd.f32 %v1071_v7, %v6647_v4 }
 0x1b7   : > { %v1354_v49 = vadd.f32 %v1293_v18, %v1132_v63  ;;  %v1642_v63 = vpack.c.bf16 %v1626_v23, %v1625_v31 }
 0x1b8   : > { %v1513_v60 = vpop.f32.mrf.mxu0 }
 0x1b9   : > { %v1735_v55 = vpop.f32.mrf.mxu1  ;;  %5458 = vmatmul.msk.bf16.gmra.mxu2 %vm425_vm2, %v976_v10  ;;  %v1575_v44 = vadd.f32 %v1513_v60, %v1353_v6  ;;  %v5924_v60 = vld [vmem:[%s8228_s3 + $0x28] sm:$0xff] }
 0x1ba   : > { %5475 = vmatmul.msk.bf16.gmra.mxu3 %vm425_vm2, %v1198_v41  ;;  %2832 = vmatpush.bf16.msra.mxu1 %v5924_v60 }
 0x1bb   : > { %v6778_v0 = vadd.f32 %v1735_v55, %v1575_v44  ;;  %5491 = vmatmul.msk.bf16.gmra.mxu0 %vm425_vm2, %v6500_v22  ;;  %v1404_v22 = vld [vmem:[#allocation2 + $0x189] sm:$0xff] }
 0x1bc   : > { %5508 = vmatmul.msk.bf16.gmra.mxu1 %vm425_vm2, %v976_v10  ;;  %v1074_v24 = vpop.f32.mrf.mxu2  ;;  %v6789_v18 = vpack.c.bf16 %v1404_v22, %v1403_v28  ;;  %v1851_v22 = vpack.c.bf16 %v1821_v62, %v1820_v39 }
 0x1bd   : > { %v1296_v35 = vpop.f32.mrf.mxu3  ;;  %v1133_v4 = vadd.f32 %v1074_v24, %v6657_v2  ;;  %v2072_v2 = vpack.c.bf16 %v2041_v1, %v2040_v43  ;;  %v2042_v43 = vld [vmem:[#allocation2 + $0x49] sm:$0xff]  ;;  %v2043_v1 = vld [vmem:[#allocation2 + $0x51] sm:$0xff] }
 0x1be   : > { %v2073_v31 = vpack.c.bf16 %v2043_v1, %v2042_v43 }
 0x1bf   : > { %v1355_v32 = vadd.f32 %v1296_v35, %v1133_v4 }
 0x1c0   : > { %v1515_v46 = vpop.f32.mrf.mxu0 }
 0x1c1   : > { %v6784_v45 = vpop.f32.mrf.mxu1  ;;  %v6786_v42 = vadd.f32 %v1515_v46, %v1354_v49 }
 0x1c4   : > { %v1076_v6 = vpop.f32.mrf.mxu2 }
 0x1c5   : > { %v1298_v17 = vpop.f32.mrf.mxu3  ;;  %v1134_v26 = vadd.f32 %v1076_v6, %v6665_v61 }
 0x1c7   : > { %v1356_v7 = vadd.f32 %v1298_v17, %v1134_v26 }
 0x1c8   : > { %v1518_v10 = vpop.f32.mrf.mxu0 }
 0x1c9   : > { %v1740_v41 = vpop.f32.mrf.mxu1  ;;  %5511 = vmatmul.msk.bf16.vlgmr.msra.gmra.mxu2 %vm425_vm2, %v1850_v5  ;;  %v1577_v49 = vadd.f32 %v1518_v10, %v1355_v32 }
 0x1ca   : > { %5528 = vmatmul.msk.bf16.vlgmr.msra.gmra.mxu3 %vm425_vm2, %v2072_v2 }
 0x1cb   : > { %v6796_v55 = vadd.f32 %v1740_v41, %v1577_v49  ;;  %5492 = vmatmul.msk.bf16.gmra.mxu0 %vm425_vm2, %v6789_v18 }
 0x1cc   : > { %5509 = vmatmul.msk.bf16.gmra.mxu1 %vm425_vm2, %v1642_v63  ;;  %v1079_v61 = vpop.f32.mrf.mxu2 }
 0x1cd   : > { %v1301_v44 = vpop.f32.mrf.mxu3  ;;  %v1135_v24 = vadd.f32 %v1079_v61, %v6675_v47  ;;  %v1822_v61 = vld [vmem:[#allocation2 + $0x60] sm:$0xff] }
 0x1cf   : > { %v1357_v35 = vadd.f32 %v1301_v44, %v1135_v24  ;;  %v1823_v44 = vld [vmem:[#allocation2 + $0x68] sm:$0xff] }
 0x1d0   : > { %v1520_v4 = vpop.f32.mrf.mxu0  ;;  %v2044_v24 = vld [vmem:[#allocation2 + $0x61] sm:$0xff]  ;;  %v1852_v43 = vpack.c.bf16 %v1823_v44, %v1822_v61 }
 0x1d1   : > { %v6802_v46 = vpop.f32.mrf.mxu1  ;;  %v6804_v32 = vadd.f32 %v1520_v4, %v1356_v7  ;;  %v2045_v4 = vld [vmem:[#allocation2 + $0x69] sm:$0xff] }
 0x1d4   : > { %v1081_v28 = vpop.f32.mrf.mxu2 }
 0x1d5   : > { %v1303_v6 = vpop.f32.mrf.mxu3  ;;  %v1136_v17 = vadd.f32 %v1081_v28, %v6685_v54 }
 0x1d7   : > { %v1358_v23 = vadd.f32 %v1303_v6, %v1136_v17 }
 0x1d8   : > { %v1523_v26 = vpop.f32.mrf.mxu0 }
 0x1d9   : > { %v1745_v5 = vpop.f32.mrf.mxu1  ;;  %5512 = vmatmul.msk.bf16.gmra.mxu2 %vm425_vm2, %v1851_v22  ;;  %v1579_v47 = vadd.f32 %v1523_v26, %v1357_v35 }
 0x1da   : > { %5529 = vmatmul.msk.bf16.gmra.mxu3 %vm425_vm2, %v2073_v31 }
 0x1db   : > { %v6809_v2 = vadd.f32 %v1745_v5, %v1579_v47  ;;  %5545 = vmatmul.msk.bf16.vlgmr.msra.gmra.mxu0 %vm425_vm2, %v6561_v30  ;;  %v2074_v30 = vpack.c.bf16 %v2045_v4, %v2044_v24 }
 0x1dc   : > { %v1084_v7 = vpop.f32.mrf.mxu2 }
 0x1dd   : > { %v1306_v63 = vpop.f32.mrf.mxu3  ;;  %v1137_v10 = vadd.f32 %v1084_v7, %v6555_v14  ;;  %v1824_v7 = vld [vmem:[#allocation2 + $0x78] sm:$0xff] }
 0x1df   : > { %v1359_v54 = vadd.f32 %v1306_v63, %v1137_v10  ;;  %v1825_v63 = vld [vmem:[#allocation2 + $0x80] sm:$0xff] }
 0x1e0   : > { %v1525_v41 = vpop.f32.mrf.mxu0  ;;  %v2046_v10 = vld [vmem:[#allocation2 + $0x79] sm:$0xff]  ;;  %v1853_v24 = vpack.c.bf16 %v1825_v63, %v1824_v7 }
 0x1e1   : > { %v6814_v49 = vpop.f32.mrf.mxu1  ;;  %v6816_v60 = vadd.f32 %v1525_v41, %v1358_v23  ;;  %v2047_v41 = vld [vmem:[#allocation2 + $0x81] sm:$0xff] }
 0x1e4   : > { %v1086_v35 = vpop.f32.mrf.mxu2 }
 0x1e5   : > { %v1308_v39 = vpop.f32.mrf.mxu3  ;;  %v1138_v62 = vadd.f32 %v1086_v35, %v6559_v58 }
 0x1e7   : > { %v1360_v1 = vadd.f32 %v1308_v39, %v1138_v62 }
 0x1e8   : > { %v1528_v28 = vpop.f32.mrf.mxu0 }
 0x1e9   : > { %v1750_v6 = vpop.f32.mrf.mxu1  ;;  %5513 = vmatmul.msk.bf16.gmra.mxu2 %vm425_vm2, %v1852_v43  ;;  %v1581_v14 = vadd.f32 %v1528_v28, %v1359_v54 }
 0x1ea   : > { %5530 = vmatmul.msk.bf16.gmra.mxu3 %vm425_vm2, %v2074_v30 }
 0x1eb   : > { %v6821_v17 = vadd.f32 %v1750_v6, %v1581_v14  ;;  %5546 = vmatmul.msk.bf16.gmra.mxu0 %vm425_vm2, %v6579_v51  ;;  %v2075_v51 = vpack.c.bf16 %v2047_v41, %v2046_v10 }
 0x1ec   : > { %v1089_v22 = vpop.f32.mrf.mxu2 }
 0x1ed   : > { %v1311_v31 = vpop.f32.mrf.mxu3  ;;  %v1139_v23 = vadd.f32 %v1089_v22, %v6573_v37  ;;  %v1826_v22 = vld [vmem:[#allocation2 + $0x90] sm:$0xff] }
 0x1ef   : > { %v1361_v58 = vadd.f32 %v1311_v31, %v1139_v23  ;;  %v1827_v31 = vld [vmem:[#allocation2 + $0x98] sm:$0xff] }
 0x1f0   : > { %v1530_v26 = vpop.f32.mrf.mxu0  ;;  %v2048_v23 = vld [vmem:[#allocation2 + $0x91] sm:$0xff]  ;;  %v1854_v10 = vpack.c.bf16 %v1827_v31, %v1826_v22 }
 0x1f1   : > { %v6826_v5 = vpop.f32.mrf.mxu1  ;;  %v6828_v47 = vadd.f32 %v1530_v26, %v1360_v1  ;;  %v2049_v26 = vld [vmem:[#allocation2 + $0x99] sm:$0xff] }
 0x1f4   : > { %v1091_v54 = vpop.f32.mrf.mxu2 }
 0x1f5   : > { %v1313_v61 = vpop.f32.mrf.mxu3  ;;  %v1140_v44 = vadd.f32 %v1091_v54, %v6577_v50 }
 0x1f7   : > { %v1362_v4 = vadd.f32 %v1313_v61, %v1140_v44  ;;  %v5923_v44 = vld [vmem:[%s8228_s3 + $0x20] sm:$0xff] }
 0x1f8   : > { %v1533_v35 = vpop.f32.mrf.mxu0  ;;  %2833 = vmatpush.bf16.msra.mxu1 %v5923_v44 }
 0x1f9   : > { %v1755_v39 = vpop.f32.mrf.mxu1  ;;  %5514 = vmatmul.msk.bf16.gmra.mxu2 %vm425_vm2, %v1853_v24  ;;  %v1583_v37 = vadd.f32 %v1533_v35, %v1361_v58 }
 0x1fa   : > { %5531 = vmatmul.msk.bf16.gmra.mxu3 %vm425_vm2, %v2075_v51 }
 0x1fb   : > { %v6833_v62 = vadd.f32 %v1755_v39, %v1583_v37  ;;  %5547 = vmatmul.msk.bf16.gmra.mxu0 %vm425_vm2, %v6597_v20  ;;  %v2076_v20 = vpack.c.bf16 %v2049_v26, %v2048_v23 }
 0x1fc   : > { %v1094_v43 = vpop.f32.mrf.mxu2 }
 0x1fd   : > { %v1316_v30 = vpop.f32.mrf.mxu3  ;;  %v1141_v1 = vadd.f32 %v1094_v43, %v6591_v3 }
 0x1ff   : > { %v1363_v50 = vadd.f32 %v1316_v30, %v1141_v1  ;;  %v1828_v30 = vld [vmem:[#allocation2 + $0xa8] sm:$0xff]  ;;  %v1829_v1 = vld [vmem:[#allocation2 + $0xb0] sm:$0xff] }
 0x200   : > { %v1535_v28 = vpop.f32.mrf.mxu0 }
 0x201   : > { %v6838_v6 = vpop.f32.mrf.mxu1  ;;  %v6840_v14 = vadd.f32 %v1535_v28, %v1362_v4  ;;  %v2051_v28 = vld [vmem:[#allocation2 + $0xb1] sm:$0xff] }
 0x204   : > { %v1096_v58 = vpop.f32.mrf.mxu2 }
 0x205   : > { %v1318_v7 = vpop.f32.mrf.mxu3  ;;  %v1142_v63 = vadd.f32 %v1096_v58, %v6595_v19 }
 0x207   : > { %v1364_v41 = vadd.f32 %v1318_v7, %v1142_v63 }
 0x208   : > { %v1538_v54 = vpop.f32.mrf.mxu0 }
 0x209   : > { %v1760_v61 = vpop.f32.mrf.mxu1  ;;  %5515 = vmatmul.msk.bf16.gmra.mxu2 %vm425_vm2, %v1854_v10  ;;  %v1585_v3 = vadd.f32 %v1538_v54, %v1363_v50  ;;  %v2050_v50 = vld [vmem:[#allocation2 + $0xa9] sm:$0xff] }
 0x20a   : > { %5532 = vmatmul.msk.bf16.gmra.mxu3 %vm425_vm2, %v2076_v20  ;;  %v2077_v26 = vpack.c.bf16 %v2051_v28, %v2050_v50 }
 0x20b   : > { %v6848_v24 = vadd.f32 %v1760_v61, %v1585_v3  ;;  %5548 = vmatmul.msk.bf16.gmra.mxu0 %vm425_vm2, %v6615_v52  ;;  %v1855_v52 = vpack.c.bf16 %v1829_v1, %v1828_v30 }
 0x20c   : > { %v1099_v19 = vpop.f32.mrf.mxu2 }
 0x20d   : > { %v1321_v51 = vpop.f32.mrf.mxu3  ;;  %v1143_v4 = vadd.f32 %v1099_v19, %v6609_v34  ;;  %v1830_v19 = vld [vmem:[#allocation2 + $0xc0] sm:$0xff] }
 0x20f   : > { %v1365_v35 = vadd.f32 %v1321_v51, %v1143_v4  ;;  %v1831_v51 = vld [vmem:[#allocation2 + $0xc8] sm:$0xff] }
 0x210   : > { %v1540_v39 = vpop.f32.mrf.mxu0  ;;  %v2052_v4 = vld [vmem:[#allocation2 + $0xc1] sm:$0xff]  ;;  %v1856_v50 = vpack.c.bf16 %v1831_v51, %v1830_v19 }
 0x211   : > { %v6853_v37 = vpop.f32.mrf.mxu1  ;;  %v6855_v43 = vadd.f32 %v1540_v39, %v1364_v41  ;;  %v2053_v39 = vld [vmem:[#allocation2 + $0xc9] sm:$0xff]  ;;  %v2055_v19 = vld [vmem:[#allocation2 + $0xe1] sm:$0xff] }
 0x214   : > { %v1101_v22 = vpop.f32.mrf.mxu2 }
 0x215   : > { %v1323_v31 = vpop.f32.mrf.mxu3  ;;  %v1144_v23 = vadd.f32 %v1101_v22, %v6613_v57 }
 0x217   : > { %v1366_v58 = vadd.f32 %v1323_v31, %v1144_v23 }
 0x218   : > { %v1543_v7 = vpop.f32.mrf.mxu0 }
 0x219   : > { %v1765_v63 = vpop.f32.mrf.mxu1  ;;  %5516 = vmatmul.msk.bf16.gmra.mxu2 %vm425_vm2, %v1855_v52  ;;  %v1587_v34 = vadd.f32 %v1543_v7, %v1365_v35 }
 0x21a   : > { %5533 = vmatmul.msk.bf16.gmra.mxu3 %vm425_vm2, %v2077_v26 }
 0x21b   : > { %v6860_v10 = vadd.f32 %v1765_v63, %v1587_v34  ;;  %5549 = vmatmul.msk.bf16.gmra.mxu0 %vm425_vm2, %v6633_v38  ;;  %v2078_v38 = vpack.c.bf16 %v2053_v39, %v2052_v4  ;;  %v8261_v4 = vld [vmem:[#allocation9_spill] sm:$0xff] }
 0x21c   : > { %v1104_v20 = vpop.f32.mrf.mxu2 }
 0x21d   : > { %v1326_v41 = vpop.f32.mrf.mxu3  ;;  %v1145_v54 = vadd.f32 %v1104_v20, %v6627_v15 }
 0x21f   : > { %v1367_v57 = vadd.f32 %v1326_v41, %v1145_v54  ;;  %v1832_v41 = vld [vmem:[#allocation2 + $0xd8] sm:$0xff]  ;;  %v1833_v54 = vld [vmem:[#allocation2 + $0xe0] sm:$0xff] }
 0x220   : > { %v1545_v61 = vpop.f32.mrf.mxu0 }
 0x221   : > { %v6865_v3 = vpop.f32.mrf.mxu1  ;;  %v6867_v44 = vadd.f32 %v1545_v61, %v1366_v58  ;;  %v8260_v58 = vld [vmem:[#allocation8_spill] sm:$0xff]  ;;  %v2054_v61 = vld [vmem:[#allocation2 + $0xd9] sm:$0xff] }
 0x224   : > { %v1106_v35 = vpop.f32.mrf.mxu2 }
 0x225   : > { %v1328_v30 = vpop.f32.mrf.mxu3  ;;  %v1146_v1 = vadd.f32 %v1106_v35, %v6631_v33  ;;  %v1857_v35 = vpack.c.bf16 %v1833_v54, %v1832_v41 }
 0x227   : > { %v1368_v28 = vadd.f32 %v1328_v30, %v1146_v1  ;;  %v8262_v1 = vmov 0.0  }
 0x228   : > { %v1548_v22 = vpop.f32.mrf.mxu0  ;;  %2557 = vst.msk [vmem:[#allocation3 + $0x18] sm:$0xff] %vm2552_vm4, %v8262_v1 }
 0x229   : > { %v1770_v31 = vpop.f32.mrf.mxu1  ;;  %5517 = vmatmul.msk.bf16.gmra.mxu2 %vm425_vm2, %v1856_v50  ;;  %v1589_v15 = vadd.f32 %v1548_v22, %v1367_v57  ;;  %2558 = vst.msk [vmem:[#allocation3 + $0x20] sm:$0xff] %vm2552_vm4, %v8262_v1 }
 0x22a   : > { %5534 = vmatmul.msk.bf16.gmra.mxu3 %vm425_vm2, %v2078_v38  ;;  %2553 = vst.msk [vmem:[#allocation3] sm:$0xff] %vm2552_vm4, %v8262_v1 }
 0x22b   : > { %v6872_v23 = vadd.f32 %v1770_v31, %v1589_v15  ;;  %5550 = vmatmul.msk.bf16.gmra.mxu0 %vm425_vm2, %v6651_v21  ;;  %v2079_v21 = vpack.c.bf16 %v2055_v19, %v2054_v61  ;;  %2554 = vst.msk [vmem:[#allocation3 + $0x8] sm:$0xff] %vm2552_vm4, %v8262_v1  ;;  %v8263_v31 = vld [vmem:[#allocation12_spill] sm:$0xff]  ;;  %v1834_v19 = vld [vmem:[#allocation2 + $0xf0] sm:$0xff] }
 0x22c   : > { %v1109_v52 = vpop.f32.mrf.mxu2  ;;  %2560 = vst.msk [vmem:[#allocation3 + $0x30] sm:$0xff] %vm2552_vm4, %v8262_v1 }
 0x22d   : > { %v1331_v26 = vpop.f32.mrf.mxu3  ;;  %v1147_v7 = vadd.f32 %v1109_v52, %v8260_v58  ;;  %2561 = vst.msk [vmem:[#allocation3 + $0x38] sm:$0xff] %vm2552_vm4, %v8262_v1 }
 0x22e   : > { %2563 = vst.msk [vmem:[#allocation3 + $0x48] sm:$0xff] %vm2552_vm4, %v8262_v1 }
 0x22f   : > { %v1369_v33 = vadd.f32 %v1331_v26, %v1147_v7  ;;  %v8264_v26 = vld [vmem:[#allocation10_spill] sm:$0xff]  ;;  %2564 = vst.msk [vmem:[#allocation3 + $0x50] sm:$0xff] %vm2552_vm4, %v8262_v1 }
 0x230   : > { %v1550_v63 = vpop.f32.mrf.mxu0  ;;  %2566 = vst.msk [vmem:[#allocation3 + $0x60] sm:$0xff] %vm2552_vm4, %v8262_v1 }
 0x231   : > { %v6877_v34 = vpop.f32.mrf.mxu1  ;;  %v6879_v20 = vadd.f32 %v1550_v63, %v1368_v28  ;;  %v5930_v63 = vld [vmem:[%s8228_s3 + $0x58] sm:$0xff]  ;;  %2567 = vst.msk [vmem:[#allocation3 + $0x68] sm:$0xff] %vm2552_vm4, %v8262_v1 }
 0x232   : > { %3209 = vmatpush.bf16.msrb.mxu3 %v5930_v63  ;;  %2569 = vst.msk [vmem:[#allocation3 + $0x78] sm:$0xff] %vm2552_vm4, %v8262_v1 }
 0x233   : > { %2570 = vst.msk [vmem:[#allocation3 + $0x80] sm:$0xff] %vm2552_vm4, %v8262_v1 }
 0x234   : > { %v1111_v57 = vpop.f32.mrf.mxu2  ;;  %2572 = vst.msk [vmem:[#allocation3 + $0x90] sm:$0xff] %vm2552_vm4, %v8262_v1 }
 0x235   : > { %v1333_v51 = vpop.f32.mrf.mxu3  ;;  %v1148_v39 = vadd.f32 %v1111_v57, %v8261_v4  ;;  %v1835_v57 = vld [vmem:[#allocation2 + $0xf8] sm:$0xff]  ;;  %2573 = vst.msk [vmem:[#allocation3 + $0x98] sm:$0xff] %vm2552_vm4, %v8262_v1 }
 0x236   : > { %v2057_v4 = vld [vmem:[#allocation2 + $0xf9] sm:$0xff]  ;;  %2575 = vst.msk [vmem:[#allocation3 + $0xa8] sm:$0xff] %vm2552_vm4, %v8262_v1 }
 0x237   : > { %v1370_v30 = vadd.f32 %v1333_v51, %v1148_v39  ;;  %v2056_v51 = vld [vmem:[#allocation2 + $0xf1] sm:$0xff]  ;;  %2576 = vst.msk [vmem:[#allocation3 + $0xb0] sm:$0xff] %vm2552_vm4, %v8262_v1 }
 0x238   : > { %v1553_v50 = vpop.f32.mrf.mxu0  ;;  %2578 = vst.msk [vmem:[#allocation3 + $0xc0] sm:$0xff] %vm2552_vm4, %v8262_v1 }
 0x239   : > { %v1775_v38 = vpop.f32.mrf.mxu1  ;;  %5518 = vmatmul.msk.bf16.gmra.mxu2 %vm425_vm2, %v1857_v35  ;;  %v1591_v28 = vadd.f32 %v1553_v50, %v1369_v33  ;;  %v5922_v33 = vld [vmem:[%s8228_s3 + $0x18] sm:$0xff]  ;;  %v1858_v50 = vpack.c.bf16 %v1835_v57, %v1834_v19  ;;  %2579 = vst.msk [vmem:[#allocation3 + $0xc8] sm:$0xff] %vm2552_vm4, %v8262_v1  ;;  %v1836_v19 = vld [vmem:[#allocation2 + $0x108] sm:$0xff]  ;;  %v1837_v57 = vld [vmem:[#allocation2 + $0x110] sm:$0xff] }
 0x23a   : > { %5535 = vmatmul.msk.bf16.gmra.mxu3 %vm425_vm2, %v2079_v21  ;;  %2991 = vmatpush.bf16.msrb.mxu2 %v5922_v33  ;;  %v8265_v21 = vld [vmem:[#allocation11_spill] sm:$0xff]  ;;  %2581 = vst.msk [vmem:[#allocation3 + $0xd8] sm:$0xff] %vm2552_vm4, %v8262_v1 }
 0x23b   : > { %v6892_v22 = vadd.f32 %v1775_v38, %v1591_v28  ;;  %5551 = vmatmul.msk.bf16.gmra.mxu0 %vm425_vm2, %v8263_v31  ;;  %v2080_v38 = vpack.c.bf16 %v2057_v4, %v2056_v51  ;;  %2582 = vst.msk [vmem:[#allocation3 + $0xe0] sm:$0xff] %vm2552_vm4, %v8262_v1  ;;  %v2058_v51 = vld [vmem:[#allocation2 + $0x109] sm:$0xff]  ;;  %v2059_v4 = vld [vmem:[#allocation2 + $0x111] sm:$0xff] }
 0x23c   : > { %v1114_v15 = vpop.f32.mrf.mxu2  ;;  %2584 = vst.msk [vmem:[#allocation3 + $0xf0] sm:$0xff] %vm2552_vm4, %v8262_v1 }
 0x23d   : > { %v1336_v52 = vpop.f32.mrf.mxu3  ;;  %v1149_v58 = vadd.f32 %v1114_v15, %v8264_v26  ;;  %2585 = vst.msk [vmem:[#allocation3 + $0xf8] sm:$0xff] %vm2552_vm4, %v8262_v1 }
 0x23e   : > { %2587 = vst.msk [vmem:[#allocation3 + $0x108] sm:$0xff] %vm2552_vm4, %v8262_v1 }
 0x23f   : > { %v1371_v7 = vadd.f32 %v1336_v52, %v1149_v58  ;;  %2588 = vst.msk [vmem:[#allocation3 + $0x110] sm:$0xff] %vm2552_vm4, %v8262_v1 }
 0x240   : > { %v1555_v41 = vpop.f32.mrf.mxu0  ;;  %2590 = vst.msk [vmem:[#allocation3 + $0x120] sm:$0xff] %vm2552_vm4, %v8262_v1 }
 0x241   : > { %v6913_v54 = vpop.f32.mrf.mxu1  ;;  %v6917_v61 = vadd.f32 %v1555_v41, %v1370_v30  ;;  %2591 = vst.msk [vmem:[#allocation3 + $0x128] sm:$0xff] %vm2552_vm4, %v8262_v1 }
 0x242   : > { %2593 = vst.msk [vmem:[#allocation3 + $0x138] sm:$0xff] %vm2552_vm4, %v8262_v1 }
 0x243   : > { %2594 = vst.msk [vmem:[#allocation3 + $0x140] sm:$0xff] %vm2552_vm4, %v8262_v1 }
 0x244   : > { %v1116_v39 = vpop.f32.mrf.mxu2  ;;  %2596 = vst.msk [vmem:[#allocation3 + $0x150] sm:$0xff] %vm2552_vm4, %v8262_v1 }
 0x245   : > { %v1338_v35 = vpop.f32.mrf.mxu3  ;;  %v1150_v30 = vadd.f32 %v1116_v39, %v8265_v21  ;;  %2597 = vst.msk [vmem:[#allocation3 + $0x158] sm:$0xff] %vm2552_vm4, %v8262_v1 }
 0x246   : > { %2599 = vst.msk [vmem:[#allocation3 + $0x168] sm:$0xff] %vm2552_vm4, %v8262_v1 }
 0x247   : > { %v1372_v28 = vadd.f32 %v1338_v35, %v1150_v30  ;;  %v2278_v30 = vld [vmem:[#allocation2 + $0xf2] sm:$0xff]  ;;  %2600 = vst.msk [vmem:[#allocation3 + $0x170] sm:$0xff] %vm2552_vm4, %v8262_v1 }
 0x248   : > { %v1558_v31 = vpop.f32.mrf.mxu0  ;;  %2602 = vst.msk [vmem:[#allocation3 + $0x180] sm:$0xff] %vm2552_vm4, %v8262_v1 }
 0x249   : > { %v1780_v15 = vpop.f32.mrf.mxu1  ;;  %5519 = vmatmul.msk.bf16.gmra.mxu2 %vm425_vm2, %v1858_v50  ;;  %v1593_v52 = vadd.f32 %v1558_v31, %v1371_v7  ;;  %v5934_v7 = vld [vmem:[%s8228_s3 + $0x78] sm:$0xff]  ;;  %2603 = vst.msk [vmem:[#allocation3 + $0x188] sm:$0xff] %vm2552_vm4, %v8262_v1 }
 0x24a   : > { %5536 = vmatmul.msk.bf16.gmra.mxu3 %vm425_vm2, %v2080_v38  ;;  %3459 = vmatpush.bf16.msrb.mxu0 %v5934_v7  ;;  %v2279_v50 = vld [vmem:[#allocation2 + $0xfa] sm:$0xff]  ;;  %v1859_v38 = vpack.c.bf16 %v1837_v57, %v1836_v19  ;;  %2605 = vst.msk [vmem:[#allocation3 + $0x198] sm:$0xff] %vm2552_vm4, %v8262_v1 }
 0x24b   : > { %v6942_v26 = vadd.f32 %v1780_v15, %v1593_v52  ;;  %5552 = vmatmul.msk.bf16.gmra.mxu0 %vm425_vm2, %v6689_v11  ;;  %v5938_v11 = vld [vmem:[%s8228_s3 + $0x98] sm:$0xff]  ;;  %v2302_v15 = vpack.c.bf16 %v2279_v50, %v2278_v30  ;;  %2606 = vst.msk [vmem:[#allocation3 + $0x1a0] sm:$0xff] %vm2552_vm4, %v8262_v1  ;;  %v2060_v50 = vld [vmem:[#allocation2 + $0x121] sm:$0xff] }
 0x24c   : > { %v1928_v58 = vpop.f32.mrf.mxu2  ;;  %3709 = vmatpush.bf16.msrb.mxu1 %v5938_v11  ;;  %2556 = vst.msk [vmem:[#allocation3 + $0x10] sm:$0x3] %vm2555_vm5, %v8262_v1 }
 0x24d   : > { %v2150_v33 = vpop.f32.mrf.mxu3  ;;  %v2008_v39 = vadd.f32 %v1928_v58, %v6695_v12  ;;  %v6982_v12 = vld [vmem:[%s8227_s2] ss:$0 sm:$0xff]  ;;  %2559 = vst.msk [vmem:[#allocation3 + $0x28] sm:$0x3] %vm2555_vm5, %v8262_v1 }
 0x24e   : > { %2562 = vst.msk [vmem:[#allocation3 + $0x40] sm:$0x3] %vm2555_vm5, %v8262_v1 }
 0x24f   : > { %v2230_v31 = vadd.f32 %v2150_v33, %v2008_v39  ;;  %2565 = vst.msk [vmem:[#allocation3 + $0x58] sm:$0x3] %vm2555_vm5, %v8262_v1  ;;  %v1839_v39 = vld [vmem:[#allocation2 + $0x128] sm:$0xff] }
 0x250   : > { %v1560_v63 = vpop.f32.mrf.mxu0  ;;  %2568 = vst.msk [vmem:[#allocation3 + $0x70] sm:$0x3] %vm2555_vm5, %v8262_v1 }
 0x251   : > { %v6964_v41 = vadd.f32 %v1560_v63, %v1372_v28  ;;  %v2081_v28 = vpack.c.bf16 %v2059_v4, %v2058_v51  ;;  %v2697_v51 = vld [vmem:[#allocation3 + $0x1] sm:$0xff]  ;;  %2571 = vst.msk [vmem:[#allocation3 + $0x88] sm:$0x3] %vm2555_vm5, %v8262_v1  ;;  %v1838_v4 = vld [vmem:[#allocation2 + $0x120] sm:$0xff] }
 0x252   : > { %2574 = vst.msk [vmem:[#allocation3 + $0xa0] sm:$0x3] %vm2555_vm5, %v8262_v1 }
 0x253   : > { %2577 = vst.msk [vmem:[#allocation3 + $0xb8] sm:$0x3] %vm2555_vm5, %v8262_v1 }
 0x254   : > { %v1930_v35 = vpop.f32.mrf.mxu2  ;;  %2580 = vst.msk [vmem:[#allocation3 + $0xd0] sm:$0x3] %vm2555_vm5, %v8262_v1 }
 0x255   : > { %v2152_v21 = vpop.f32.mrf.mxu3  ;;  %v2009_v7 = vadd.f32 %v1930_v35, %v6702_v56  ;;  %v2698_v35 = vld [vmem:[#allocation3 + $0x9] sm:$0xff]  ;;  %2583 = vst.msk [vmem:[#allocation3 + $0xe8] sm:$0x3] %vm2555_vm5, %v8262_v1 }
 0x256   : > { %2586 = vst.msk [vmem:[#allocation3 + $0x100] sm:$0x3] %vm2555_vm5, %v8262_v1 }
 0x257   : > { %v2231_v57 = vadd.f32 %v2152_v21, %v2009_v7  ;;  %v2729_v21 = vpack.c.bf16 %v2698_v35, %v2697_v51  ;;  %2589 = vst.msk [vmem:[#allocation3 + $0x118] sm:$0x3] %vm2555_vm5, %v8262_v1 }
 0x258   : > { %v2372_v52 = vpop.f32.mrf.mxu0  ;;  %2592 = vst.msk [vmem:[#allocation3 + $0x130] sm:$0x3] %vm2555_vm5, %v8262_v1 }
 0x259   : > { %5520 = vmatmul.msk.bf16.gmra.mxu2 %vm425_vm2, %v1859_v38  ;;  %v2452_v58 = vadd.f32 %v2372_v52, %v2230_v31  ;;  %v2061_v38 = vld [vmem:[#allocation2 + $0x129] sm:$0xff]  ;;  %5585 = vmatmul.msk.bf16.vlgmr.msra.gmra.mxu1 %vm2552_vm4, %v2729_v21  ;;  %2595 = vst.msk [vmem:[#allocation3 + $0x148] sm:$0x3] %vm2555_vm5, %v8262_v1  ;;  %v1841_v21 = vld [vmem:[#allocation2 + $0x140] sm:$0xff] }
 0x25a   : > { %5537 = vmatmul.msk.bf16.gmra.mxu3 %vm425_vm2, %v2081_v28  ;;  %v2280_v52 = vld [vmem:[#allocation2 + $0x10a] sm:$0xff]  ;;  %v2082_v7 = vpack.c.bf16 %v2061_v38, %v2060_v50  ;;  %2598 = vst.msk [vmem:[#allocation3 + $0x160] sm:$0x3] %vm2555_vm5, %v8262_v1 }
 0x25b   : > { %v2488_v33 = vadd.f32 %v6982_v12, %v2452_v58  ;;  %5553 = vmatmul.msk.bf16.gmra.mxu0 %vm425_vm2, %v2302_v15  ;;  %v2281_v58 = vld [vmem:[#allocation2 + $0x112] sm:$0xff]  ;;  %2601 = vst.msk [vmem:[#allocation3 + $0x178] sm:$0x3] %vm2555_vm5, %v8262_v1 }
 0x25c   : > { %v1933_v11 = vpop.f32.mrf.mxu2  ;;  %2604 = vst.msk [vmem:[#allocation3 + $0x190] sm:$0x3] %vm2555_vm5, %v8262_v1 }
 0x25d   : > { %v2155_v63 = vpop.f32.mrf.mxu3  ;;  %v2520_v19 = vmax.f32 %v2488_v33, 0.0  ;;  %v2010_v28 = vadd.f32 %v1933_v11, %v6708_v13  ;;  %v1860_v33 = vpack.c.bf16 %v1839_v39, %v1838_v4  ;;  %2607 = vst.msk [vmem:[#allocation3 + $0x1a8] sm:$0x3] %vm2555_vm5, %v8262_v1  ;;  %v2283_v1 = vld [vmem:[#allocation2 + $0x12a] sm:$0xff] }
 0x25f   : > { %2609 = vst.msk [vmem:[#allocation3 + $0x19] sm:$0xff] %vm2552_vm4, %v2520_v19  ;;  %v2232_v11 = vadd.f32 %v2155_v63, %v2010_v28  ;;  %v2303_v19 = vpack.c.bf16 %v2281_v58, %v2280_v52  ;;  %v1840_v28 = vld [vmem:[#allocation2 + $0x138] sm:$0xff]  ;;  %v2063_v52 = vld [vmem:[#allocation2 + $0x141] sm:$0xff] }
 0x260   : > { %v2374_v56 = vpop.f32.mrf.mxu0 }
 0x261   : > { %v2453_v30 = vadd.f32 %v2374_v56, %v2231_v57 }
 0x263   : > { %v2489_v13 = vadd.f32 %v6982_v12, %v2453_v30 }
 0x264   : > { %v1935_v31 = vpop.f32.mrf.mxu2 }
 0x265   : > { %v2157_v15 = vpop.f32.mrf.mxu3  ;;  %v2521_v63 = vmax.f32 %v2489_v13, 0.0  ;;  %v2011_v56 = vadd.f32 %v1935_v31, %v6714_v36  ;;  %v2062_v31 = vld [vmem:[#allocation2 + $0x139] sm:$0xff] }
 0x267   : > { %2610 = vst.msk [vmem:[#allocation3 + $0x21] sm:$0xff] %vm2552_vm4, %v2521_v63  ;;  %v2233_v50 = vadd.f32 %v2157_v15, %v2011_v56  ;;  %v2699_v15 = vld [vmem:[#allocation3 + $0x19] sm:$0xff] }
 0x268   : > { %v2377_v57 = vpop.f32.mrf.mxu0 }
 0x269   : > { %5521 = vmatmul.msk.bf16.gmra.mxu2 %vm425_vm2, %v1860_v33  ;;  %v2454_v51 = vadd.f32 %v2377_v57, %v2232_v11  ;;  %v2282_v11 = vld [vmem:[#allocation2 + $0x122] sm:$0xff]  ;;  %v1861_v57 = vpack.c.bf16 %v1841_v21, %v1840_v28 }
 0x26a   : > { %5538 = vmatmul.msk.bf16.gmra.mxu3 %vm425_vm2, %v2082_v7 }
 0x26b   : > { %v2490_v4 = vadd.f32 %v6982_v12, %v2454_v51  ;;  %5554 = vmatmul.msk.bf16.gmra.mxu0 %vm425_vm2, %v2303_v19  ;;  %v2083_v51 = vpack.c.bf16 %v2063_v52, %v2062_v31  ;;  %v5921_v31 = vld [vmem:[%s8228_s3 + $0x10] sm:$0xff] }
 0x26c   : > { %v1938_v39 = vpop.f32.mrf.mxu2  ;;  %v5929_v52 = vld [vmem:[%s8228_s3 + $0x50] sm:$0xff]  ;;  %2992 = vmatpush.bf16.msrb.mxu2 %v5921_v31 }
 0x26d   : > { %v2160_v35 = vpop.f32.mrf.mxu3  ;;  %v2522_v30 = vmax.f32 %v2490_v4, 0.0  ;;  %v2012_v58 = vadd.f32 %v1938_v39, %v6720_v53  ;;  %3210 = vmatpush.bf16.msrb.mxu3 %v5929_v52  ;;  %v5937_v31 = vld [vmem:[%s8228_s3 + $0x90] sm:$0xff] }
 0x26e   : > { %v2700_v63 = vld [vmem:[#allocation3 + $0x21] sm:$0xff]  ;;  %3710 = vmatpush.bf16.msrb.mxu1 %v5937_v31 }
 0x26f   : > { %2611 = vst.msk [vmem:[#allocation3 + $0x31] sm:$0xff] %vm2552_vm4, %v2522_v30  ;;  %v2730_v56 = vpack.c.bf16 %v2700_v63, %v2699_v15  ;;  %v2234_v4 = vadd.f32 %v2160_v35, %v2012_v58  ;;  %v2304_v30 = vpack.c.bf16 %v2283_v1, %v2282_v11  ;;  %v1843_v11 = vld [vmem:[#allocation2 + $0x158] sm:$0xff] }
 0x270   : > { %v2379_v38 = vpop.f32.mrf.mxu0  ;;  %v2064_v1 = vld [vmem:[#allocation2 + $0x151] sm:$0xff] }
 0x271   : > { %v2455_v36 = vadd.f32 %v2379_v38, %v2233_v50  ;;  %5586 = vmatmul.msk.bf16.gmra.mxu1 %vm2552_vm4, %v2730_v56 }
 0x273   : > { %v2491_v33 = vadd.f32 %v6982_v12, %v2455_v36 }
 0x274   : > { %v1940_v7 = vpop.f32.mrf.mxu2 }
 0x275   : > { %v2162_v13 = vpop.f32.mrf.mxu3  ;;  %v2523_v19 = vmax.f32 %v2491_v33, 0.0  ;;  %v2013_v39 = vadd.f32 %v1940_v7, %v6726_v27  ;;  %v1842_v33 = vld [vmem:[#allocation2 + $0x150] sm:$0xff] }
 0x277   : > { %2612 = vst.msk [vmem:[#allocation3 + $0x39] sm:$0xff] %vm2552_vm4, %v2523_v19  ;;  %v2235_v21 = vadd.f32 %v2162_v13, %v2013_v39  ;;  %v2065_v19 = vld [vmem:[#allocation2 + $0x159] sm:$0xff] }
 0x278   : > { %v2382_v50 = vpop.f32.mrf.mxu0  ;;  %v2084_v39 = vpack.c.bf16 %v2065_v19, %v2064_v1  ;;  %v1844_v19 = vld [vmem:[#allocation2 + $0x168] sm:$0xff] }
 0x279   : > { %5522 = vmatmul.msk.bf16.gmra.mxu2 %vm425_vm2, %v1861_v57  ;;  %v2456_v53 = vadd.f32 %v2382_v50, %v2234_v4  ;;  %v2284_v4 = vld [vmem:[#allocation2 + $0x13a] sm:$0xff] }
 0x27a   : > { %5539 = vmatmul.msk.bf16.gmra.mxu3 %vm425_vm2, %v2083_v51  ;;  %v2701_v51 = vld [vmem:[#allocation3 + $0x31] sm:$0xff] }
 0x27b   : > { %v2492_v38 = vadd.f32 %v6982_v12, %v2456_v53  ;;  %5555 = vmatmul.msk.bf16.gmra.mxu0 %vm425_vm2, %v2304_v30  ;;  %v2285_v30 = vld [vmem:[#allocation2 + $0x142] sm:$0xff]  ;;  %v1862_v53 = vpack.c.bf16 %v1843_v11, %v1842_v33 }
 0x27c   : > { %v1943_v36 = vpop.f32.mrf.mxu2 }
 0x27d   : > { %v2165_v28 = vpop.f32.mrf.mxu3  ;;  %v2524_v35 = vmax.f32 %v2492_v38, 0.0  ;;  %v2014_v13 = vadd.f32 %v1943_v36, %v6735_v16 }
 0x27e   : > { %v2702_v7 = vld [vmem:[#allocation3 + $0x39] sm:$0xff] }
 0x27f   : > { %2613 = vst.msk [vmem:[#allocation3 + $0x49] sm:$0xff] %vm2552_vm4, %v2524_v35  ;;  %v2731_v56 = vpack.c.bf16 %v2702_v7, %v2701_v51  ;;  %v2236_v38 = vadd.f32 %v2165_v28, %v2014_v13  ;;  %v2305_v35 = vpack.c.bf16 %v2285_v30, %v2284_v4  ;;  %v2066_v51 = vld [vmem:[#allocation2 + $0x169] sm:$0xff] }
 0x280   : > { %v2384_v58 = vpop.f32.mrf.mxu0 }
 0x281   : > { %v2457_v27 = vadd.f32 %v2384_v58, %v2235_v21  ;;  %v5933_v21 = vld [vmem:[%s8228_s3 + $0x70] sm:$0xff]  ;;  %5587 = vmatmul.msk.bf16.gmra.mxu1 %vm2552_vm4, %v2731_v56 }
 0x282   : > { %3460 = vmatpush.bf16.msrb.mxu0 %v5933_v21  ;;  %v2067_v56 = vld [vmem:[#allocation2 + $0x171] sm:$0xff] }
 0x283   : > { %v2493_v57 = vadd.f32 %v6982_v12, %v2457_v27  ;;  %v2085_v21 = vpack.c.bf16 %v2067_v56, %v2066_v51  ;;  %v1847_v51 = vld [vmem:[#allocation2 + $0x188] sm:$0xff] }
 0x284   : > { %v1945_v15 = vpop.f32.mrf.mxu2 }
 0x285   : > { %v2167_v63 = vpop.f32.mrf.mxu3  ;;  %v2525_v50 = vmax.f32 %v2493_v57, 0.0  ;;  %v2015_v28 = vadd.f32 %v1945_v15, %v6745_v25  ;;  %v1845_v57 = vld [vmem:[#allocation2 + $0x170] sm:$0xff] }
 0x286   : > { %v2703_v4 = vld [vmem:[#allocation3 + $0x49] sm:$0xff] }
 0x287   : > { %2614 = vst.msk [vmem:[#allocation3 + $0x51] sm:$0xff] %vm2552_vm4, %v2525_v50  ;;  %v2237_v7 = vadd.f32 %v2167_v63, %v2015_v28 }
 0x288   : > { %v2387_v16 = vpop.f32.mrf.mxu0 }
 0x289   : > { %5523 = vmatmul.msk.bf16.gmra.mxu2 %vm425_vm2, %v1862_v53  ;;  %v2458_v36 = vadd.f32 %v2387_v16, %v2236_v38  ;;  %v2287_v38 = vld [vmem:[#allocation2 + $0x15a] sm:$0xff] }
 0x28a   : > { %5540 = vmatmul.msk.bf16.gmra.mxu3 %vm425_vm2, %v2084_v39  ;;  %v2286_v39 = vld [vmem:[#allocation2 + $0x152] sm:$0xff] }
 0x28b   : > { %v2494_v52 = vadd.f32 %v6982_v12, %v2458_v36  ;;  %5556 = vmatmul.msk.bf16.gmra.mxu0 %vm425_vm2, %v2305_v35  ;;  %v1863_v35 = vpack.c.bf16 %v1845_v57, %v1844_v19  ;;  %v2306_v36 = vpack.c.bf16 %v2287_v38, %v2286_v39  ;;  %v1846_v57 = vld [vmem:[#allocation2 + $0x180] sm:$0xff]  ;;  %v2289_v39 = vld [vmem:[#allocation2 + $0x172] sm:$0xff] }
 0x28c   : > { %v1948_v58 = vpop.f32.mrf.mxu2 }
 0x28d   : > { %v2170_v27 = vpop.f32.mrf.mxu3  ;;  %v2526_v33 = vmax.f32 %v2494_v52, 0.0  ;;  %v2016_v25 = vadd.f32 %v1948_v58, %v6751_v9  ;;  %v1794_v9 = vadd.f32 %v6757_v48, %v6759_v8  ;;  %v5920_v48 = vld [vmem:[%s8228_s3 + $0x8] sm:$0xff] }
 0x28e   : > { %v2704_v13 = vld [vmem:[#allocation3 + $0x51] sm:$0xff]  ;;  %2993 = vmatpush.bf16.msrb.mxu2 %v5920_v48 }
 0x28f   : > { %2615 = vst.msk [vmem:[#allocation3 + $0x61] sm:$0xff] %vm2552_vm4, %v2526_v33  ;;  %v2732_v53 = vpack.c.bf16 %v2704_v13, %v2703_v4  ;;  %v2238_v16 = vadd.f32 %v2170_v27, %v2016_v25  ;;  %v5928_v8 = vld [vmem:[%s8228_s3 + $0x48] sm:$0xff] }
 0x290   : > { %v2389_v11 = vpop.f32.mrf.mxu0  ;;  %3211 = vmatpush.bf16.msrb.mxu3 %v5928_v8  ;;  %v1849_v8 = vld [vmem:[#allocation2 + $0x1a0] sm:$0xff] }
 0x291   : > { %v2459_v1 = vadd.f32 %v2389_v11, %v2237_v7  ;;  %5588 = vmatmul.msk.bf16.gmra.mxu1 %vm2552_vm4, %v2732_v53  ;;  %v2288_v53 = vld [vmem:[#allocation2 + $0x16a] sm:$0xff] }
 0x293   : > { %v2495_v15 = vadd.f32 %v6982_v12, %v2459_v1 }
 0x294   : > { %v1950_v30 = vpop.f32.mrf.mxu2 }
 0x295   : > { %v2172_v50 = vpop.f32.mrf.mxu3  ;;  %v2527_v63 = vmax.f32 %v2495_v15, 0.0  ;;  %v2017_v52 = vadd.f32 %v1950_v30, %v1794_v9 }
 0x296   : > { %v2705_v15 = vld [vmem:[#allocation3 + $0x61] sm:$0xff] }
 0x297   : > { %2616 = vst.msk [vmem:[#allocation3 + $0x69] sm:$0xff] %vm2552_vm4, %v2527_v63  ;;  %v2239_v11 = vadd.f32 %v2172_v50, %v2017_v52  ;;  %v1864_v63 = vpack.c.bf16 %v1847_v51, %v1846_v57 }
 0x298   : > { %v2392_v31 = vpop.f32.mrf.mxu0 }
 0x299   : > { %5524 = vmatmul.msk.bf16.gmra.mxu2 %vm425_vm2, %v1863_v35  ;;  %v2460_v28 = vadd.f32 %v2392_v31, %v2238_v16  ;;  %v5919_v16 = vld [vmem:[%s8228_s3] sm:$0xff]  ;;  %v1796_v31 = vadd.f32 %v6771_v59, %v6773_v29 }
 0x29a   : > { %5541 = vmatmul.msk.bf16.gmra.mxu3 %vm425_vm2, %v2085_v21  ;;  %v2307_v21 = vpack.c.bf16 %v2289_v39, %v2288_v53  ;;  %2994 = vmatpush.bf16.msrb.mxu2 %v5919_v16 }
 0x29b   : > { %v2496_v58 = vadd.f32 %v6982_v12, %v2460_v28  ;;  %5557 = vmatmul.msk.bf16.gmra.mxu0 %vm425_vm2, %v2306_v36 }
 0x29c   : > { %v1953_v27 = vpop.f32.mrf.mxu2 }
 0x29d   : > { %v2175_v33 = vpop.f32.mrf.mxu3  ;;  %v2528_v7 = vmax.f32 %v2496_v58, 0.0  ;;  %v2018_v56 = vadd.f32 %v1953_v27, %v6765_v40  ;;  %v5927_v40 = vld [vmem:[%s8228_s3 + $0x40] sm:$0xff] }
 0x29e   : > { %v2706_v13 = vld [vmem:[#allocation3 + $0x69] sm:$0xff]  ;;  %3212 = vmatpush.bf16.msrb.mxu3 %v5927_v40 }
 0x29f   : > { %2617 = vst.msk [vmem:[#allocation3 + $0x79] sm:$0xff] %vm2552_vm4, %v2528_v7  ;;  %v2733_v50 = vpack.c.bf16 %v2706_v13, %v2705_v15  ;;  %v2240_v35 = vadd.f32 %v2175_v33, %v2018_v56  ;;  %v2290_v15 = vld [vmem:[#allocation2 + $0x182] sm:$0xff] }
 0x2a0   : > { %v2394_v1 = vpop.f32.mrf.mxu0 }
 0x2a1   : > { %v2461_v19 = vadd.f32 %v2394_v1, %v2239_v11  ;;  %5589 = vmatmul.msk.bf16.gmra.mxu1 %vm2552_vm4, %v2733_v50  ;;  %v1848_v11 = vld [vmem:[#allocation2 + $0x198] sm:$0xff]  ;;  %v2071_v1 = vld [vmem:[#allocation2 + $0x1a1] sm:$0xff] }
 0x2a2   : > { %v1865_v50 = vpack.c.bf16 %v1849_v8, %v1848_v11 }
 0x2a3   : > { %v2497_v25 = vadd.f32 %v6982_v12, %v2461_v19 }
 0x2a4   : > { %v1955_v4 = vpop.f32.mrf.mxu2 }
 0x2a5   : > { %v2177_v30 = vpop.f32.mrf.mxu3  ;;  %v2529_v38 = vmax.f32 %v2497_v25, 0.0  ;;  %v2019_v28 = vadd.f32 %v1955_v4, %v1796_v31  ;;  %v2291_v4 = vld [vmem:[#allocation2 + $0x18a] sm:$0xff] }
 0x2a6   : > { %v2707_v57 = vld [vmem:[#allocation3 + $0x79] sm:$0xff] }
 0x2a7   : > { %2618 = vst.msk [vmem:[#allocation3 + $0x81] sm:$0xff] %vm2552_vm4, %v2529_v38  ;;  %v2241_v7 = vadd.f32 %v2177_v30, %v2019_v28  ;;  %v2308_v38 = vpack.c.bf16 %v2291_v4, %v2290_v15 }
 0x2a8   : > { %v2397_v36 = vpop.f32.mrf.mxu0 }
 0x2a9   : > { %5525 = vmatmul.msk.bf16.gmra.mxu2 %vm425_vm2, %v1864_v63  ;;  %v2462_v9 = vadd.f32 %v2397_v36, %v2240_v35 }
 0x2aa   : > { %5542 = vmatmul.msk.bf16.gmra.mxu3 %vm425_vm2, %v6789_v18  ;;  %v2070_v18 = vld [vmem:[#allocation2 + $0x199] sm:$0xff] }
 0x2ab   : > { %v2498_v52 = vadd.f32 %v6982_v12, %v2462_v9  ;;  %5558 = vmatmul.msk.bf16.gmra.mxu0 %vm425_vm2, %v2307_v21  ;;  %v2087_v53 = vpack.c.bf16 %v2071_v1, %v2070_v18  ;;  %v5932_v9 = vld [vmem:[%s8228_s3 + $0x68] sm:$0xff] }
 0x2ac   : > { %v1958_v58 = vpop.f32.mrf.mxu2  ;;  %3461 = vmatpush.bf16.msrb.mxu0 %v5932_v9 }
 0x2ad   : > { %v2180_v27 = vpop.f32.mrf.mxu3  ;;  %v2530_v33 = vmax.f32 %v2498_v52, 0.0  ;;  %v2020_v19 = vadd.f32 %v1958_v58, %v6778_v0  ;;  %v1798_v0 = vadd.f32 %v6784_v45, %v6786_v42  ;;  %v2641_v58 = vld [vmem:[#allocation3] sm:$0xff] }
 0x2ae   : > { %v2708_v48 = vld [vmem:[#allocation3 + $0x81] sm:$0xff] }
 0x2af   : > { %2619 = vst.msk [vmem:[#allocation3 + $0x91] sm:$0xff] %vm2552_vm4, %v2530_v33  ;;  %v2734_v25 = vpack.c.bf16 %v2708_v48, %v2707_v57  ;;  %v2242_v39 = vadd.f32 %v2180_v27, %v2020_v19  ;;  %v2642_v27 = vld [vmem:[#allocation3 + $0x8] sm:$0xff] }
 0x2b0   : > { %v2399_v59 = vpop.f32.mrf.mxu0  ;;  %v3076_v33 = vld [vmem:[#allocation3 + $0x2] sm:$0xff]  ;;  %v2292_v19 = vld [vmem:[#allocation2 + $0x19a] sm:$0xff] }
 0x2b1   : > { %v2463_v29 = vadd.f32 %v2399_v59, %v2241_v7  ;;  %5590 = vmatmul.msk.bf16.gmra.mxu1 %vm2552_vm4, %v2734_v25  ;;  %v3077_v7 = vld [vmem:[#allocation3 + $0xa] sm:$0xff] }
 0x2b2   : > { %v5931_v59 = vld [vmem:[%s8228_s3 + $0x60] sm:$0xff] }
 0x2b3   : > { %v2499_v13 = vadd.f32 %v6982_v12, %v2463_v29  ;;  %3462 = vmatpush.bf16.msrb.mxu0 %v5931_v59 }
 0x2b4   : > { %v1960_v51 = vpop.f32.mrf.mxu2 }
 0x2b5   : > { %v2182_v56 = vpop.f32.mrf.mxu3  ;;  %v2531_v30 = vmax.f32 %v2499_v13, 0.0  ;;  %v2021_v21 = vadd.f32 %v1960_v51, %v1798_v0  ;;  %v2293_v13 = vld [vmem:[#allocation2 + $0x1a2] sm:$0xff]  ;;  %v2673_v51 = vpack.c.bf16 %v2642_v27, %v2641_v58 }
 0x2b6   : > { %v2709_v48 = vld [vmem:[#allocation3 + $0x91] sm:$0xff]  ;;  %v2309_v15 = vpack.c.bf16 %v2293_v13, %v2292_v19 }
 0x2b7   : > { %2620 = vst.msk [vmem:[#allocation3 + $0x99] sm:$0xff] %vm2552_vm4, %v2531_v30  ;;  %v2243_v28 = vadd.f32 %v2182_v56, %v2021_v21  ;;  %v3108_v56 = vpack.c.bf16 %v3077_v7, %v3076_v33  ;;  %v2643_v27 = vld [vmem:[#allocation3 + $0x18] sm:$0xff] }
 0x2b8   : > { %v2402_v63 = vpop.f32.mrf.mxu0 }
 0x2b9   : > { %5526 = vmatmul.msk.bf16.gmra.mxu2 %vm425_vm2, %v1865_v50  ;;  %v2464_v35 = vadd.f32 %v2402_v63, %v2242_v39  ;;  %v5936_v50 = vld [vmem:[%s8228_s3 + $0x88] sm:$0xff] }
 0x2ba   : > { %5543 = vmatmul.msk.bf16.gmra.mxu3 %vm425_vm2, %v2087_v53  ;;  %3711 = vmatpush.bf16.msrb.mxu1 %v5936_v50 }
 0x2bb   : > { %v2500_v16 = vadd.f32 %v6982_v12, %v2464_v35  ;;  %5559 = vmatmul.msk.bf16.gmra.mxu0 %vm425_vm2, %v2308_v38 }
 0x2bc   : > { %v1963_v40 = vpop.f32.mrf.mxu2 }
 0x2bd   : > { %v2185_v36 = vpop.f32.mrf.mxu3  ;;  %v2532_v31 = vmax.f32 %v2500_v16, 0.0  ;;  %v2022_v29 = vadd.f32 %v1963_v40, %v6796_v55  ;;  %v1800_v55 = vadd.f32 %v6802_v46, %v6804_v32 }
 0x2be   : > { %v2710_v52 = vld [vmem:[#allocation3 + $0x99] sm:$0xff] }
 0x2bf   : > { %2621 = vst.msk [vmem:[#allocation3 + $0xa9] sm:$0xff] %vm2552_vm4, %v2532_v31  ;;  %v2735_v1 = vpack.c.bf16 %v2710_v52, %v2709_v48  ;;  %v2244_v25 = vadd.f32 %v2185_v36, %v2022_v29  ;;  %v3079_v52 = vld [vmem:[#allocation3 + $0x22] sm:$0xff]  ;;  %v7150_v48 = vpop.f32.mrf.mxu1 }
 0x2c0   : > { %v2404_v45 = vpop.f32.mrf.mxu0 }
 0x2c1   : > { %v2465_v42 = vadd.f32 %v2404_v45, %v2243_v28  ;;  %5591 = vmatmul.msk.bf16.gmra.mxu1 %vm2552_vm4, %v2735_v1  ;;  %v2644_v45 = vld [vmem:[#allocation3 + $0x20] sm:$0xff] }
 0x2c2   : > { %v2674_v7 = vpack.c.bf16 %v2644_v45, %v2643_v27 }
 0x2c3   : > { %v2501_v11 = vadd.f32 %v6982_v12, %v2465_v42  ;;  %v3078_v42 = vld [vmem:[#allocation3 + $0x1a] sm:$0xff] }
 0x2c4   : > { %v1965_v8 = vpop.f32.mrf.mxu2  ;;  %v3109_v59 = vpack.c.bf16 %v3079_v52, %v3078_v42 }
 0x2c5   : > { %v2187_v18 = vpop.f32.mrf.mxu3  ;;  %v2533_v57 = vmax.f32 %v2501_v11, 0.0  ;;  %v2023_v53 = vadd.f32 %v1965_v8, %v1800_v55 }
 0x2c6   : > { %v2711_v36 = vld [vmem:[#allocation3 + $0xa9] sm:$0xff] }
 0x2c7   : > { %2622 = vst.msk [vmem:[#allocation3 + $0xb1] sm:$0xff] %vm2552_vm4, %v2533_v57  ;;  %v2245_v35 = vadd.f32 %v2187_v18, %v2023_v53  ;;  %v2646_v53 = vld [vmem:[#allocation3 + $0x38] sm:$0xff] }
 0x2c8   : > { %v2407_v4 = vpop.f32.mrf.mxu0 }
 0x2c9   : > { %5617 = vmatmul.msk.bf16.vlgmr.msrb.gmra.mxu2 %vm2552_vm4, %v2673_v51  ;;  %v2466_v30 = vadd.f32 %v2407_v4, %v2244_v25 }
 0x2ca   : > { %5657 = vmatmul.msk.bf16.vlgmr.msrb.gmra.mxu3 %vm2552_vm4, %v3108_v56 }
 0x2cb   : > { %v2502_v39 = vadd.f32 %v6982_v12, %v2466_v30  ;;  %5560 = vmatmul.msk.bf16.gmra.mxu0 %vm425_vm2, %v2309_v15 }
 0x2cc   : > { %v1968_v38 = vpop.f32.mrf.mxu2 }
 0x2cd   : > { %v2190_v63 = vpop.f32.mrf.mxu3  ;;  %v2534_v0 = vmax.f32 %v2502_v39, 0.0  ;;  %v2024_v16 = vadd.f32 %v1968_v38, %v6809_v2  ;;  %v1802_v2 = vadd.f32 %v6814_v49, %v6816_v60  ;;  %v3080_v39 = vld [vmem:[#allocation3 + $0x32] sm:$0xff]  ;;  %v3081_v38 = vld [vmem:[#allocation3 + $0x3a] sm:$0xff] }
 0x2ce   : > { %v2712_v21 = vld [vmem:[#allocation3 + $0xb1] sm:$0xff] }
 0x2cf   : > { %2623 = vst.msk [vmem:[#allocation3 + $0xc1] sm:$0xff] %vm2552_vm4, %v2534_v0  ;;  %v2736_v28 = vpack.c.bf16 %v2712_v21, %v2711_v36  ;;  %v2246_v33 = vadd.f32 %v2190_v63, %v2024_v16  ;;  %v2645_v0 = vld [vmem:[#allocation3 + $0x30] sm:$0xff]  ;;  %v1804_v21 = vadd.f32 %v6826_v5, %v6828_v47 }
 0x2d0   : > { %v2409_v46 = vpop.f32.mrf.mxu0 }
 0x2d1   : > { %v2467_v32 = vadd.f32 %v2409_v46, %v2245_v35  ;;  %5592 = vmatmul.msk.bf16.gmra.mxu1 %vm2552_vm4, %v2736_v28  ;;  %v2675_v46 = vpack.c.bf16 %v2646_v53, %v2645_v0 }
 0x2d3   : > { %v2503_v40 = vadd.f32 %v6982_v12, %v2467_v32  ;;  %v3110_v32 = vpack.c.bf16 %v3081_v38, %v3080_v39 }
 0x2d4   : > { %v1970_v31 = vpop.f32.mrf.mxu2 }
 0x2d5   : > { %v2192_v9 = vpop.f32.mrf.mxu3  ;;  %v2535_v58 = vmax.f32 %v2503_v40, 0.0  ;;  %v2025_v8 = vadd.f32 %v1970_v31, %v1802_v2  ;;  %v2648_v2 = vld [vmem:[#allocation3 + $0x50] sm:$0xff] }
 0x2d6   : > { %v7156_v25 = vpop.f32.mrf.mxu1  ;;  %v2713_v4 = vld [vmem:[#allocation3 + $0xc1] sm:$0xff] }
 0x2d7   : > { %2624 = vst.msk [vmem:[#allocation3 + $0xc9] sm:$0xff] %vm2552_vm4, %v2535_v58  ;;  %v2247_v57 = vadd.f32 %v2192_v9, %v2025_v8  ;;  %v3083_v8 = vld [vmem:[#allocation3 + $0x52] sm:$0xff] }
 0x2d8   : > { %v2412_v29 = vpop.f32.mrf.mxu0 }
 0x2d9   : > { %5618 = vmatmul.msk.bf16.gmra.mxu2 %vm2552_vm4, %v2674_v7  ;;  %v2468_v11 = vadd.f32 %v2412_v29, %v2246_v33 }
 0x2da   : > { %5658 = vmatmul.msk.bf16.gmra.mxu3 %vm2552_vm4, %v3109_v59 }
 0x2db   : > { %v2504_v18 = vadd.f32 %v6982_v12, %v2468_v11  ;;  %5697 = vmatmul.msk.bf16.vlgmr.msrb.gmra.mxu0 %vm2552_vm4, %v2674_v7  ;;  %v3082_v11 = vld [vmem:[#allocation3 + $0x4a] sm:$0xff] }
 0x2dc   : > { %v1973_v1 = vpop.f32.mrf.mxu2 }
 0x2dd   : > { %v2195_v19 = vpop.f32.mrf.mxu3  ;;  %v2536_v13 = vmax.f32 %v2504_v18, 0.0  ;;  %v2026_v56 = vadd.f32 %v1973_v1, %v6821_v17 }
 0x2de   : > { %v2714_v60 = vld [vmem:[#allocation3 + $0xc9] sm:$0xff]  ;;  %v7167_v28 = vpop.f32.mrf.mxu1 }
 0x2df   : > { %2625 = vst.msk [vmem:[#allocation3 + $0xd9] sm:$0xff] %vm2552_vm4, %v2536_v13  ;;  %v2737_v50 = vpack.c.bf16 %v2714_v60, %v2713_v4  ;;  %v2248_v35 = vadd.f32 %v2195_v19, %v2026_v56  ;;  %v2647_v19 = vld [vmem:[#allocation3 + $0x48] sm:$0xff] }
 0x2e0   : > { %v2414_v51 = vpop.f32.mrf.mxu0 }
 0x2e1   : > { %v2469_v49 = vadd.f32 %v2414_v51, %v2247_v57  ;;  %5593 = vmatmul.msk.bf16.gmra.mxu1 %vm2552_vm4, %v2737_v50  ;;  %v7175_v57 = vpack.c.bf16 %v2648_v2, %v2647_v19  ;;  %v3111_v51 = vpack.c.bf16 %v3083_v8, %v3082_v11 }
 0x2e3   : > { %v2505_v15 = vadd.f32 %v6982_v12, %v2469_v49  ;;  %v1806_v49 = vadd.f32 %v6838_v6, %v6840_v14 }
 0x2e4   : > { %v1975_v55 = vpop.f32.mrf.mxu2 }
 0x2e5   : > { %v2197_v30 = vpop.f32.mrf.mxu3  ;;  %v2537_v63 = vmax.f32 %v2505_v15, 0.0  ;;  %v2027_v40 = vadd.f32 %v1975_v55, %v1804_v21  ;;  %v3084_v21 = vld [vmem:[#allocation3 + $0x62] sm:$0xff] }
 0x2e6   : > { %v2715_v33 = vld [vmem:[#allocation3 + $0xd9] sm:$0xff] }
 0x2e7   : > { %2626 = vst.msk [vmem:[#allocation3 + $0xe1] sm:$0xff] %vm2552_vm4, %v2537_v63  ;;  %v2249_v42 = vadd.f32 %v2197_v30, %v2027_v40 }
 0x2e8   : > { %v2417_v17 = vpop.f32.mrf.mxu0 }
 0x2e9   : > { %5619 = vmatmul.msk.bf16.gmra.mxu2 %vm2552_vm4, %v2675_v46  ;;  %v2470_v16 = vadd.f32 %v2417_v17, %v2248_v35  ;;  %v2650_v17 = vld [vmem:[#allocation3 + $0x68] sm:$0xff] }
 0x2ea   : > { %5659 = vmatmul.msk.bf16.gmra.mxu3 %vm2552_vm4, %v3110_v32 }
 0x2eb   : > { %v2506_v36 = vadd.f32 %v6982_v12, %v2470_v16  ;;  %5698 = vmatmul.msk.bf16.gmra.mxu0 %vm2552_vm4, %v2675_v46  ;;  %v3085_v16 = vld [vmem:[#allocation3 + $0x6a] sm:$0xff] }
 0x2ec   : > { %v1978_v31 = vpop.f32.mrf.mxu2 }
 0x2ed   : > { %v2200_v9 = vpop.f32.mrf.mxu3  ;;  %v2538_v45 = vmax.f32 %v2506_v36, 0.0  ;;  %v2028_v58 = vadd.f32 %v1978_v31, %v6833_v62  ;;  %v2649_v31 = vld [vmem:[#allocation3 + $0x60] sm:$0xff] }
 0x2ee   : > { %v2716_v47 = vld [vmem:[#allocation3 + $0xe1] sm:$0xff]  ;;  %v7172_v18 = vpop.f32.mrf.mxu1 }
 0x2ef   : > { %2627 = vst.msk [vmem:[#allocation3 + $0xf1] sm:$0xff] %vm2552_vm4, %v2538_v45  ;;  %v2738_v29 = vpack.c.bf16 %v2716_v47, %v2715_v33  ;;  %v2250_v13 = vadd.f32 %v2200_v9, %v2028_v58  ;;  %v2677_v45 = vpack.c.bf16 %v2650_v17, %v2649_v31  ;;  %v5935_v47 = vld [vmem:[%s8228_s3 + $0x80] sm:$0xff] }
 0x2f0   : > { %v2419_v52 = vpop.f32.mrf.mxu0  ;;  %3712 = vmatpush.bf16.msrb.mxu1 %v5935_v47 }
 0x2f1   : > { %v2471_v5 = vadd.f32 %v2419_v52, %v2249_v42  ;;  %5594 = vmatmul.msk.bf16.gmra.mxu1 %vm2552_vm4, %v2738_v29  ;;  %v3112_v42 = vpack.c.bf16 %v3085_v16, %v3084_v21  ;;  %v1808_v52 = vadd.f32 %v6853_v37, %v6855_v43 }
 0x2f3   : > { %v2507_v27 = vadd.f32 %v6982_v12, %v2471_v5 }
 0x2f4   : > { %v1980_v7 = vpop.f32.mrf.mxu2 }
 0x2f5   : > { %v2202_v59 = vpop.f32.mrf.mxu3  ;;  %v2539_v1 = vmax.f32 %v2507_v27, 0.0  ;;  %v2029_v56 = vadd.f32 %v1980_v7, %v1806_v49  ;;  %v2652_v49 = vld [vmem:[#allocation3 + $0x80] sm:$0xff] }
 0x2f6   : > { %v7186_v30 = vpop.f32.mrf.mxu1  ;;  %v2717_v0 = vld [vmem:[#allocation3 + $0xf1] sm:$0xff] }
 0x2f7   : > { %2628 = vst.msk [vmem:[#allocation3 + $0xf9] sm:$0xff] %vm2552_vm4, %v2539_v1  ;;  %v2251_v53 = vadd.f32 %v2202_v59, %v2029_v56  ;;  %v3087_v56 = vld [vmem:[#allocation3 + $0x82] sm:$0xff] }
 0x2f8   : > { %v2422_v62 = vpop.f32.mrf.mxu0 }
 0x2f9   : > { %5620 = vmatmul.msk.bf16.gmra.mxu2 %vm2552_vm4, %v7175_v57  ;;  %v2472_v60 = vadd.f32 %v2422_v62, %v2250_v13 }
 0x2fa   : > { %5660 = vmatmul.msk.bf16.gmra.mxu3 %vm2552_vm4, %v3111_v51 }
 0x2fb   : > { %v2508_v15 = vadd.f32 %v6982_v12, %v2472_v60  ;;  %5699 = vmatmul.msk.bf16.gmra.mxu0 %vm2552_vm4, %v7175_v57  ;;  %v3086_v60 = vld [vmem:[#allocation3 + $0x7a] sm:$0xff] }
 0x2fc   : > { %v1983_v4 = vpop.f32.mrf.mxu2 }
 0x2fd   : > { %v2205_v55 = vpop.f32.mrf.mxu3  ;;  %v2540_v50 = vmax.f32 %v2508_v15, 0.0  ;;  %v2030_v38 = vadd.f32 %v1983_v4, %v6848_v24 }
 0x2fe   : > { %v2718_v39 = vld [vmem:[#allocation3 + $0xf9] sm:$0xff]  ;;  %v7191_v40 = vpop.f32.mrf.mxu1 }
 0x2ff   : > { %2629 = vst.msk [vmem:[#allocation3 + $0x109] sm:$0xff] %vm2552_vm4, %v2540_v50  ;;  %v2739_v32 = vpack.c.bf16 %v2718_v39, %v2717_v0  ;;  %v2252_v9 = vadd.f32 %v2205_v55, %v2030_v38  ;;  %v2651_v55 = vld [vmem:[#allocation3 + $0x78] sm:$0xff] }
 0x300   : > { %v2424_v6 = vpop.f32.mrf.mxu0 }
 0x301   : > { %v2473_v14 = vadd.f32 %v2424_v6, %v2251_v53  ;;  %5595 = vmatmul.msk.bf16.gmra.mxu1 %vm2552_vm4, %v2739_v32  ;;  %v2678_v53 = vpack.c.bf16 %v2652_v49, %v2651_v55  ;;  %v3113_v6 = vpack.c.bf16 %v3087_v56, %v3086_v60 }
 0x303   : > { %v2509_v63 = vadd.f32 %v6982_v12, %v2473_v14  ;;  %v1810_v14 = vadd.f32 %v6865_v3, %v6867_v44 }
 0x304   : > { %v1985_v35 = vpop.f32.mrf.mxu2 }
 0x305   : > { %v2207_v46 = vpop.f32.mrf.mxu3  ;;  %v2541_v36 = vmax.f32 %v2509_v63, 0.0  ;;  %v2031_v58 = vadd.f32 %v1985_v35, %v1808_v52  ;;  %v3088_v52 = vld [vmem:[#allocation3 + $0x92] sm:$0xff] }
 0x306   : > { %v7204_v59 = vpop.f32.mrf.mxu1  ;;  %v2719_v19 = vld [vmem:[#allocation3 + $0x109] sm:$0xff] }
 0x307   : > { %2630 = vst.msk [vmem:[#allocation3 + $0x111] sm:$0xff] %vm2552_vm4, %v2541_v36  ;;  %v2253_v43 = vadd.f32 %v2207_v46, %v2031_v58 }
 0x308   : > { %v2427_v24 = vpop.f32.mrf.mxu0 }
 0x309   : > { %5621 = vmatmul.msk.bf16.gmra.mxu2 %vm2552_vm4, %v2677_v45  ;;  %v2474_v5 = vadd.f32 %v2427_v24, %v2252_v9  ;;  %v2654_v24 = vld [vmem:[#allocation3 + $0x98] sm:$0xff] }
 0x30a   : > { %5661 = vmatmul.msk.bf16.gmra.mxu3 %vm2552_vm4, %v3112_v42 }
 0x30b   : > { %v2510_v27 = vadd.f32 %v6982_v12, %v2474_v5  ;;  %5700 = vmatmul.msk.bf16.gmra.mxu0 %vm2552_vm4, %v2677_v45  ;;  %v3089_v5 = vld [vmem:[#allocation3 + $0x9a] sm:$0xff] }
 0x30c   : > { %v1988_v33 = vpop.f32.mrf.mxu2 }
 0x30d   : > { %v2210_v7 = vpop.f32.mrf.mxu3  ;;  %v2542_v37 = vmax.f32 %v2510_v27, 0.0  ;;  %v2032_v8 = vadd.f32 %v1988_v33, %v6860_v10  ;;  %v2653_v27 = vld [vmem:[#allocation3 + $0x90] sm:$0xff] }
 0x30e   : > { %v2720_v11 = vld [vmem:[#allocation3 + $0x111] sm:$0xff]  ;;  %v7209_v15 = vpop.f32.mrf.mxu1 }
 0x30f   : > { %2631 = vst.msk [vmem:[#allocation3 + $0x121] sm:$0xff] %vm2552_vm4, %v2542_v37  ;;  %v2740_v62 = vpack.c.bf16 %v2720_v11, %v2719_v19  ;;  %v2254_v50 = vadd.f32 %v2210_v7, %v2032_v8  ;;  %v7227_v7 = vpack.c.bf16 %v2654_v24, %v2653_v27  ;;  %v3114_v37 = vpack.c.bf16 %v3089_v5, %v3088_v52 }
 0x310   : > { %v2429_v29 = vpop.f32.mrf.mxu0 }
 0x311   : > { %v2475_v2 = vadd.f32 %v2429_v29, %v2253_v43  ;;  %5596 = vmatmul.msk.bf16.gmra.mxu1 %vm2552_vm4, %v2740_v62  ;;  %v1812_v43 = vadd.f32 %v6877_v34, %v6879_v20 }
 0x313   : > { %v2511_v1 = vadd.f32 %v6982_v12, %v2475_v2 }
 0x314   : > { %v1990_v13 = vpop.f32.mrf.mxu2 }
 0x315   : > { %v2212_v51 = vpop.f32.mrf.mxu3  ;;  %v2543_v4 = vmax.f32 %v2511_v1, 0.0  ;;  %v2033_v38 = vadd.f32 %v1990_v13, %v1810_v14 }
 0x316   : > { %v7219_v46 = vpop.f32.mrf.mxu1  ;;  %v2721_v31 = vld [vmem:[#allocation3 + $0x121] sm:$0xff] }
 0x317   : > { %2632 = vst.msk [vmem:[#allocation3 + $0x129] sm:$0xff] %vm2552_vm4, %v2543_v4  ;;  %v2255_v17 = vadd.f32 %v2212_v51, %v2033_v38  ;;  %v2655_v38 = vld [vmem:[#allocation3 + $0xa8] sm:$0xff] }
 0x318   : > { %v2432_v10 = vpop.f32.mrf.mxu0 }
 0x319   : > { %5622 = vmatmul.msk.bf16.gmra.mxu2 %vm2552_vm4, %v2678_v53  ;;  %v2476_v39 = vadd.f32 %v2432_v10, %v2254_v50  ;;  %v3091_v10 = vld [vmem:[#allocation3 + $0xb2] sm:$0xff] }
 0x31a   : > { %5662 = vmatmul.msk.bf16.gmra.mxu3 %vm2552_vm4, %v3113_v6  ;;  %v3090_v6 = vld [vmem:[#allocation3 + $0xaa] sm:$0xff] }
 0x31b   : > { %v2512_v63 = vadd.f32 %v6982_v12, %v2476_v39  ;;  %5701 = vmatmul.msk.bf16.gmra.mxu0 %vm2552_vm4, %v2678_v53  ;;  %v2656_v53 = vld [vmem:[#allocation3 + $0xb0] sm:$0xff] }
 0x31c   : > { %v1993_v0 = vpop.f32.mrf.mxu2 }
 0x31d   : > { %v2215_v35 = vpop.f32.mrf.mxu3  ;;  %v2544_v32 = vmax.f32 %v2512_v63, 0.0  ;;  %v2034_v16 = vadd.f32 %v1993_v0, %v6872_v23  ;;  %v7246_v0 = vpack.c.bf16 %v2656_v53, %v2655_v38 }
 0x31e   : > { %v2722_v44 = vld [vmem:[#allocation3 + $0x129] sm:$0xff]  ;;  %v7224_v47 = vpop.f32.mrf.mxu1 }
 0x31f   : > { %2633 = vst.msk [vmem:[#allocation3 + $0x139] sm:$0xff] %vm2552_vm4, %v2544_v32  ;;  %v2741_v42 = vpack.c.bf16 %v2722_v44, %v2721_v31  ;;  %v2256_v33 = vadd.f32 %v2215_v35, %v2034_v16  ;;  %v3115_v35 = vpack.c.bf16 %v3091_v10, %v3090_v6  ;;  %v5942_v31 = vld [vmem:[%s8228_s3 + $0xb8] sm:$0xff] }
 0x320   : > { %v2434_v21 = vpop.f32.mrf.mxu0  ;;  %3959 = vmatpush.bf16.msra.mxu2 %v5942_v31 }
 0x321   : > { %v2477_v3 = vadd.f32 %v2434_v21, %v2255_v17  ;;  %5597 = vmatmul.msk.bf16.gmra.mxu1 %vm2552_vm4, %v2741_v42  ;;  %v6014_v21 = vld [vmem:[%s8227_s2] ss:$0 sm:$0xff] }
 0x323   : > { %v2513_v36 = vadd.f32 %v6982_v12, %v2477_v3 }
 0x324   : > { %v1995_v9 = vpop.f32.mrf.mxu2 }
 0x325   : > { %v2217_v45 = vpop.f32.mrf.mxu3  ;;  %v2545_v58 = vmax.f32 %v2513_v36, 0.0  ;;  %v2035_v2 = vadd.f32 %v1995_v9, %v1812_v43  ;;  %v5946_v9 = vld [vmem:[%s8228_s3 + $0xd8] sm:$0xff] }
 0x326   : > { %v7238_v19 = vpop.f32.mrf.mxu1  ;;  %v2723_v56 = vld [vmem:[#allocation3 + $0x139] sm:$0xff]  ;;  %4210 = vmatpush.bf16.msra.mxu3 %v5946_v9  ;;  %v3092_v43 = vld [vmem:[#allocation3 + $0xc2] sm:$0xff] }
 0x327   : > { %2634 = vst.msk [vmem:[#allocation3 + $0x141] sm:$0xff] %vm2552_vm4, %v2545_v58  ;;  %v2257_v51 = vadd.f32 %v2217_v45, %v2035_v2 }
 0x328   : > { %v2437_v23 = vpop.f32.mrf.mxu0 }
 0x329   : > { %5623 = vmatmul.msk.bf16.gmra.mxu2 %vm2552_vm4, %v7227_v7  ;;  %v2478_v29 = vadd.f32 %v2437_v23, %v2256_v33  ;;  %v2658_v23 = vld [vmem:[#allocation3 + $0xc8] sm:$0xff] }
 0x32a   : > { %5663 = vmatmul.msk.bf16.gmra.mxu3 %vm2552_vm4, %v3114_v37 }
 0x32b   : > { %v2514_v11 = vadd.f32 %v6982_v12, %v2478_v29  ;;  %5702 = vmatmul.msk.bf16.gmra.mxu0 %vm2552_vm4, %v7227_v7  ;;  %v3093_v29 = vld [vmem:[#allocation3 + $0xca] sm:$0xff] }
 0x32c   : > { %v1998_v8 = vpop.f32.mrf.mxu2 }
 0x32d   : > { %v2220_v1 = vpop.f32.mrf.mxu3  ;;  %v2546_v13 = vmax.f32 %v2514_v11, 0.0  ;;  %v2036_v49 = vadd.f32 %v1998_v8, %v6892_v22  ;;  %v2657_v8 = vld [vmem:[#allocation3 + $0xc0] sm:$0xff] }
 0x32e   : > { %v2724_v62 = vld [vmem:[#allocation3 + $0x141] sm:$0xff]  ;;  %v7243_v14 = vpop.f32.mrf.mxu1 }
 0x32f   : > { %2635 = vst.msk [vmem:[#allocation3 + $0x151] sm:$0xff] %vm2552_vm4, %v2546_v13  ;;  %v2742_v50 = vpack.c.bf16 %v2724_v62, %v2723_v56  ;;  %v2258_v63 = vadd.f32 %v2220_v1, %v2036_v49  ;;  %v7272_v13 = vpack.c.bf16 %v2658_v23, %v2657_v8  ;;  %v5954_v49 = vld [vmem:[%s8228_s3 + $0x118] sm:$0xff]  ;;  %v3097_v8 = vld [vmem:[#allocation3 + $0xfa] sm:$0xff] }
 0x330   : > { %v2439_v34 = vpop.f32.mrf.mxu0  ;;  %4710 = vmatpush.bf16.msra.mxu1 %v5954_v49 }
 0x331   : > { %v2479_v20 = vadd.f32 %v2439_v34, %v2257_v51  ;;  %5598 = vmatmul.msk.bf16.gmra.mxu1 %vm2552_vm4, %v2742_v50  ;;  %v3116_v51 = vpack.c.bf16 %v3093_v29, %v3092_v43  ;;  %v2662_v29 = vld [vmem:[#allocation3 + $0xf8] sm:$0xff] }
 0x333   : > { %v2515_v60 = vadd.f32 %v6982_v12, %v2479_v20  ;;  %v1814_v12 = vadd.f32 %v6913_v54, %v6917_v61  ;;  %v1816_v20 = vadd.f32 %v7150_v48, %v6964_v41 }
 0x334   : > { %v2000_v4 = vpop.f32.mrf.mxu2 }
 0x335   : > { %v2222_v55 = vpop.f32.mrf.mxu3  ;;  %v2547_v39 = vmax.f32 %v2515_v60, 0.0  ;;  %v2037_v17 = vadd.f32 %v2000_v4, %v1814_v12 }
 0x336   : > { %v7259_v36 = vpop.f32.mrf.mxu1  ;;  %v2725_v58 = vld [vmem:[#allocation3 + $0x151] sm:$0xff] }
 0x337   : > { %2636 = vst.msk [vmem:[#allocation3 + $0x159] sm:$0xff] %vm2552_vm4, %v2547_v39  ;;  %v2259_v61 = vadd.f32 %v2222_v55, %v2037_v17  ;;  %v2660_v17 = vld [vmem:[#allocation3 + $0xe0] sm:$0xff] }
 0x338   : > { %v2442_v22 = vpop.f32.mrf.mxu0 }
 0x339   : > { %5624 = vmatmul.msk.bf16.gmra.mxu2 %vm2552_vm4, %v7246_v0  ;;  %v2480_v32 = vadd.f32 %v2442_v22, %v2258_v63 }
 0x33a   : > { %5664 = vmatmul.msk.bf16.gmra.mxu3 %vm2552_vm4, %v3115_v35 }
 0x33b   : > { %v2516_v3 = vadd.f32 %v6014_v21, %v2480_v32  ;;  %5703 = vmatmul.msk.bf16.gmra.mxu0 %vm2552_vm4, %v7246_v0 }
 0x33c   : > { %v2003_v44 = vpop.f32.mrf.mxu2 }
 0x33d   : > { %v2225_v16 = vpop.f32.mrf.mxu3  ;;  %v2548_v54 = vmax.f32 %v2516_v3, 0.0  ;;  %v2038_v52 = vadd.f32 %v2003_v44, %v6942_v26  ;;  %v5950_v26 = vld [vmem:[%s8228_s3 + $0xf8] sm:$0xff]  ;;  %v3094_v3 = vld [vmem:[#allocation3 + $0xda] sm:$0xff] }
 0x33e   : > { %v2726_v24 = vld [vmem:[#allocation3 + $0x159] sm:$0xff]  ;;  %v7269_v2 = vpop.f32.mrf.mxu1  ;;  %4460 = vmatpush.bf16.msra.mxu0 %v5950_v26  ;;  %v3095_v44 = vld [vmem:[#allocation3 + $0xe2] sm:$0xff] }
 0x33f   : > { %2637 = vst.msk [vmem:[#allocation3 + $0x169] sm:$0xff] %vm2552_vm4, %v2548_v54  ;;  %v2743_v37 = vpack.c.bf16 %v2726_v24, %v2725_v58  ;;  %v2260_v1 = vadd.f32 %v2225_v16, %v2038_v52  ;;  %v3576_v26 = vld [vmem:[#allocation3 + $0x19] sm:$0xff] }
 0x340   : > { %v2444_v45 = vpop.f32.mrf.mxu0 }
 0x341   : > { %v2481_v42 = vadd.f32 %v2444_v45, %v2259_v61  ;;  %5599 = vmatmul.msk.bf16.gmra.mxu1 %vm2552_vm4, %v2743_v37  ;;  %v2659_v61 = vld [vmem:[#allocation3 + $0xd8] sm:$0xff]  ;;  %v3117_v45 = vpack.c.bf16 %v3095_v44, %v3094_v3  ;;  %v3577_v37 = vld [vmem:[#allocation3 + $0x21] sm:$0xff] }
 0x342   : > { %v7296_v9 = vpack.c.bf16 %v2660_v17, %v2659_v61  ;;  %v3578_v17 = vld [vmem:[#allocation3 + $0x31] sm:$0xff]  ;;  %v2663_v3 = vld [vmem:[#allocation3 + $0x108] sm:$0xff] }
 0x343   : > { %v2517_v5 = vadd.f32 %v6014_v21, %v2481_v42 }
 0x344   : > { %v2005_v27 = vpop.f32.mrf.mxu2 }
 0x345   : > { %v2227_v33 = vpop.f32.mrf.mxu3  ;;  %v2549_v11 = vmax.f32 %v2517_v5, 0.0  ;;  %v2039_v60 = vadd.f32 %v2005_v27, %v1816_v20  ;;  %v3608_v20 = vpack.c.bf16 %v3577_v37, %v3576_v26 }
 0x346   : > { %v7289_v48 = vpop.f32.mrf.mxu1  ;;  %v2727_v35 = vld [vmem:[#allocation3 + $0x169] sm:$0xff] }
 0x347   : > { %2638 = vst.msk [vmem:[#allocation3 + $0x171] sm:$0xff] %vm2552_vm4, %v2549_v11  ;;  %v2261_v53 = vadd.f32 %v2227_v33, %v2039_v60  ;;  %v3096_v11 = vld [vmem:[#allocation3 + $0xf2] sm:$0xff] }
 0x348   : > { %v2447_v34 = vpop.f32.mrf.mxu0  ;;  %v3118_v49 = vpack.c.bf16 %v3097_v8, %v3096_v11  ;;  %v3100_v11 = vld [vmem:[#allocation3 + $0x122] sm:$0xff]  ;;  %v3101_v8 = vld [vmem:[#allocation3 + $0x12a] sm:$0xff] }
 0x349   : > { %5625 = vmatmul.msk.bf16.gmra.mxu2 %vm2552_vm4, %v7272_v13  ;;  %v2482_v62 = vadd.f32 %v2447_v34, %v2260_v1  ;;  %v2661_v34 = vld [vmem:[#allocation3 + $0xf0] sm:$0xff] }
 0x34a   : > { %5665 = vmatmul.msk.bf16.gmra.mxu3 %vm2552_vm4, %v3116_v51 }
 0x34b   : > { %v2518_v56 = vadd.f32 %v6014_v21, %v2482_v62  ;;  %5704 = vmatmul.msk.bf16.gmra.mxu0 %vm2552_vm4, %v7272_v13  ;;  %v7314_v62 = vpack.c.bf16 %v2662_v29, %v2661_v34  ;;  %v3580_v34 = vld [vmem:[#allocation3 + $0x49] sm:$0xff] }
 0x34c   : > { %v2996_v4 = vpop.f32.mrf.mxu2 }
 0x34d   : > { %v3214_v55 = vpop.f32.mrf.mxu3  ;;  %v2997_v41 = vadd.f32 %v2996_v4, %v7156_v25  ;;  %v2550_v50 = vmax.f32 %v2518_v56, 0.0 }
 0x34e   : > { %v2728_v38 = vld [vmem:[#allocation3 + $0x171] sm:$0xff]  ;;  %v7293_v16 = vpop.f32.mrf.mxu1 }
 0x34f   : > { %v3294_v6 = vadd.f32 %v3214_v55, %v2997_v41  ;;  %2639 = vst.msk [vmem:[#allocation3 + $0x181] sm:$0xff] %vm2552_vm4, %v2550_v50  ;;  %v2744_v32 = vpack.c.bf16 %v2728_v38, %v2727_v35  ;;  %v3098_v35 = vld [vmem:[#allocation3 + $0x10a] sm:$0xff] }
 0x350   : > { %v2449_v10 = vpop.f32.mrf.mxu0 }
 0x351   : > { %v2483_v39 = vadd.f32 %v2449_v10, %v2261_v53  ;;  %5600 = vmatmul.msk.bf16.gmra.mxu1 %vm2552_vm4, %v2744_v32  ;;  %v3579_v10 = vld [vmem:[#allocation3 + $0x39] sm:$0xff] }
 0x352   : > { %v7332_v44 = vpack.c.bf16 %v3579_v10, %v3578_v17 }
 0x353   : > { %v2519_v63 = vadd.f32 %v6014_v21, %v2483_v39 }
 0x354   : > { %v2998_v22 = vpop.f32.mrf.mxu2 }
 0x355   : > { %v3216_v12 = vpop.f32.mrf.mxu3  ;;  %v2999_v25 = vadd.f32 %v2998_v22, %v7167_v28  ;;  %v2551_v54 = vmax.f32 %v2519_v63, 0.0  ;;  %v2664_v63 = vld [vmem:[#allocation3 + $0x110] sm:$0xff] }
 0x356   : > { %v7307_v5 = vpop.f32.mrf.mxu1  ;;  %v3099_v22 = vld [vmem:[#allocation3 + $0x112] sm:$0xff] }
 0x357   : > { %v3295_v31 = vadd.f32 %v3216_v12, %v2999_v25  ;;  %2640 = vst.msk [vmem:[#allocation3 + $0x189] sm:$0xff] %vm2552_vm4, %v2551_v54  ;;  %v7334_v25 = vpack.c.bf16 %v2664_v63, %v2663_v3  ;;  %v7336_v54 = vpack.c.bf16 %v3099_v22, %v3098_v35 }
 0x358   : > { %v3464_v21 = vpop.f32.mrf.mxu0 }
 0x359   : > { %5626 = vmatmul.msk.bf16.gmra.mxu2 %vm2552_vm4, %v7296_v9  ;;  %v7302_v42 = vadd.f32 %v3464_v21, %v3294_v6 }
 0x35a   : > { %5666 = vmatmul.msk.bf16.gmra.mxu3 %vm2552_vm4, %v3117_v45 }
 0x35b   : > { %5705 = vmatmul.msk.bf16.gmra.mxu0 %vm2552_vm4, %v7296_v9 }
 0x35c   : > { %v3001_v28 = vpop.f32.mrf.mxu2 }
 0x35d   : > { %v3219_v24 = vpop.f32.mrf.mxu3  ;;  %v3002_v52 = vadd.f32 %v3001_v28, %v7172_v18 }
 0x35e   : > { %v7312_v51 = vpop.f32.mrf.mxu1 }
 0x35f   : > { %v3296_v58 = vadd.f32 %v3219_v24, %v3002_v52  ;;  %v5941_v52 = vld [vmem:[%s8228_s3 + $0xb0] sm:$0xff] }
 0x360   : > { %v3466_v27 = vpop.f32.mrf.mxu0  ;;  %3960 = vmatpush.bf16.msra.mxu2 %v5941_v52  ;;  %v2667_v52 = vld [vmem:[#allocation3 + $0x138] sm:$0xff] }
 0x361   : > { %v7309_v33 = vadd.f32 %v3466_v27, %v3295_v31  ;;  %5737 = vmatmul.msk.bf16.vlgmr.msrb.gmra.mxu1 %vm2552_vm4, %v3608_v20  ;;  %v2665_v20 = vld [vmem:[#allocation3 + $0x120] sm:$0xff] }
 0x364   : > { %v3003_v23 = vpop.f32.mrf.mxu2 }
 0x365   : > { %v3221_v43 = vpop.f32.mrf.mxu3  ;;  %v3004_v1 = vadd.f32 %v3003_v23, %v7186_v30  ;;  %v3581_v23 = vld [vmem:[#allocation3 + $0x51] sm:$0xff] }
 0x366   : > { %v7325_v41 = vpop.f32.mrf.mxu1 }
 0x367   : > { %v3297_v18 = vadd.f32 %v3221_v43, %v3004_v1 }
 0x368   : > { %v3469_v60 = vpop.f32.mrf.mxu0 }
 0x369   : > { %5627 = vmatmul.msk.bf16.gmra.mxu2 %vm2552_vm4, %v7314_v62  ;;  %v7320_v56 = vadd.f32 %v3469_v60, %v3296_v58  ;;  %v5945_v58 = vld [vmem:[%s8228_s3 + $0xd0] sm:$0xff] }
 0x36a   : > { %5667 = vmatmul.msk.bf16.gmra.mxu3 %vm2552_vm4, %v3118_v49 }
 0x36b   : > { %5706 = vmatmul.msk.bf16.gmra.mxu0 %vm2552_vm4, %v7314_v62  ;;  %4211 = vmatpush.bf16.msra.mxu3 %v5945_v58 }
 0x36c   : > { %v3006_v30 = vpop.f32.mrf.mxu2 }
 0x36d   : > { %v3224_v4 = vpop.f32.mrf.mxu3  ;;  %v3007_v55 = vadd.f32 %v3006_v30, %v7191_v40  ;;  %v3120_v30 = vpack.c.bf16 %v3101_v8, %v3100_v11 }
 0x36e   : > { %v7330_v32 = vpop.f32.mrf.mxu1 }
 0x36f   : > { %v3298_v50 = vadd.f32 %v3224_v4, %v3007_v55  ;;  %v5949_v4 = vld [vmem:[%s8228_s3 + $0xf0] sm:$0xff] }
 0x370   : > { %v3471_v53 = vpop.f32.mrf.mxu0  ;;  %4461 = vmatpush.bf16.msra.mxu0 %v5949_v4  ;;  %v3585_v4 = vld [vmem:[#allocation3 + $0x81] sm:$0xff] }
 0x371   : > { %v7327_v6 = vadd.f32 %v3471_v53, %v3297_v18  ;;  %5738 = vmatmul.msk.bf16.gmra.mxu1 %vm2552_vm4, %v7332_v44  ;;  %v7362_v18 = vpack.c.bf16 %v3581_v23, %v3580_v34  ;;  %v5940_v34 = vld [vmem:[%s8228_s3 + $0xa8] sm:$0xff] }
 0x372   : > { %3961 = vmatpush.bf16.msra.mxu2 %v5940_v34  ;;  %v3587_v34 = vld [vmem:[#allocation3 + $0x99] sm:$0xff] }
 0x374   : > { %v3008_v39 = vpop.f32.mrf.mxu2 }
 0x375   : > { %v3226_v38 = vpop.f32.mrf.mxu3  ;;  %v3009_v12 = vadd.f32 %v3008_v39, %v7204_v59 }
 0x376   : > { %v7349_v28 = vpop.f32.mrf.mxu1 }
 0x377   : > { %v3299_v40 = vadd.f32 %v3226_v38, %v3009_v12  ;;  %v3583_v12 = vld [vmem:[#allocation3 + $0x69] sm:$0xff] }
 0x378   : > { %v3474_v61 = vpop.f32.mrf.mxu0 }
 0x379   : > { %5628 = vmatmul.msk.bf16.gmra.mxu2 %vm2552_vm4, %v7334_v25  ;;  %v7344_v59 = vadd.f32 %v3474_v61, %v3298_v50  ;;  %v5953_v50 = vld [vmem:[%s8228_s3 + $0x110] sm:$0xff] }
 0x37a   : > { %5668 = vmatmul.msk.bf16.gmra.mxu3 %vm2552_vm4, %v7336_v54  ;;  %4711 = vmatpush.bf16.msra.mxu1 %v5953_v50  ;;  %v3102_v61 = vld [vmem:[#allocation3 + $0x13a] sm:$0xff] }
 0x37b   : > { %5707 = vmatmul.msk.bf16.gmra.mxu0 %vm2552_vm4, %v7334_v25 }
 0x37c   : > { %v3011_v31 = vpop.f32.mrf.mxu2 }
 0x37d   : > { %v3229_v45 = vpop.f32.mrf.mxu3  ;;  %v3012_v21 = vadd.f32 %v3011_v31, %v7209_v15  ;;  %v2666_v15 = vld [vmem:[#allocation3 + $0x128] sm:$0xff] }
 0x37e   : > { %v7360_v26 = vpop.f32.mrf.mxu1  ;;  %v7364_v60 = vpack.c.bf16 %v2666_v15, %v2665_v20  ;;  %v3103_v31 = vld [vmem:[#allocation3 + $0x142] sm:$0xff]  ;;  %v5944_v20 = vld [vmem:[%s8228_s3 + $0xc8] sm:$0xff] }
 0x37f   : > { %v3300_v24 = vadd.f32 %v3229_v45, %v3012_v21  ;;  %v3121_v23 = vpack.c.bf16 %v3103_v31, %v3102_v61  ;;  %4212 = vmatpush.bf16.msra.mxu3 %v5944_v20  ;;  %v5939_v31 = vld [vmem:[%s8228_s3 + $0xa0] sm:$0xff] }
 0x380   : > { %v3476_v27 = vpop.f32.mrf.mxu0  ;;  %3962 = vmatpush.bf16.msra.mxu2 %v5939_v31 }
 0x381   : > { %v7357_v37 = vadd.f32 %v3476_v27, %v3299_v40  ;;  %5739 = vmatmul.msk.bf16.gmra.mxu1 %vm2552_vm4, %v7362_v18  ;;  %v2668_v40 = vld [vmem:[#allocation3 + $0x140] sm:$0xff] }
 0x382   : > { %v7391_v27 = vpack.c.bf16 %v2668_v40, %v2667_v52 }
 0x384   : > { %v3013_v43 = vpop.f32.mrf.mxu2  ;;  %8266 = vst [vmem:[#allocation8_spill] sm:$0xff] %v7391_v27 }
 0x385   : > { %v3231_v29 = vpop.f32.mrf.mxu3  ;;  %v3014_v1 = vadd.f32 %v3013_v43, %v7219_v46 }
 0x386   : > { %v7382_v38 = vpop.f32.mrf.mxu1 }
 0x387   : > { %v3301_v49 = vadd.f32 %v3231_v29, %v3014_v1 }
 0x388   : > { %v3479_v55 = vpop.f32.mrf.mxu0 }
 0x389   : > { %5629 = vmatmul.msk.bf16.gmra.mxu2 %vm2552_vm4, %v7364_v60  ;;  %v7374_v46 = vadd.f32 %v3479_v55, %v3300_v24  ;;  %v3582_v24 = vld [vmem:[#allocation3 + $0x61] sm:$0xff] }
 0x38a   : > { %5669 = vmatmul.msk.bf16.gmra.mxu3 %vm2552_vm4, %v3120_v30  ;;  %v7389_v58 = vpack.c.bf16 %v3583_v12, %v3582_v24  ;;  %v2669_v12 = vld [vmem:[#allocation3 + $0x150] sm:$0xff] }
 0x38b   : > { %5708 = vmatmul.msk.bf16.gmra.mxu0 %vm2552_vm4, %v7364_v60 }
 0x38c   : > { %v3016_v53 = vpop.f32.mrf.mxu2 }
 0x38d   : > { %v3234_v10 = vpop.f32.mrf.mxu3  ;;  %v3017_v39 = vadd.f32 %v3016_v53, %v7224_v47  ;;  %v3104_v53 = vld [vmem:[#allocation3 + $0x152] sm:$0xff] }
 0x38e   : > { %v7387_v21 = vpop.f32.mrf.mxu1 }
 0x38f   : > { %v3302_v63 = vadd.f32 %v3234_v10, %v3017_v39  ;;  %v3105_v10 = vld [vmem:[#allocation3 + $0x15a] sm:$0xff] }
 0x390   : > { %v3481_v35 = vpop.f32.mrf.mxu0  ;;  %v7420_v61 = vpack.c.bf16 %v3105_v10, %v3104_v53  ;;  %v3586_v53 = vld [vmem:[#allocation3 + $0x91] sm:$0xff]  ;;  %v2671_v10 = vld [vmem:[#allocation3 + $0x168] sm:$0xff] }
 0x391   : > { %v7384_v22 = vadd.f32 %v3481_v35, %v3301_v49  ;;  %5740 = vmatmul.msk.bf16.gmra.mxu1 %vm2552_vm4, %v7389_v58  ;;  %v3584_v35 = vld [vmem:[#allocation3 + $0x79] sm:$0xff] }
 0x392   : > { %8268 = vst [vmem:[#allocation12_spill] sm:$0xff] %v7420_v61 }
 0x394   : > { %v3018_v17 = vpop.f32.mrf.mxu2 }
 0x395   : > { %v3236_v3 = vpop.f32.mrf.mxu3  ;;  %v3019_v45 = vadd.f32 %v3018_v17, %v7238_v19  ;;  %v7416_v17 = vpack.c.bf16 %v3585_v4, %v3584_v35  ;;  %v3106_v4 = vld [vmem:[#allocation3 + $0x16a] sm:$0xff] }
 0x396   : > { %v7403_v8 = vpop.f32.mrf.mxu1 }
 0x397   : > { %v3303_v47 = vadd.f32 %v3236_v3, %v3019_v45  ;;  %v5943_v45 = vld [vmem:[%s8228_s3 + $0xc0] sm:$0xff] }
 0x398   : > { %v3484_v43 = vpop.f32.mrf.mxu0  ;;  %4213 = vmatpush.bf16.msra.mxu3 %v5943_v45 }
 0x399   : > { %5630 = vmatmul.msk.bf16.gmra.mxu2 %vm2552_vm4, %v7391_v27  ;;  %v7398_v19 = vadd.f32 %v3484_v43, %v3302_v63 }
 0x39a   : > { %5670 = vmatmul.msk.bf16.gmra.mxu3 %vm2552_vm4, %v3121_v23 }
 0x39b   : > { %5709 = vmatmul.msk.bf16.gmra.mxu0 %vm2552_vm4, %v7391_v27 }
 0x39c   : > { %v3021_v29 = vpop.f32.mrf.mxu2 }
 0x39d   : > { %v3239_v15 = vpop.f32.mrf.mxu3  ;;  %v3022_v11 = vadd.f32 %v3021_v29, %v7243_v14  ;;  %v2670_v14 = vld [vmem:[#allocation3 + $0x158] sm:$0xff] }
 0x39e   : > { %v7414_v63 = vpop.f32.mrf.mxu1  ;;  %v7418_v40 = vpack.c.bf16 %v2670_v14, %v2669_v12 }
 0x39f   : > { %v3304_v1 = vadd.f32 %v3239_v15, %v3022_v11 }
 0x3a0   : > { %v3486_v49 = vpop.f32.mrf.mxu0  ;;  %8267 = vst [vmem:[#allocation9_spill] sm:$0xff] %v7418_v40 }
 0x3a1   : > { %v7411_v30 = vadd.f32 %v3486_v49, %v3303_v47  ;;  %5741 = vmatmul.msk.bf16.gmra.mxu1 %vm2552_vm4, %v7416_v17 }
 0x3a4   : > { %v3023_v55 = vpop.f32.mrf.mxu2 }
 0x3a5   : > { %v3241_v50 = vpop.f32.mrf.mxu3  ;;  %v3024_v39 = vadd.f32 %v3023_v55, %v7259_v36  ;;  %v3107_v55 = vld [vmem:[#allocation3 + $0x172] sm:$0xff] }
 0x3a6   : > { %v7439_v43 = vpop.f32.mrf.mxu1  ;;  %v7450_v12 = vpack.c.bf16 %v3107_v55, %v3106_v4  ;;  %v3826_v4 = vld [vmem:[#allocation3 + $0x1a] sm:$0xff] }
 0x3a7   : > { %v3305_v3 = vadd.f32 %v3241_v50, %v3024_v39  ;;  %v7446_v39 = vpack.c.bf16 %v3587_v34, %v3586_v53  ;;  %v4078_v55 = vld [vmem:[#allocation3 + $0x38] sm:$0xff] }
 0x3a8   : > { %v3489_v36 = vpop.f32.mrf.mxu0  ;;  %8270 = vst [vmem:[#allocation11_spill] sm:$0xff] %v7450_v12 }
 0x3a9   : > { %5631 = vmatmul.msk.bf16.gmra.mxu2 %vm2552_vm4, %v7418_v40  ;;  %v7434_v24 = vadd.f32 %v3489_v36, %v3304_v1  ;;  %v2672_v1 = vld [vmem:[#allocation3 + $0x170] sm:$0xff] }
 0x3aa   : > { %5671 = vmatmul.msk.bf16.gmra.mxu3 %vm2552_vm4, %v7420_v61  ;;  %v7448_v35 = vpack.c.bf16 %v2672_v1, %v2671_v10  ;;  %v3588_v10 = vld [vmem:[#allocation3 + $0xa9] sm:$0xff] }
 0x3ab   : > { %5710 = vmatmul.msk.bf16.gmra.mxu0 %vm2552_vm4, %v7418_v40 }
 0x3ac   : > { %v3026_v52 = vpop.f32.mrf.mxu2  ;;  %8269 = vst [vmem:[#allocation10_spill] sm:$0xff] %v7448_v35 }
 0x3ad   : > { %v3244_v47 = vpop.f32.mrf.mxu3  ;;  %v3027_v23 = vadd.f32 %v3026_v52, %v7269_v2 }
 0x3ae   : > { %v7444_v14 = vpop.f32.mrf.mxu1 }
 0x3af   : > { %v3306_v29 = vadd.f32 %v3244_v47, %v3027_v23  ;;  %v5948_v47 = vld [vmem:[%s8228_s3 + $0xe8] sm:$0xff] }
 0x3b0   : > { %v3491_v15 = vpop.f32.mrf.mxu0  ;;  %4462 = vmatpush.bf16.msra.mxu0 %v5948_v47 }
 0x3b1   : > { %v7441_v11 = vadd.f32 %v3491_v15, %v3305_v3  ;;  %5742 = vmatmul.msk.bf16.gmra.mxu1 %vm2552_vm4, %v7446_v39 }
 0x3b4   : > { %v3028_v20 = vpop.f32.mrf.mxu2 }
 0x3b5   : > { %v3246_v49 = vpop.f32.mrf.mxu3  ;;  %v3029_v50 = vadd.f32 %v3028_v20, %v7289_v48  ;;  %v3589_v20 = vld [vmem:[#allocation3 + $0xb1] sm:$0xff] }
 0x3b6   : > { %v7463_v52 = vpop.f32.mrf.mxu1 }
 0x3b7   : > { %v3307_v2 = vadd.f32 %v3246_v49, %v3029_v50 }
 0x3b8   : > { %v3494_v3 = vpop.f32.mrf.mxu0 }
 0x3b9   : > { %5632 = vmatmul.msk.bf16.gmra.mxu2 %vm2552_vm4, %v7448_v35  ;;  %v7458_v48 = vadd.f32 %v3494_v3, %v3306_v29  ;;  %v5947_v29 = vld [vmem:[%s8228_s3 + $0xe0] sm:$0xff]  ;;  %v7476_v3 = vpack.c.bf16 %v3589_v20, %v3588_v10  ;;  %v5952_v20 = vld [vmem:[%s8228_s3 + $0x108] sm:$0xff] }
 0x3ba   : > { %5672 = vmatmul.msk.bf16.gmra.mxu3 %vm2552_vm4, %v7450_v12  ;;  %4463 = vmatpush.bf16.msra.mxu0 %v5947_v29  ;;  %v3356_v12 = vld [vmem:[#allocation3 + $0x180] sm:$0xff] }
 0x3bb   : > { %5711 = vmatmul.msk.bf16.gmra.mxu0 %vm2552_vm4, %v7448_v35  ;;  %4712 = vmatpush.bf16.msra.mxu1 %v5952_v20  ;;  %v3590_v20 = vld [vmem:[#allocation3 + $0xc1] sm:$0xff] }
 0x3bc   : > { %v3031_v31 = vpop.f32.mrf.mxu2 }
 0x3bd   : > { %v3249_v45 = vpop.f32.mrf.mxu3  ;;  %v3032_v36 = vadd.f32 %v3031_v31, %v7293_v16  ;;  %v3827_v16 = vld [vmem:[#allocation3 + $0x22] sm:$0xff]  ;;  %v4077_v31 = vld [vmem:[#allocation3 + $0x30] sm:$0xff] }
 0x3be   : > { %v7474_v53 = vpop.f32.mrf.mxu1  ;;  %v3858_v47 = vpack.c.bf16 %v3827_v16, %v3826_v4 }
 0x3bf   : > { %v3308_v23 = vadd.f32 %v3249_v45, %v3032_v36  ;;  %v3357_v45 = vld [vmem:[#allocation3 + $0x188] sm:$0xff] }
 0x3c0   : > { %v3496_v15 = vpop.f32.mrf.mxu0  ;;  %v7484_v29 = vpack.c.bf16 %v3357_v45, %v3356_v12  ;;  %v3591_v12 = vld [vmem:[#allocation3 + $0xc9] sm:$0xff]  ;;  %v3828_v45 = vld [vmem:[#allocation3 + $0x32] sm:$0xff] }
 0x3c1   : > { %v7471_v34 = vadd.f32 %v3496_v15, %v3307_v2  ;;  %v4109_v2 = vpack.c.bf16 %v4078_v55, %v4077_v31  ;;  %5743 = vmatmul.msk.bf16.gmra.mxu1 %vm2552_vm4, %v7476_v3 }
 0x3c2   : > { %8271 = vst [vmem:[#allocation13_spill] sm:$0xff] %v7484_v29 }
 0x3c4   : > { %v3033_v49 = vpop.f32.mrf.mxu2 }
 0x3c5   : > { %v3251_v1 = vpop.f32.mrf.mxu3  ;;  %v3034_v50 = vadd.f32 %v3033_v49, %v7307_v5 }
 0x3c6   : > { %v7492_v16 = vpop.f32.mrf.mxu1 }
 0x3c7   : > { %v3309_v36 = vadd.f32 %v3251_v1, %v3034_v50 }
 0x3c8   : > { %v3499_v15 = vpop.f32.mrf.mxu0 }
 0x3c9   : > { %5777 = vmatmul.msk.bf16.vlgmr.msra.gmra.mxu2 %vm2552_vm4, %v3858_v47  ;;  %v7482_v5 = vadd.f32 %v3499_v15, %v3308_v23  ;;  %v3829_v47 = vld [vmem:[#allocation3 + $0x3a] sm:$0xff] }
 0x3ca   : > { %5817 = vmatmul.msk.bf16.vlgmr.msra.gmra.mxu3 %vm2552_vm4, %v4109_v2 }
 0x3cb   : > { %5712 = vmatmul.msk.bf16.gmra.mxu0 %vm2552_vm4, %v7484_v29  ;;  %v7499_v29 = vpack.c.bf16 %v3591_v12, %v3590_v20  ;;  %v3830_v20 = vld [vmem:[#allocation3 + $0x4a] sm:$0xff] }
 0x3cc   : > { %v3036_v49 = vpop.f32.mrf.mxu2 }
 0x3cd   : > { %v3254_v1 = vpop.f32.mrf.mxu3  ;;  %v3037_v4 = vadd.f32 %v3036_v49, %v7312_v51  ;;  %v7501_v51 = vpack.c.bf16 %v3829_v47, %v3828_v45  ;;  %v3593_v45 = vld [vmem:[#allocation3 + $0xe1] sm:$0xff] }
 0x3ce   : > { %v7497_v15 = vpop.f32.mrf.mxu1 }
 0x3cf   : > { %v3310_v55 = vadd.f32 %v3254_v1, %v3037_v4 }
 0x3d0   : > { %v3501_v50 = vpop.f32.mrf.mxu0 }
 0x3d1   : > { %v7494_v23 = vadd.f32 %v3501_v50, %v3309_v36  ;;  %5744 = vmatmul.msk.bf16.gmra.mxu1 %vm2552_vm4, %v7499_v29 }
 0x3d4   : > { %v3038_v10 = vpop.f32.mrf.mxu2 }
 0x3d5   : > { %v3256_v31 = vpop.f32.mrf.mxu3  ;;  %v3039_v2 = vadd.f32 %v3038_v10, %v7325_v41 }
 0x3d6   : > { %v7514_v50 = vpop.f32.mrf.mxu1 }
 0x3d7   : > { %v3311_v35 = vadd.f32 %v3256_v31, %v3039_v2 }
 0x3d8   : > { %v3504_v36 = vpop.f32.mrf.mxu0 }
 0x3d9   : > { %5778 = vmatmul.msk.bf16.gmra.mxu2 %vm2552_vm4, %v7501_v51  ;;  %v7509_v49 = vadd.f32 %v3504_v36, %v3310_v55  ;;  %v4082_v55 = vld [vmem:[#allocation3 + $0x68] sm:$0xff] }
 0x3da   : > { %5818 = vmatmul.msk.bf16.gmra.mxu3 %vm2552_vm4, %v7175_v57  ;;  %v3831_v57 = vld [vmem:[#allocation3 + $0x52] sm:$0xff] }
 0x3db   : > { %5857 = vmatmul.msk.bf16.vlgmr.msra.gmra.mxu0 %vm2552_vm4, %v7332_v44  ;;  %v3592_v44 = vld [vmem:[#allocation3 + $0xd9] sm:$0xff] }
 0x3dc   : > { %v3041_v41 = vpop.f32.mrf.mxu2 }
 0x3dd   : > { %v3259_v1 = vpop.f32.mrf.mxu3  ;;  %v3042_v4 = vadd.f32 %v3041_v41, %v7330_v32  ;;  %v7522_v32 = vpack.c.bf16 %v3593_v45, %v3592_v44  ;;  %v4081_v41 = vld [vmem:[#allocation3 + $0x60] sm:$0xff] }
 0x3de   : > { %v3714_v61 = vpop.f32.mrf.mxu1 }
 0x3df   : > { %v3312_v12 = vadd.f32 %v3259_v1, %v3042_v4  ;;  %v7520_v40 = vadd.f32 %v3714_v61, %v7302_v42  ;;  %v7524_v4 = vpack.c.bf16 %v3831_v57, %v3830_v20 }
 0x3e0   : > { %v3506_v10 = vpop.f32.mrf.mxu0 }
 0x3e1   : > { %v7516_v31 = vadd.f32 %v3506_v10, %v3311_v35  ;;  %8272 = vst [vmem:[#allocation14_spill] sm:$0xff] %v7524_v4  ;;  %v4111_v35 = vpack.c.bf16 %v4082_v55, %v4081_v41  ;;  %5745 = vmatmul.msk.bf16.gmra.mxu1 %vm2552_vm4, %v7522_v32 }
 0x3e4   : > { %v3043_v47 = vpop.f32.mrf.mxu2 }
 0x3e5   : > { %v3261_v2 = vpop.f32.mrf.mxu3  ;;  %v3044_v36 = vadd.f32 %v3043_v47, %v7349_v28 }
 0x3e6   : > { %v3716_v47 = vpop.f32.mrf.mxu1 }
 0x3e7   : > { %v3313_v1 = vadd.f32 %v3261_v2, %v3044_v36  ;;  %v7537_v2 = vadd.f32 %v3716_v47, %v7309_v33  ;;  %v3595_v36 = vld [vmem:[#allocation3 + $0xf9] sm:$0xff] }
 0x3e8   : > { %v3509_v10 = vpop.f32.mrf.mxu0  ;;  %v4083_v33 = vld [vmem:[#allocation3 + $0x78] sm:$0xff] }
 0x3e9   : > { %5779 = vmatmul.msk.bf16.gmra.mxu2 %vm2552_vm4, %v7524_v4  ;;  %v7531_v28 = vadd.f32 %v3509_v10, %v3312_v12  ;;  %v3832_v12 = vld [vmem:[#allocation3 + $0x62] sm:$0xff]  ;;  %v3594_v4 = vld [vmem:[#allocation3 + $0xf1] sm:$0xff] }
 0x3ea   : > { %5819 = vmatmul.msk.bf16.gmra.mxu3 %vm2552_vm4, %v4111_v35  ;;  %v3833_v35 = vld [vmem:[#allocation3 + $0x6a] sm:$0xff]  ;;  %v4084_v10 = vld [vmem:[#allocation3 + $0x80] sm:$0xff] }
 0x3eb   : > { %5858 = vmatmul.msk.bf16.gmra.mxu0 %vm2552_vm4, %v7362_v18 }
 0x3ec   : > { %v3046_v42 = vpop.f32.mrf.mxu2 }
 0x3ed   : > { %v3264_v61 = vpop.f32.mrf.mxu3  ;;  %v3047_v45 = vadd.f32 %v3046_v42, %v7360_v26  ;;  %v7545_v42 = vpack.c.bf16 %v3595_v36, %v3594_v4 }
 0x3ee   : > { %v3719_v27 = vpop.f32.mrf.mxu1 }
 0x3ef   : > { %v3314_v20 = vadd.f32 %v3264_v61, %v3047_v45  ;;  %v7543_v26 = vadd.f32 %v3719_v27, %v7320_v56  ;;  %v7547_v45 = vpack.c.bf16 %v3833_v35, %v3832_v12  ;;  %v3597_v35 = vld [vmem:[#allocation3 + $0x111] sm:$0xff] }
 0x3f0   : > { %v3511_v57 = vpop.f32.mrf.mxu0 }
 0x3f1   : > { %v7539_v55 = vadd.f32 %v3511_v57, %v3313_v1  ;;  %8273 = vst [vmem:[#allocation15_spill] sm:$0xff] %v7547_v45  ;;  %v4112_v1 = vpack.c.bf16 %v4084_v10, %v4083_v33  ;;  %5746 = vmatmul.msk.bf16.gmra.mxu1 %vm2552_vm4, %v7545_v42  ;;  %v3835_v33 = vld [vmem:[#allocation3 + $0x82] sm:$0xff] }
 0x3f4   : > { %v3048_v44 = vpop.f32.mrf.mxu2 }
 0x3f5   : > { %v3266_v41 = vpop.f32.mrf.mxu3  ;;  %v3049_v18 = vadd.f32 %v3048_v44, %v7382_v38 }
 0x3f6   : > { %v3721_v57 = vpop.f32.mrf.mxu1 }
 0x3f7   : > { %v3315_v61 = vadd.f32 %v3266_v41, %v3049_v18  ;;  %v7560_v36 = vadd.f32 %v3721_v57, %v7327_v6 }
 0x3f8   : > { %v3514_v47 = vpop.f32.mrf.mxu0 }
 0x3f9   : > { %5780 = vmatmul.msk.bf16.gmra.mxu2 %vm2552_vm4, %v7547_v45  ;;  %v7554_v38 = vadd.f32 %v3514_v47, %v3314_v20  ;;  %v3834_v20 = vld [vmem:[#allocation3 + $0x7a] sm:$0xff]  ;;  %v3596_v47 = vld [vmem:[#allocation3 + $0x109] sm:$0xff] }
 0x3fa   : > { %5820 = vmatmul.msk.bf16.gmra.mxu3 %vm2552_vm4, %v4112_v1 }
 0x3fb   : > { %5859 = vmatmul.msk.bf16.gmra.mxu0 %vm2552_vm4, %v7389_v58 }
 0x3fc   : > { %v3051_v56 = vpop.f32.mrf.mxu2 }
 0x3fd   : > { %v3269_v27 = vpop.f32.mrf.mxu3  ;;  %v3052_v4 = vadd.f32 %v3051_v56, %v7387_v21  ;;  %v7568_v21 = vpack.c.bf16 %v3597_v35, %v3596_v47  ;;  %v7570_v56 = vpack.c.bf16 %v3835_v33, %v3834_v20 }
 0x3fe   : > { %v3724_v58 = vpop.f32.mrf.mxu1 }
 0x3ff   : > { %v3316_v44 = vadd.f32 %v3269_v27, %v3052_v4  ;;  %v7566_v45 = vadd.f32 %v3724_v58, %v7344_v59  ;;  %v5951_v59 = vld [vmem:[%s8228_s3 + $0x100] sm:$0xff]  ;;  %v3837_v58 = vld [vmem:[#allocation3 + $0x9a] sm:$0xff] }
 0x400   : > { %v3516_v41 = vpop.f32.mrf.mxu0  ;;  %4713 = vmatpush.bf16.msra.mxu1 %v5951_v59 }
 0x401   : > { %v7562_v12 = vadd.f32 %v3516_v41, %v3315_v61  ;;  %5747 = vmatmul.msk.bf16.gmra.mxu1 %vm2552_vm4, %v7568_v21 }
 0x404   : > { %v3053_v10 = vpop.f32.mrf.mxu2 }
 0x405   : > { %v3271_v18 = vpop.f32.mrf.mxu3  ;;  %v3054_v1 = vadd.f32 %v3053_v10, %v7403_v8 }
 0x406   : > { %v3726_v41 = vpop.f32.mrf.mxu1 }
 0x407   : > { %v3317_v6 = vadd.f32 %v3271_v18, %v3054_v1  ;;  %v7587_v35 = vadd.f32 %v3726_v41, %v7357_v37  ;;  %v3599_v18 = vld [vmem:[#allocation3 + $0x129] sm:$0xff]  ;;  %v3836_v1 = vld [vmem:[#allocation3 + $0x92] sm:$0xff] }
 0x408   : > { %v3519_v61 = vpop.f32.mrf.mxu0 }
 0x409   : > { %5781 = vmatmul.msk.bf16.gmra.mxu2 %vm2552_vm4, %v7570_v56  ;;  %v7578_v8 = vadd.f32 %v3519_v61, %v3316_v44  ;;  %v3598_v61 = vld [vmem:[#allocation3 + $0x121] sm:$0xff] }
 0x40a   : > { %5821 = vmatmul.msk.bf16.gmra.mxu3 %vm2552_vm4, %v7227_v7 }
 0x40b   : > { %5860 = vmatmul.msk.bf16.gmra.mxu0 %vm2552_vm4, %v7416_v17 }
 0x40c   : > { %v3056_v27 = vpop.f32.mrf.mxu2 }
 0x40d   : > { %v3274_v4 = vpop.f32.mrf.mxu3  ;;  %v3057_v57 = vadd.f32 %v3056_v27, %v7414_v63  ;;  %v7595_v63 = vpack.c.bf16 %v3599_v18, %v3598_v61  ;;  %v7597_v27 = vpack.c.bf16 %v3837_v58, %v3836_v1  ;;  %v3601_v1 = vld [vmem:[#allocation3 + $0x141] sm:$0xff]  ;;  %v3600_v61 = vld [vmem:[#allocation3 + $0x139] sm:$0xff] }
 0x40e   : > { %v3729_v47 = vpop.f32.mrf.mxu1 }
 0x40f   : > { %v3318_v10 = vadd.f32 %v3274_v4, %v3057_v57  ;;  %v7593_v59 = vadd.f32 %v3729_v47, %v7374_v46 }
 0x410   : > { %v3521_v7 = vpop.f32.mrf.mxu0 }
 0x411   : > { %v7589_v44 = vadd.f32 %v3521_v7, %v3317_v6  ;;  %5748 = vmatmul.msk.bf16.gmra.mxu1 %vm2552_vm4, %v7595_v63 }
 0x414   : > { %v3058_v20 = vpop.f32.mrf.mxu2 }
 0x415   : > { %v3276_v33 = vpop.f32.mrf.mxu3  ;;  %v3059_v17 = vadd.f32 %v3058_v20, %v7439_v43 }
 0x416   : > { %v3731_v41 = vpop.f32.mrf.mxu1 }
 0x417   : > { %v3319_v37 = vadd.f32 %v3276_v33, %v3059_v17  ;;  %v7611_v7 = vadd.f32 %v3731_v41, %v7384_v22  ;;  %v3839_v17 = vld [vmem:[#allocation3 + $0xb2] sm:$0xff] }
 0x418   : > { %v3524_v6 = vpop.f32.mrf.mxu0 }
 0x419   : > { %5782 = vmatmul.msk.bf16.gmra.mxu2 %vm2552_vm4, %v7597_v27  ;;  %v7605_v43 = vadd.f32 %v3524_v6, %v3318_v10  ;;  %v3838_v10 = vld [vmem:[#allocation3 + $0xaa] sm:$0xff] }
 0x41a   : > { %5822 = vmatmul.msk.bf16.gmra.mxu3 %vm2552_vm4, %v7246_v0 }
 0x41b   : > { %5861 = vmatmul.msk.bf16.gmra.mxu0 %vm2552_vm4, %v7446_v39 }
 0x41c   : > { %v3061_v46 = vpop.f32.mrf.mxu2 }
 0x41d   : > { %v3279_v4 = vpop.f32.mrf.mxu3  ;;  %v3062_v57 = vadd.f32 %v3061_v46, %v7444_v14  ;;  %v7619_v14 = vpack.c.bf16 %v3601_v1, %v3600_v61  ;;  %v7621_v46 = vpack.c.bf16 %v3839_v17, %v3838_v10  ;;  %v3603_v10 = vld [vmem:[#allocation3 + $0x159] sm:$0xff]  ;;  %v3602_v61 = vld [vmem:[#allocation3 + $0x151] sm:$0xff] }
 0x41e   : > { %v3734_v39 = vpop.f32.mrf.mxu1 }
 0x41f   : > { %v3320_v18 = vadd.f32 %v3279_v4, %v3062_v57  ;;  %v7617_v6 = vadd.f32 %v3734_v39, %v7398_v19 }
 0x420   : > { %v3526_v20 = vpop.f32.mrf.mxu0 }
 0x421   : > { %v7613_v33 = vadd.f32 %v3526_v20, %v3319_v37  ;;  %5749 = vmatmul.msk.bf16.gmra.mxu1 %vm2552_vm4, %v7619_v14 }
 0x424   : > { %v3063_v58 = vpop.f32.mrf.mxu2 }
 0x425   : > { %v3281_v0 = vpop.f32.mrf.mxu3  ;;  %v3064_v47 = vadd.f32 %v3063_v58, %v7463_v52 }
 0x426   : > { %v3736_v41 = vpop.f32.mrf.mxu1 }
 0x427   : > { %v3321_v22 = vadd.f32 %v3281_v0, %v3064_v47  ;;  %v7635_v20 = vadd.f32 %v3736_v41, %v7411_v30  ;;  %v3841_v47 = vld [vmem:[#allocation3 + $0xca] sm:$0xff] }
 0x428   : > { %v3529_v37 = vpop.f32.mrf.mxu0 }
 0x429   : > { %5783 = vmatmul.msk.bf16.gmra.mxu2 %vm2552_vm4, %v7621_v46  ;;  %v7629_v52 = vadd.f32 %v3529_v37, %v3320_v18  ;;  %v3840_v18 = vld [vmem:[#allocation3 + $0xc2] sm:$0xff] }
 0x42a   : > { %5823 = vmatmul.msk.bf16.gmra.mxu3 %vm2552_vm4, %v7272_v13 }
 0x42b   : > { %5862 = vmatmul.msk.bf16.gmra.mxu0 %vm2552_vm4, %v7476_v3 }
 0x42c   : > { %v3066_v19 = vpop.f32.mrf.mxu2 }
 0x42d   : > { %v3284_v4 = vpop.f32.mrf.mxu3  ;;  %v3067_v57 = vadd.f32 %v3066_v19, %v7474_v53  ;;  %v7643_v53 = vpack.c.bf16 %v3603_v10, %v3602_v61  ;;  %v7645_v19 = vpack.c.bf16 %v3841_v47, %v3840_v18  ;;  %v3605_v18 = vld [vmem:[#allocation3 + $0x171] sm:$0xff]  ;;  %v3604_v61 = vld [vmem:[#allocation3 + $0x169] sm:$0xff] }
 0x42e   : > { %v3739_v3 = vpop.f32.mrf.mxu1 }
 0x42f   : > { %v3322_v1 = vadd.f32 %v3284_v4, %v3067_v57  ;;  %v7641_v37 = vadd.f32 %v3739_v3, %v7434_v24 }
 0x430   : > { %v3531_v58 = vpop.f32.mrf.mxu0 }
 0x431   : > { %v7637_v0 = vadd.f32 %v3531_v58, %v3321_v22  ;;  %5750 = vmatmul.msk.bf16.gmra.mxu1 %vm2552_vm4, %v7643_v53 }
 0x434   : > { %v3068_v17 = vpop.f32.mrf.mxu2 }
 0x435   : > { %v3286_v13 = vpop.f32.mrf.mxu3  ;;  %v3069_v39 = vadd.f32 %v3068_v17, %v7492_v16 }
 0x436   : > { %v3741_v41 = vpop.f32.mrf.mxu1 }
 0x437   : > { %v3323_v30 = vadd.f32 %v3286_v13, %v3069_v39  ;;  %v7659_v58 = vadd.f32 %v3741_v41, %v7441_v11  ;;  %v3843_v39 = vld [vmem:[#allocation3 + $0xe2] sm:$0xff] }
 0x438   : > { %v3534_v22 = vpop.f32.mrf.mxu0 }
 0x439   : > { %5784 = vmatmul.msk.bf16.gmra.mxu2 %vm2552_vm4, %v7645_v19  ;;  %v7653_v16 = vadd.f32 %v3534_v22, %v3322_v1  ;;  %v3842_v1 = vld [vmem:[#allocation3 + $0xda] sm:$0xff] }
 0x43a   : > { %5824 = vmatmul.msk.bf16.gmra.mxu3 %vm2552_vm4, %v7296_v9 }
 0x43b   : > { %5863 = vmatmul.msk.bf16.gmra.mxu0 %vm2552_vm4, %v7499_v29 }
 0x43c   : > { %v3071_v24 = vpop.f32.mrf.mxu2 }
 0x43d   : > { %v3289_v4 = vpop.f32.mrf.mxu3  ;;  %v3072_v57 = vadd.f32 %v3071_v24, %v7497_v15  ;;  %v7667_v15 = vpack.c.bf16 %v3605_v18, %v3604_v61  ;;  %v7669_v24 = vpack.c.bf16 %v3843_v39, %v3842_v1  ;;  %v3607_v1 = vld [vmem:[#allocation3 + $0x189] sm:$0xff]  ;;  %v3606_v61 = vld [vmem:[#allocation3 + $0x181] sm:$0xff] }
 0x43e   : > { %v3744_v29 = vpop.f32.mrf.mxu1 }
 0x43f   : > { %v3324_v10 = vadd.f32 %v3289_v4, %v3072_v57  ;;  %v7665_v22 = vadd.f32 %v3744_v29, %v7458_v48 }
 0x440   : > { %v3536_v17 = vpop.f32.mrf.mxu0 }
 0x441   : > { %v7661_v13 = vadd.f32 %v3536_v17, %v3323_v30  ;;  %5751 = vmatmul.msk.bf16.gmra.mxu1 %vm2552_vm4, %v7667_v15 }
 0x444   : > { %v3073_v47 = vpop.f32.mrf.mxu2 }
 0x445   : > { %v3291_v9 = vpop.f32.mrf.mxu3  ;;  %v3074_v3 = vadd.f32 %v3073_v47, %v7514_v50 }
 0x446   : > { %v3746_v41 = vpop.f32.mrf.mxu1 }
 0x447   : > { %v3325_v11 = vadd.f32 %v3291_v9, %v3074_v3  ;;  %v7683_v17 = vadd.f32 %v3746_v41, %v7471_v34  ;;  %v3845_v3 = vld [vmem:[#allocation3 + $0xfa] sm:$0xff] }
 0x448   : > { %v3539_v30 = vpop.f32.mrf.mxu0 }
 0x449   : > { %5785 = vmatmul.msk.bf16.gmra.mxu2 %vm2552_vm4, %v7669_v24  ;;  %v7677_v50 = vadd.f32 %v3539_v30, %v3324_v10  ;;  %v3844_v10 = vld [vmem:[#allocation3 + $0xf2] sm:$0xff] }
 0x44a   : > { %5825 = vmatmul.msk.bf16.gmra.mxu3 %vm2552_vm4, %v7314_v62 }
 0x44b   : > { %5864 = vmatmul.msk.bf16.gmra.mxu0 %vm2552_vm4, %v7522_v32 }
 0x44c   : > { %v3964_v48 = vpop.f32.mrf.mxu2 }
 0x44d   : > { %v4215_v4 = vpop.f32.mrf.mxu3  ;;  %v4044_v57 = vadd.f32 %v3964_v48, %v7520_v40  ;;  %v7691_v40 = vpack.c.bf16 %v3607_v1, %v3606_v61  ;;  %v7693_v48 = vpack.c.bf16 %v3845_v3, %v3844_v10 }
 0x44e   : > { %v3749_v32 = vpop.f32.mrf.mxu1 }
 0x44f   : > { %v4295_v18 = vadd.f32 %v4215_v4, %v4044_v57  ;;  %v7689_v30 = vadd.f32 %v3749_v32, %v7482_v5 }
 0x450   : > { %v3541_v47 = vpop.f32.mrf.mxu0 }
 0x451   : > { %v7685_v9 = vadd.f32 %v3541_v47, %v3325_v11  ;;  %5752 = vmatmul.msk.bf16.gmra.mxu1 %vm2552_vm4, %v7691_v40 }
 0x454   : > { %v3966_v39 = vpop.f32.mrf.mxu2 }
 0x455   : > { %v4217_v62 = vpop.f32.mrf.mxu3  ;;  %v4045_v29 = vadd.f32 %v3966_v39, %v7537_v2 }
 0x456   : > { %v3751_v41 = vpop.f32.mrf.mxu1 }
 0x457   : > { %v4296_v34 = vadd.f32 %v4217_v62, %v4045_v29  ;;  %v7707_v47 = vadd.f32 %v3751_v41, %v7494_v23 }
 0x458   : > { %v4465_v11 = vpop.f32.mrf.mxu0 }
 0x459   : > { %5786 = vmatmul.msk.bf16.gmra.mxu2 %vm2552_vm4, %v7693_v48  ;;  %v7701_v2 = vadd.f32 %v4465_v11, %v4295_v18 }
 0x45a   : > { %5826 = vmatmul.msk.bf16.gmra.mxu3 %vm2552_vm4, %v7334_v25 }
 0x45b   : > { %5865 = vmatmul.msk.bf16.gmra.mxu0 %vm2552_vm4, %v7545_v42 }
 0x45c   : > { %v3969_v5 = vpop.f32.mrf.mxu2 }
 0x45d   : > { %v4220_v4 = vpop.f32.mrf.mxu3  ;;  %v4046_v57 = vadd.f32 %v3969_v5, %v7543_v26 }
 0x45e   : > { %v3754_v18 = vpop.f32.mrf.mxu1 }
 0x45f   : > { %v4297_v1 = vadd.f32 %v4220_v4, %v4046_v57  ;;  %v7713_v29 = vadd.f32 %v3754_v18, %v7509_v49  ;;  %v3849_v57 = vld [vmem:[#allocation3 + $0x12a] sm:$0xff] }
 0x460   : > { %v4467_v39 = vpop.f32.mrf.mxu0 }
 0x461   : > { %v7709_v62 = vadd.f32 %v4467_v39, %v4296_v34  ;;  %5897 = vmatmul.msk.bf16.vlgmr.msra.gmra.mxu1 %vm2552_vm4, %v7501_v51 }
 0x464   : > { %v3971_v10 = vpop.f32.mrf.mxu2 }
 0x465   : > { %v4222_v3 = vpop.f32.mrf.mxu3  ;;  %v4047_v25 = vadd.f32 %v3971_v10, %v7560_v36  ;;  %v8274_v10 = vld [vmem:[#allocation14_spill] sm:$0xff] }
 0x466   : > { %v3756_v61 = vpop.f32.mrf.mxu1 }
 0x467   : > { %v4298_v42 = vadd.f32 %v4222_v3, %v4047_v25  ;;  %v7727_v34 = vadd.f32 %v3756_v61, %v7516_v31  ;;  %v8275_v3 = vld [vmem:[#allocation8_spill] sm:$0xff] }
 0x468   : > { %v4470_v26 = vpop.f32.mrf.mxu0 }
 0x469   : > { %5787 = vmatmul.msk.bf16.gmra.mxu2 %vm2552_vm4, %v7336_v54  ;;  %v7721_v23 = vadd.f32 %v4470_v26, %v4297_v1 }
 0x46a   : > { %5827 = vmatmul.msk.bf16.gmra.mxu3 %vm2552_vm4, %v7364_v60  ;;  %v3848_v60 = vld [vmem:[#allocation3 + $0x122] sm:$0xff] }
 0x46b   : > { %5866 = vmatmul.msk.bf16.gmra.mxu0 %vm2552_vm4, %v7568_v21 }
 0x46c   : > { %v3974_v36 = vpop.f32.mrf.mxu2 }
 0x46d   : > { %v4225_v32 = vpop.f32.mrf.mxu3  ;;  %v4048_v49 = vadd.f32 %v3974_v36, %v7566_v45  ;;  %v7735_v45 = vpack.c.bf16 %v3849_v57, %v3848_v60 }
 0x46e   : > { %v3759_v1 = vpop.f32.mrf.mxu1 }
 0x46f   : > { %v4299_v51 = vadd.f32 %v4225_v32, %v4048_v49  ;;  %v7733_v21 = vadd.f32 %v3759_v1, %v7531_v28  ;;  %v8277_v1 = vld [vmem:[#allocation9_spill] sm:$0xff] }
 0x470   : > { %v4472_v11 = vpop.f32.mrf.mxu0 }
 0x471   : > { %v7729_v5 = vadd.f32 %v4472_v11, %v4298_v42  ;;  %5898 = vmatmul.msk.bf16.gmra.mxu1 %vm2552_vm4, %v8274_v10  ;;  %v3850_v11 = vld [vmem:[#allocation3 + $0x13a] sm:$0xff] }
 0x474   : > { %v3976_v54 = vpop.f32.mrf.mxu2 }
 0x475   : > { %v4227_v4 = vpop.f32.mrf.mxu3  ;;  %v4049_v41 = vadd.f32 %v3976_v54, %v7587_v35  ;;  %v3851_v54 = vld [vmem:[#allocation3 + $0x142] sm:$0xff] }
 0x476   : > { %v3761_v42 = vpop.f32.mrf.mxu1 }
 0x477   : > { %v4300_v39 = vadd.f32 %v4227_v4, %v4049_v41  ;;  %v7749_v26 = vadd.f32 %v3761_v42, %v7539_v55  ;;  %v8276_v41 = vld [vmem:[#allocation15_spill] sm:$0xff] }
 0x478   : > { %v4475_v31 = vpop.f32.mrf.mxu0 }
 0x479   : > { %5788 = vmatmul.msk.bf16.gmra.mxu2 %vm2552_vm4, %v7735_v45  ;;  %v7743_v25 = vadd.f32 %v4475_v31, %v4299_v51 }
 0x47a   : > { %5828 = vmatmul.msk.bf16.gmra.mxu3 %vm2552_vm4, %v8275_v3 }
 0x47b   : > { %5867 = vmatmul.msk.bf16.gmra.mxu0 %vm2552_vm4, %v7595_v63 }
 0x47c   : > { %v3979_v28 = vpop.f32.mrf.mxu2 }
 0x47d   : > { %v4230_v35 = vpop.f32.mrf.mxu3  ;;  %v4050_v18 = vadd.f32 %v3979_v28, %v7593_v59  ;;  %v7757_v59 = vpack.c.bf16 %v3851_v54, %v3850_v11  ;;  %v3857_v11 = vld [vmem:[#allocation3 + $0x18a] sm:$0xff] }
 0x47e   : > { %v3764_v4 = vpop.f32.mrf.mxu1 }
 0x47f   : > { %v4301_v36 = vadd.f32 %v4230_v35, %v4050_v18  ;;  %v7755_v63 = vadd.f32 %v3764_v4, %v7554_v38  ;;  %v8278_v35 = vld [vmem:[#allocation12_spill] sm:$0xff]  ;;  %v8279_v18 = vld [vmem:[#allocation10_spill] sm:$0xff] }
 0x480   : > { %v4477_v32 = vpop.f32.mrf.mxu0 }
 0x481   : > { %v7751_v49 = vadd.f32 %v4477_v32, %v4300_v39  ;;  %5899 = vmatmul.msk.bf16.gmra.mxu1 %vm2552_vm4, %v8276_v41  ;;  %v4107_v32 = vld [vmem:[#allocation3 + $0x198] sm:$0xff] }
 0x484   : > { %v3981_v61 = vpop.f32.mrf.mxu2 }
 0x485   : > { %v4051_v51 = vadd.f32 %v3981_v61, %v7611_v7  ;;  %v4232_v60 = vpop.f32.mrf.mxu3  ;;  %v4108_v61 = vld [vmem:[#allocation3 + $0x1a0] sm:$0xff] }
 0x486   : > { %v3766_v38 = vpop.f32.mrf.mxu1 }
 0x487   : > { %v4302_v57 = vadd.f32 %v4232_v60, %v4051_v51  ;;  %v7770_v7 = vadd.f32 %v3766_v38, %v7562_v12  ;;  %v4124_v51 = vpack.c.bf16 %v4108_v61, %v4107_v32  ;;  %v4357_v60 = vld [vmem:[#allocation3 + $0x199] sm:$0xff]  ;;  %v5246_v38 = vld [vmem:[%s8232_s7 + $0x78] sm:$0xff] }
 0x488   : > { %v4480_v55 = vpop.f32.mrf.mxu0  ;;  %5248 = vmatpush.msrb.mxu2 %v5246_v38  ;;  %v4596_v32 = vld [vmem:[#allocation3 + $0x112] sm:$0xff] }
 0x489   : > { %5789 = vmatmul.msk.bf16.gmra.mxu2 %vm2552_vm4, %v7757_v59  ;;  %v7765_v39 = vadd.f32 %v4480_v55, %v4301_v36  ;;  %v8281_v36 = vld [vmem:[#allocation13_spill] sm:$0xff] }
 0x48a   : > { %5829 = vmatmul.msk.bf16.gmra.mxu3 %vm2552_vm4, %v8277_v1 }
 0x48b   : > { %5868 = vmatmul.msk.bf16.gmra.mxu0 %vm2552_vm4, %v7619_v14 }
 0x48e   : > { %v3769_v3 = vpop.f32.mrf.mxu1 }
 0x48f   : > { %v7775_v28 = vadd.f32 %v3769_v3, %v7578_v8  ;;  %v5245_v3 = vld [vmem:[%s8232_s7 + $0x70] sm:$0xff] }
 0x490   : > { %v4482_v10 = vpop.f32.mrf.mxu0  ;;  %5249 = vmatpush.msrb.mxu2 %v5245_v3 }
 0x491   : > { %v7772_v31 = vadd.f32 %v4482_v10, %v4302_v57  ;;  %5900 = vmatmul.msk.bf16.gmra.mxu1 %vm2552_vm4, %v7570_v56  ;;  %v8280_v56 = vld [vmem:[#allocation11_spill] sm:$0xff] }
 0x496   : > { %v3771_v12 = vpop.f32.mrf.mxu1 }
 0x497   : > { %v7786_v14 = vadd.f32 %v3771_v12, %v7589_v44 }
 0x499   : > { %5790 = vmatmul.msk.bf16.gmra.mxu2 %vm2552_vm4, %v8278_v35  ;;  %v7849_v35 = vpop.f32.mrf.mxu2 }
 0x49a   : > { %5830 = vmatmul.msk.bf16.gmra.mxu3 %vm2552_vm4, %v8279_v18 }
 0x49b   : > { %5869 = vmatmul.msk.bf16.gmra.mxu0 %vm2552_vm4, %v7643_v53 }
 0x49e   : > { %v3774_v42 = vpop.f32.mrf.mxu1 }
 0x49f   : > { %v7789_v8 = vadd.f32 %v3774_v42, %v7605_v43  ;;  %v3856_v43 = vld [vmem:[#allocation3 + $0x182] sm:$0xff] }
 0x4a0   : > { %v7805_v4 = vpack.c.bf16 %v3857_v11, %v3856_v43 }
 0x4a1   : > { %5901 = vmatmul.msk.bf16.gmra.mxu1 %vm2552_vm4, %v7597_v27  ;;  %v7857_v61 = vpop.f32.mrf.mxu2 }
 0x4a6   : > { %v3776_v53 = vpop.f32.mrf.mxu1 }
 0x4a7   : > { %v7800_v44 = vadd.f32 %v3776_v53, %v7613_v33  ;;  %v4595_v53 = vld [vmem:[#allocation3 + $0x10a] sm:$0xff] }
 0x4a9   : > { %5791 = vmatmul.msk.bf16.gmra.mxu2 %vm2552_vm4, %v8280_v56 }
 0x4aa   : > { %5831 = vmatmul.msk.bf16.gmra.mxu3 %vm2552_vm4, %v8281_v36  ;;  %v7855_v36 = vpop.f32.mrf.mxu0 }
 0x4ab   : > { %5870 = vmatmul.msk.bf16.gmra.mxu0 %vm2552_vm4, %v7667_v15 }
 0x4ae   : > { %v3779_v54 = vpop.f32.mrf.mxu1 }
 0x4af   : > { %v7803_v27 = vadd.f32 %v3779_v54, %v7629_v52  ;;  %v4358_v52 = vld [vmem:[#allocation3 + $0x1a1] sm:$0xff]  ;;  %v4618_v54 = vpack.c.bf16 %v4596_v32, %v4595_v53 }
 0x4b0   : > { %v4374_v55 = vpack.c.bf16 %v4358_v52, %v4357_v60 }
 0x4b1   : > { %5902 = vmatmul.msk.bf16.gmra.mxu1 %vm2552_vm4, %v7621_v46 }
 0x4b6   : > { %v3781_v33 = vpop.f32.mrf.mxu1 }
 0x4b7   : > { %v7815_v15 = vadd.f32 %v3781_v33, %v7637_v0 }
 0x4b9   : > { %5792 = vmatmul.msk.bf16.gmra.mxu2 %vm2552_vm4, %v7805_v4 }
 0x4ba   : > { %5832 = vmatmul.msk.bf16.gmra.mxu3 %vm2552_vm4, %v4124_v51 }
 0x4bb   : > { %5871 = vmatmul.msk.bf16.gmra.mxu0 %vm2552_vm4, %v7691_v40 }
 0x4be   : > { %v3784_v57 = vpop.f32.mrf.mxu1 }
 0x4bf   : > { %v7818_v41 = vadd.f32 %v3784_v57, %v7653_v16  ;;  %v7867_v57 = vpop.f32.mrf.mxu0 }
 0x4c1   : > { %5903 = vmatmul.msk.bf16.gmra.mxu1 %vm2552_vm4, %v7645_v19 }
 0x4c6   : > { %v3786_v46 = vpop.f32.mrf.mxu1 }
 0x4c7   : > { %v7824_v1 = vadd.f32 %v3786_v46, %v7661_v13  ;;  %v7840_v13 = vld [vmem:[%s8229_s4] ss:$0 sm:$0xff]  ;;  %v7870_v46 = vpop.f32.mrf.mxu2 }
 0x4cb   : > { %5872 = vmatmul.msk.bf16.gmra.mxu0 %vm2552_vm4, %v4374_v55 }
 0x4ce   : > { %v3789_v40 = vpop.f32.mrf.mxu1 }
 0x4cf   : > { %v7827_v0 = vadd.f32 %v3789_v40, %v7677_v50 }
 0x4d1   : > { %5904 = vmatmul.msk.bf16.gmra.mxu1 %vm2552_vm4, %v7669_v24 }
 0x4d6   : > { %v3791_v16 = vpop.f32.mrf.mxu1 }
 0x4d7   : > { %v7835_v19 = vadd.f32 %v3791_v16, %v7685_v9 }
 0x4de   : > { %v4715_v10 = vpop.f32.mrf.mxu1 }
 0x4df   : > { %v4795_v50 = vadd.f32 %v4715_v10, %v7701_v2  ;;  %v7853_v2 = vpop.f32.mrf.mxu3 }
 0x4e1   : > { %5905 = vmatmul.msk.bf16.gmra.mxu1 %vm2552_vm4, %v7693_v48  ;;  %v4831_v24 = vadd.f32 %v7840_v13, %v4795_v50 }
 0x4e3   : > { %v4863_v9 = vmax.f32 %v4831_v24, 0.0  ;;  %v7876_v24 = vpop.f32.mrf.mxu0 }
 0x4e5   : > { %4895 = vxpose.xlu0.b32.start [1/16] %v4863_v9, 128 }
 0x4e6   : > { %v4717_v18 = vpop.f32.mrf.mxu1 }
 0x4e7   : > { %v4796_v12 = vadd.f32 %v4717_v18, %v7709_v62  ;;  %v5244_v62 = vld [vmem:[%s8232_s7 + $0x68] sm:$0xff]  ;;  %v7865_v60 = vpop.f32.mrf.mxu3  ;;  %v7884_v18 = vpop.f32.mrf.mxu2 }
 0x4e8   : > { %5250 = vmatpush.msrb.mxu2 %v5244_v62 }
 0x4e9   : > { %v4832_v42 = vadd.f32 %v7840_v13, %v4796_v12 }
 0x4eb   : > { %v4864_v56 = vmax.f32 %v4832_v42, 0.0 }
 0x4ed   : > { %4896 = vxpose.xlu0.b32.cont [2/16] %v4864_v56, 128  ;;  %v5186_v48 = vadd.f32 %v4864_v56, %v4863_v9  ;;  %v5243_v9 = vld [vmem:[%s8232_s7 + $0x60] sm:$0xff] }
 0x4ee   : > { %v4720_v43 = vpop.f32.mrf.mxu1  ;;  %5251 = vmatpush.msrb.mxu2 %v5243_v9  ;;  %v4601_v9 = vld [vmem:[#allocation3 + $0x152] sm:$0xff] }
 0x4ef   : > { %v4797_v11 = vadd.f32 %v4720_v43, %v7721_v23  ;;  %v7873_v50 = vpop.f32.mrf.mxu3 }
 0x4f1   : > { %5906 = vmatmul.msk.bf16.gmra.mxu1 %vm2552_vm4, %v4618_v54  ;;  %v4833_v51 = vadd.f32 %v7840_v13, %v4797_v11  ;;  %v7892_v11 = vpop.f32.mrf.mxu2 }
 0x4f3   : > { %v4865_v33 = vmax.f32 %v4833_v51, 0.0  ;;  %v5242_v51 = vld [vmem:[%s8232_s7 + $0x58] sm:$0xff] }
 0x4f4   : > { %5252 = vmatpush.msrb.mxu2 %v5242_v51 }
 0x4f5   : > { %4897 = vxpose.xlu0.b32.cont [3/16] %v4865_v33, 128  ;;  %v5187_v52 = vadd.f32 %v5186_v48, %v4865_v33  ;;  %v7890_v48 = vpop.f32.mrf.mxu0 }
 0x4f6   : > { %v4722_v55 = vpop.f32.mrf.mxu1 }
 0x4f7   : > { %v4798_v23 = vadd.f32 %v4722_v55, %v7729_v5  ;;  %v7887_v53 = vpop.f32.mrf.mxu3 }
 0x4f9   : > { %v4834_v40 = vadd.f32 %v7840_v13, %v4798_v23 }
 0x4fb   : > { %v4866_v38 = vmax.f32 %v4834_v40, 0.0  ;;  %v7905_v40 = vpop.f32.mrf.mxu2 }
 0x4fd   : > { %4898 = vxpose.xlu0.b32.cont [4/16] %v4866_v38, 128  ;;  %v5188_v16 = vadd.f32 %v5187_v52, %v4866_v38  ;;  %v7903_v55 = vpop.f32.mrf.mxu0  ;;  %v4052_v38 = vadd.f32 %v7849_v35, %v7617_v6  ;;  %v5241_v6 = vld [vmem:[%s8232_s7 + $0x50] sm:$0xff] }
 0x4fe   : > { %v4725_v10 = vpop.f32.mrf.mxu1  ;;  %5253 = vmatpush.msrb.mxu2 %v5241_v6 }
 0x4ff   : > { %v4799_v3 = vadd.f32 %v4725_v10, %v7743_v25  ;;  %v7901_v33 = vpop.f32.mrf.mxu3  ;;  %v4303_v10 = vadd.f32 %v7853_v2, %v4052_v38 }
 0x501   : > { %5907 = vmatmul.msk.bf16.gmra.mxu1 %vm2552_vm4, %v7735_v45  ;;  %v4835_v5 = vadd.f32 %v7840_v13, %v4799_v3 }
 0x503   : > { %v4867_v12 = vmax.f32 %v4835_v5, 0.0  ;;  %v4602_v5 = vld [vmem:[#allocation3 + $0x15a] sm:$0xff] }
 0x504   : > { %v4621_v2 = vpack.c.bf16 %v4602_v5, %v4601_v9  ;;  %v4055_v9 = vadd.f32 %v7884_v18, %v7659_v58  ;;  %v4056_v18 = vadd.f32 %v7892_v11, %v7665_v22 }
 0x505   : > { %4899 = vxpose.xlu0.b32.cont [5/16] %v4867_v12, 128  ;;  %v5189_v42 = vadd.f32 %v5188_v16, %v4867_v12  ;;  %v4553_v12 = vadd.f32 %v7855_v36, %v4303_v10  ;;  %v4604_v10 = vld [vmem:[#allocation3 + $0x172] sm:$0xff] }
 0x506   : > { %v4727_v56 = vpop.f32.mrf.mxu1  ;;  %v4306_v6 = vadd.f32 %v7887_v53, %v4055_v9  ;;  %v4307_v53 = vadd.f32 %v7901_v33, %v4056_v18  ;;  %v4607_v9 = vld [vmem:[#allocation3 + $0x19a] sm:$0xff] }
 0x507   : > { %v4800_v25 = vadd.f32 %v4727_v56, %v7751_v49  ;;  %v4960_v18 = vld [vmem:[%s8230_s5 + $0x8] sm:$0xff] }
 0x509   : > { %v4836_v32 = vadd.f32 %v7840_v13, %v4800_v25  ;;  %v7915_v25 = vpop.f32.mrf.mxu0 }
 0x50b   : > { %v4868_v43 = vmax.f32 %v4836_v32, 0.0 }
 0x50d   : > { %4900 = vxpose.xlu0.b32.cont [6/16] %v4868_v43, 128  ;;  %v5190_v45 = vadd.f32 %v5189_v42, %v4868_v43  ;;  %v7913_v42 = vpop.f32.mrf.mxu3  ;;  %v7922_v43 = vpop.f32.mrf.mxu2 }
 0x50e   : > { %v4730_v54 = vpop.f32.mrf.mxu1 }
 0x50f   : > { %v4801_v62 = vadd.f32 %v4730_v54, %v7765_v39 }
 0x511   : > { %5908 = vmatmul.msk.bf16.gmra.mxu1 %vm2552_vm4, %v7757_v59  ;;  %v4837_v49 = vadd.f32 %v7840_v13, %v4801_v62 }
 0x513   : > { %v4869_v52 = vmax.f32 %v4837_v49, 0.0 }
 0x515   : > { %4901 = vxpose.xlu0.b32.cont [7/16] %v4869_v52, 128  ;;  %v5191_v23 = vadd.f32 %v5190_v45, %v4869_v52  ;;  %v7938_v38 = vpop.f32.mrf.mxu2 }
 0x516   : > { %v4732_v39 = vpop.f32.mrf.mxu1 }
 0x517   : > { %v4802_v16 = vadd.f32 %v4732_v39, %v7772_v31  ;;  %v4053_v31 = vadd.f32 %v7857_v61, %v7635_v20  ;;  %v4054_v20 = vadd.f32 %v7870_v46, %v7641_v37  ;;  %v7930_v61 = vpop.f32.mrf.mxu3  ;;  %v7935_v39 = vpop.f32.mrf.mxu0 }
 0x519   : > { %v4838_v59 = vadd.f32 %v7840_v13, %v4802_v16  ;;  %v4304_v45 = vadd.f32 %v7865_v60, %v4053_v31 }
 0x51b   : > { %v4870_v3 = vmax.f32 %v4838_v59, 0.0  ;;  %v4554_v62 = vadd.f32 %v7867_v57, %v4304_v45  ;;  %v4305_v57 = vadd.f32 %v7873_v50, %v4054_v20  ;;  %v4603_v59 = vld [vmem:[#allocation3 + $0x16a] sm:$0xff] }
 0x51c   : > { %v5239_v45 = vld [vmem:[%s8232_s7 + $0x40] sm:$0xff] }
 0x51d   : > { %4902 = vxpose.xlu0.b32.cont [8/16] %v4870_v3, 128  ;;  %v5192_v56 = vadd.f32 %v5191_v23, %v4870_v3  ;;  %v5240_v23 = vld [vmem:[%s8232_s7 + $0x48] sm:$0xff]  ;;  %v4555_v37 = vadd.f32 %v7876_v24, %v4305_v57  ;;  %v7951_v24 = vpop.f32.mrf.mxu2 }
 0x51e   : > { %v4735_v32 = vpop.f32.mrf.mxu1  ;;  %5254 = vmatpush.msrb.mxu2 %v5240_v23 }
 0x51f   : > { %v4803_v35 = vadd.f32 %v4735_v32, %v4553_v12  ;;  %v4622_v12 = vpack.c.bf16 %v4604_v10, %v4603_v59  ;;  %v7948_v50 = vpop.f32.mrf.mxu0 }
 0x520   : > { %5255 = vmatpush.msrb.mxu2 %v5239_v45 }
 0x521   : > { %5909 = vmatmul.msk.bf16.gmra.mxu1 %vm2552_vm4, %v4621_v2  ;;  %v4839_v36 = vadd.f32 %v7840_v13, %v4803_v35  ;;  %v4556_v35 = vadd.f32 %v7890_v48, %v4306_v6 }
 0x523   : > { %v4871_v54 = vmax.f32 %v4839_v36, 0.0 }
 0x525   : > { %4903 = vxpose.xlu0.b32.cont [9/16] %v4871_v54, 128  ;;  %v5193_v51 = vadd.f32 %v5192_v56, %v4871_v54  ;;  %v7944_v56 = vpop.f32.mrf.mxu3  ;;  %v7966_v22 = vpop.f32.mrf.mxu2 }
 0x526   : > { %v4737_v49 = vpop.f32.mrf.mxu1 }
 0x527   : > { %v4804_v52 = vadd.f32 %v4737_v49, %v4554_v62  ;;  %v7963_v48 = vpop.f32.mrf.mxu0  ;;  %v4557_v49 = vadd.f32 %v7903_v55, %v4307_v53 }
 0x529   : > { %v4840_v60 = vadd.f32 %v7840_v13, %v4804_v52  ;;  %v4057_v52 = vadd.f32 %v7905_v40, %v7683_v17  ;;  %v4058_v17 = vadd.f32 %v7922_v43, %v7689_v30 }
 0x52b   : > { %v4872_v16 = vmax.f32 %v4840_v60, 0.0  ;;  %v4308_v60 = vadd.f32 %v7913_v42, %v4057_v52  ;;  %v5238_v42 = vld [vmem:[%s8232_s7 + $0x38] sm:$0xff]  ;;  %v4309_v30 = vadd.f32 %v7930_v61, %v4058_v17  ;;  %v5237_v52 = vld [vmem:[%s8232_s7 + $0x30] sm:$0xff] }
 0x52c   : > { %5256 = vmatpush.msrb.mxu2 %v5238_v42  ;;  %v5276_v61 = vld [vmem:[%s8234_s9 + $0x38] sm:$0xff] }
 0x52d   : > { %4904 = vxpose.xlu0.b32.cont [10/16] %v4872_v16, 128  ;;  %v5194_v46 = vadd.f32 %v5193_v51, %v4872_v16  ;;  %v7961_v62 = vpop.f32.mrf.mxu3  ;;  %v4558_v16 = vadd.f32 %v7915_v25, %v4308_v60  ;;  %v6081_v25 = vmov 0   ;;  %5289 = vmatpush.msrb.mxu3 %v5276_v61  ;;  %v4962_v17 = vld [vmem:[%s8230_s5 + $0x18] sm:$0xff]  ;;  %v4964_v61 = vld [vmem:[%s8230_s5 + $0x28] sm:$0xff] }
 0x52e   : > { %v4740_v3 = vpop.f32.mrf.mxu1  ;;  %6000 = vset.pattern.permute.xlu2 %v6081_v25  ;;  %5257 = vmatpush.msrb.mxu2 %v5237_v52 }
 0x52f   : > { %v4805_v5 = vadd.f32 %v4740_v3, %v4555_v37  ;;  %v7975_v10 = vpop.f32.mrf.mxu0 }
 0x531   : > { %5910 = vmatmul.msk.bf16.gmra.mxu1 %vm2552_vm4, %v4622_v12  ;;  %v4841_v32 = vadd.f32 %v7840_v13, %v4805_v5  ;;  %v4608_v5 = vld [vmem:[#allocation3 + $0x1a2] sm:$0xff]  ;;  %v4559_v12 = vadd.f32 %v7935_v39, %v4309_v30 }
 0x532   : > { %v4624_v6 = vpack.c.bf16 %v4608_v5, %v4607_v9 }
 0x533   : > { %v4873_v31 = vmax.f32 %v4841_v32, 0.0 }
 0x535   : > { %4905 = vxpose.xlu0.b32.cont [11/16] %v4873_v31, 128  ;;  %v5195_v2 = vadd.f32 %v5194_v46, %v4873_v31  ;;  %v4257_v55 = vpop.f32.mrf.mxu3  ;;  %v4009_v46 = vpop.f32.mrf.mxu2 }
 0x536   : > { %v4742_v58 = vpop.f32.mrf.mxu1 }
 0x537   : > { %v4806_v36 = vadd.f32 %v4742_v58, %v4556_v35  ;;  %v4059_v35 = vadd.f32 %v7938_v38, %v7707_v47 }
 0x539   : > { %v4842_v54 = vadd.f32 %v7840_v13, %v4806_v36  ;;  %v4510_v36 = vpop.f32.mrf.mxu0  ;;  %v4310_v47 = vadd.f32 %v7944_v56, %v4059_v35 }
 0x53b   : > { %v4874_v51 = vmax.f32 %v4842_v54, 0.0  ;;  %v4560_v54 = vadd.f32 %v7948_v50, %v4310_v47 }
 0x53d   : > { %4906 = vxpose.xlu0.b32.cont [12/16] %v4874_v51, 128  ;;  %v5196_v20 = vadd.f32 %v5195_v2, %v4874_v51  ;;  %v4260_v2 = vpop.f32.mrf.mxu3  ;;  %v4011_v45 = vpop.f32.mrf.mxu2 }
 0x53e   : > { %v4745_v11 = vpop.f32.mrf.mxu1 }
 0x53f   : > { %v4807_v23 = vadd.f32 %v4745_v11, %v4557_v49  ;;  %v4060_v49 = vadd.f32 %v7951_v24, %v7713_v29  ;;  %v4961_v11 = vld [vmem:[%s8230_s5 + $0x10] sm:$0xff] }
 0x541   : > { %5911 = vmatmul.msk.bf16.gmra.mxu1 %vm2552_vm4, %v7805_v4  ;;  %v4843_v33 = vadd.f32 %v7840_v13, %v4807_v23  ;;  %v4959_v4 = vld [vmem:[%s8230_s5] sm:$0xff]  ;;  %v4512_v50 = vpop.f32.mrf.mxu0 }
 0x542   : > { %4977 = vperm.xlu2 %6000, %v4959_v4  }
 0x543   : > { %v4875_v57 = vmax.f32 %v4843_v33, 0.0  ;;  %v4311_v33 = vadd.f32 %v7961_v62, %v4060_v49 }
 0x545   : > { %4907 = vxpose.xlu0.b32.cont [13/16] %v4875_v57, 128  ;;  %v5197_v59 = vadd.f32 %v5196_v20, %v4875_v57  ;;  %v4262_v56 = vpop.f32.mrf.mxu3  ;;  %v4014_v57 = vpop.f32.mrf.mxu2  ;;  %v4561_v29 = vadd.f32 %v7963_v48, %v4311_v33 }
 0x546   : > { %v4747_v37 = vpop.f32.mrf.mxu1 }
 0x547   : > { %v4808_v40 = vadd.f32 %v4747_v37, %v4558_v16 }
 0x549   : > { %v4844_v3 = vadd.f32 %v7840_v13, %v4808_v40 }
 0x54a   : > { %4982 = vperm.xlu2 %6000, %v4960_v18  }
 0x54b   : > { %v4876_v43 = vmax.f32 %v4844_v3, 0.0  ;;  %v4515_v3 = vpop.f32.mrf.mxu0 }
 0x54d   : > { %4908 = vxpose.xlu0.b32.cont [14/16] %v4876_v43, 128  ;;  %v5198_v32 = vadd.f32 %v5197_v59, %v4876_v43  ;;  %v4061_v59 = vadd.f32 %v7966_v22, %v7727_v34  ;;  %v4265_v62 = vpop.f32.mrf.mxu3  ;;  %v4016_v5 = vpop.f32.mrf.mxu2  ;;  %v4062_v34 = vadd.f32 %v4009_v46, %v7733_v21  ;;  %v4963_v43 = vld [vmem:[%s8230_s5 + $0x20] sm:$0xff] }
 0x54e   : > { %v4750_v31 = vpop.f32.mrf.mxu1 }
 0x54f   : > { %v4809_v58 = vadd.f32 %v4750_v31, %v4559_v12  ;;  %v4312_v4 = vadd.f32 %v4257_v55, %v4061_v59  ;;  %v5236_v55 = vld [vmem:[%s8232_s7 + $0x28] sm:$0xff] }
 0x550   : > { %5258 = vmatpush.msrb.mxu2 %v5236_v55 }
 0x551   : > { %5912 = vmatmul.msk.bf16.gmra.mxu1 %vm2552_vm4, %v4624_v6  ;;  %v4845_v39 = vadd.f32 %v7840_v13, %v4809_v58  ;;  %v4562_v48 = vadd.f32 %v7975_v10, %v4312_v4  ;;  %v4313_v10 = vadd.f32 %v4260_v2, %v4062_v34  ;;  %v4063_v58 = vadd.f32 %v4011_v45, %v7749_v26 }
 0x552   : > { %4987 = vperm.xlu2 %6000, %v4961_v11   ;;  %v4064_v45 = vadd.f32 %v4014_v57, %v7755_v63  ;;  %v5235_v11 = vld [vmem:[%s8232_s7 + $0x20] sm:$0xff] }
 0x553   : > { %v4877_v38 = vmax.f32 %v4845_v39, 0.0  ;;  %v4563_v6 = vadd.f32 %v4510_v36, %v4313_v10  ;;  %v4517_v21 = vpop.f32.mrf.mxu0  ;;  %v5275_v39 = vld [vmem:[%s8234_s9 + $0x30] sm:$0xff]  ;;  %v4314_v36 = vadd.f32 %v4262_v56, %v4063_v58  ;;  %5259 = vmatpush.msrb.mxu2 %v5235_v11 }
 0x554   : > { %5290 = vmatpush.msrb.mxu3 %v5275_v39 }
 0x555   : > { %4909 = vxpose.xlu0.b32.cont [15/16] %v4877_v38, 128  ;;  %v5199_v53 = vadd.f32 %v5198_v32, %v4877_v38  ;;  %v4267_v31 = vpop.f32.mrf.mxu3  ;;  %v4019_v47 = vpop.f32.mrf.mxu2 }
 0x556   : > { %v4752_v51 = vpop.f32.mrf.mxu1 }
 0x557   : > { %v4810_v20 = vadd.f32 %v4752_v51, %v4560_v54  ;;  %v4564_v54 = vadd.f32 %v4512_v50, %v4314_v36  ;;  %v4315_v50 = vadd.f32 %v4265_v62, %v4064_v45 }
 0x559   : > { %v4846_v23 = vadd.f32 %v7840_v13, %v4810_v20  ;;  %v4965_v20 = vld [vmem:[%s8230_s5 + $0x30] sm:$0xff] }
 0x55a   : > { %4992 = vperm.xlu2 %6000, %v4962_v17  }
 0x55b   : > { %v4878_v60 = vmax.f32 %v4846_v23, 0.0  ;;  %v4520_v52 = vpop.f32.mrf.mxu0 }
 0x55d   : > { %4910 = vxpose.xlu0.b32.end [16/16] %v4878_v60, 128  ;;  %v5200_v24 = vadd.f32 %v5199_v53, %v4878_v60  ;;  %v4270_v51 = vpop.f32.mrf.mxu3  ;;  %v4021_v23 = vpop.f32.mrf.mxu2  ;;  %v4565_v60 = vadd.f32 %v4515_v3, %v4315_v50 }
 0x55e   : > { %v4755_v16 = vpop.f32.mrf.mxu1 }
 0x55f   : > { %v4811_v37 = vadd.f32 %v4755_v16, %v4561_v29  ;;  %v4065_v29 = vadd.f32 %v4016_v5, %v7770_v7  ;;  %v4966_v16 = vld [vmem:[%s8230_s5 + $0x38] sm:$0xff]  ;;  %v4967_v5 = vld [vmem:[%s8230_s5 + $0x40] sm:$0xff] }
 0x561   : > { %v4847_v40 = vadd.f32 %v7840_v13, %v4811_v37 }
 0x562   : > { %4997 = vperm.xlu2 %6000, %v4963_v43  }
 0x563   : > { %v4879_v42 = vmax.f32 %v4847_v40, 0.0  ;;  %v4522_v17 = vpop.f32.mrf.mxu0  ;;  %v4316_v40 = vadd.f32 %v4267_v31, %v4065_v29  ;;  %v4067_v31 = vadd.f32 %v4021_v23, %v7786_v14 }
 0x565   : > { %4927 = vxpose.xlu1.b32.start [1/16] %v4879_v42, 128  ;;  %v5201_v9 = vadd.f32 %v5200_v24, %v4879_v42  ;;  %v4272_v59 = vpop.f32.mrf.mxu3  ;;  %v4024_v62 = vpop.f32.mrf.mxu2  ;;  %v4566_v42 = vadd.f32 %v4517_v21, %v4316_v40  ;;  %v4968_v21 = vld [vmem:[%s8230_s5 + $0x48] sm:$0xff] }
 0x566   : > { %v4757_v30 = vpop.f32.mrf.mxu1 }
 0x567   : > { %v4812_v22 = vadd.f32 %v4757_v30, %v4562_v48  ;;  %v5234_v30 = vld [vmem:[%s8232_s7 + $0x18] sm:$0xff] }
 0x568   : > { %5260 = vmatpush.msrb.mxu2 %v5234_v30 }
 0x569   : > { %v4848_v12 = vadd.f32 %v7840_v13, %v4812_v22 }
 0x56a   : > { %5002 = vperm.xlu2 %6000, %v4964_v61  }
 0x56b   : > { %v4880_v32 = vmax.f32 %v4848_v12, 0.0  ;;  %v4525_v12 = vpop.f32.mrf.mxu0 }
 0x56d   : > { %4928 = vxpose.xlu1.b32.cont [2/16] %v4880_v32, 128  ;;  %v5202_v35 = vadd.f32 %v5201_v9, %v4880_v32  ;;  %v4066_v9 = vadd.f32 %v4019_v47, %v7775_v28  ;;  %v4275_v43 = vpop.f32.mrf.mxu3  ;;  %v4026_v32 = vpop.f32.mrf.mxu2 }
 0x56e   : > { %v4760_v46 = vpop.f32.mrf.mxu1 }
 0x56f   : > { %v4813_v18 = vadd.f32 %v4760_v46, %v4563_v6  ;;  %v4317_v22 = vadd.f32 %v4270_v51, %v4066_v9  ;;  %v5274_v46 = vld [vmem:[%s8234_s9 + $0x28] sm:$0xff] }
 0x570   : > { %5291 = vmatpush.msrb.mxu3 %v5274_v46 }
 0x571   : > { %v4849_v2 = vadd.f32 %v7840_v13, %v4813_v18  ;;  %v4567_v10 = vadd.f32 %v4520_v52, %v4317_v22  ;;  %v4318_v18 = vadd.f32 %v4272_v59, %v4067_v31 }
 0x572   : > { %5007 = vperm.xlu2 %6000, %v4965_v20  }
 0x573   : > { %v4881_v38 = vmax.f32 %v4849_v2, 0.0  ;;  %v4568_v47 = vadd.f32 %v4522_v17, %v4318_v18  ;;  %v4527_v14 = vpop.f32.mrf.mxu0 }
 0x575   : > { %4929 = vxpose.xlu1.b32.cont [3/16] %v4881_v38, 128  ;;  %v5203_v53 = vadd.f32 %v5202_v35, %v4881_v38  ;;  %v4277_v39 = vpop.f32.mrf.mxu3  ;;  %v4068_v38 = vadd.f32 %v4024_v62, %v7789_v8  ;;  %v4029_v45 = vpop.f32.mrf.mxu2  ;;  %v4971_v62 = vld [vmem:[%s8230_s5 + $0x60] sm:$0xff] }
 0x576   : > { %v4762_v26 = vpop.f32.mrf.mxu1  ;;  %v4070_v17 = vadd.f32 %v4029_v45, %v7803_v27 }
 0x577   : > { %v4814_v49 = vadd.f32 %v4762_v26, %v4564_v54  ;;  %v5233_v26 = vld [vmem:[%s8232_s7 + $0x10] sm:$0xff] }
 0x578   : > { %5261 = vmatpush.msrb.mxu2 %v5233_v26  ;;  %v5231_v26 = vld [vmem:[%s8232_s7] sm:$0xff] }
 0x579   : > { %v4850_v56 = vadd.f32 %v7840_v13, %v4814_v49  ;;  %v4319_v49 = vadd.f32 %v4275_v43, %v4068_v38 }
 0x57a   : > { %5012 = vperm.xlu2 %6000, %v4966_v16  }
 0x57b   : > { %v4882_v33 = vmax.f32 %v4850_v56, 0.0  ;;  %v4569_v11 = vadd.f32 %v4525_v12, %v4319_v49  ;;  %v4069_v56 = vadd.f32 %v4026_v32, %v7800_v44  ;;  %v4972_v32 = vld [vmem:[%s8230_s5 + $0x68] sm:$0xff] }
 0x57d   : > { %4930 = vxpose.xlu1.b32.cont [4/16] %v4882_v33, 128  ;;  %v5204_v63 = vadd.f32 %v5203_v53, %v4882_v33  ;;  %v4969_v53 = vld [vmem:[%s8230_s5 + $0x50] sm:$0xff]  ;;  %v4280_v23 = vpop.f32.mrf.mxu3  ;;  %v4970_v33 = vld [vmem:[%s8230_s5 + $0x58] sm:$0xff]  ;;  %v4320_v29 = vadd.f32 %v4277_v39, %v4069_v56 }
 0x57e   : > { %v4765_v57 = vpop.f32.mrf.mxu1 }
 0x57f   : > { %v4815_v24 = vadd.f32 %v4765_v57, %v4565_v60  ;;  %v4530_v60 = vpop.f32.mrf.mxu0  ;;  %v4031_v57 = vpop.f32.mrf.mxu2  ;;  %v4570_v16 = vadd.f32 %v4527_v14, %v4320_v29 }
 0x581   : > { %v4851_v37 = vadd.f32 %v7840_v13, %v4815_v24 }
 0x582   : > { %5017 = vperm.xlu2 %6000, %v4967_v5  }
 0x583   : > { %v4883_v4 = vmax.f32 %v4851_v37, 0.0 }
 0x585   : > { %4931 = vxpose.xlu1.b32.cont [5/16] %v4883_v4, 128  ;;  %v5205_v3 = vadd.f32 %v5204_v63, %v4883_v4 }
 0x586   : > { %v4767_v48 = vpop.f32.mrf.mxu1 }
 0x587   : > { %v4816_v7 = vadd.f32 %v4767_v48, %v4566_v42  ;;  %v5232_v42 = vld [vmem:[%s8232_s7 + $0x8] sm:$0xff]  ;;  %v4532_v9 = vpop.f32.mrf.mxu0  ;;  %v4034_v5 = vpop.f32.mrf.mxu2 }
 0x588   : > { %5262 = vmatpush.msrb.mxu2 %v5232_v42  ;;  %v4072_v14 = vadd.f32 %v4034_v5, %v7818_v41  ;;  %v5129_v42 = vld [vmem:[#allocation4] sm:$0x1] }
 0x589   : > { %v4852_v34 = vadd.f32 %v7840_v13, %v4816_v7  ;;  %v4911_v4 = vpop.trf.xlu0  ;;  %v4321_v7 = vadd.f32 %v4280_v23, %v4070_v17 }
 0x58a   : > { %5022 = vperm.xlu2 %6000, %v4968_v21   ;;  %5263 = vmatpush.msrb.mxu2 %v5231_v26 }
 0x58b   : > { %v4884_v55 = vmax.f32 %v4852_v34, 0.0  ;;  %v4571_v30 = vadd.f32 %v4530_v60, %v4321_v7 }
 0x58d   : > { %4932 = vxpose.xlu1.b32.cont [6/16] %v4884_v55, 128  ;;  %v5206_v28 = vadd.f32 %v5205_v3, %v4884_v55  ;;  %v4282_v3 = vpop.f32.mrf.mxu3  ;;  %v4071_v55 = vadd.f32 %v4031_v57, %v7815_v15 }
 0x58e   : > { %v4770_v6 = vpop.f32.mrf.mxu1 }
 0x58f   : > { %v4817_v35 = vadd.f32 %v4770_v6, %v4567_v10  ;;  %v5273_v6 = vld [vmem:[%s8234_s9 + $0x20] sm:$0xff]  ;;  %v4322_v15 = vadd.f32 %v4282_v3, %v4071_v55  ;;  %v4535_v18 = vpop.f32.mrf.mxu0  ;;  %v5272_v55 = vld [vmem:[%s8234_s9 + $0x18] sm:$0xff] }
 0x590   : > { %5292 = vmatpush.msrb.mxu3 %v5273_v6  ;;  %v6082_v6 = vmov 256.0  }
 0x591   : > { %v4853_v58 = vadd.f32 %v7840_v13, %v4817_v35  ;;  %6004 = vrcp.f32 %v6082_v6 }
 0x592   : > { %5027 = vperm.xlu2 %6000, %v4969_v53   ;;  %v4973_v53 = vld [vmem:[%s8230_s5 + $0x70] sm:$0xff]  ;;  %5293 = vmatpush.msrb.mxu3 %v5272_v55 }
 0x593   : > { %v4885_v61 = vmax.f32 %v4853_v58, 0.0 }
 0x595   : > { %4933 = vxpose.xlu1.b32.cont [7/16] %v4885_v61, 128  ;;  %v5207_v2 = vadd.f32 %v5206_v28, %v4885_v61  ;;  %v4912_v28 = vpop.trf.xlu0  ;;  %v4285_v46 = vpop.f32.mrf.mxu3  ;;  %v4572_v61 = vadd.f32 %v4532_v9, %v4322_v15 }
 0x596   : > { %v4772_v36 = vpop.f32.mrf.mxu1  ;;  %v4323_v41 = vadd.f32 %v4285_v46, %v4072_v14 }
 0x597   : > { %v4818_v54 = vadd.f32 %v4772_v36, %v4568_v47  ;;  %v4036_v47 = vpop.f32.mrf.mxu2  ;;  %v4537_v56 = vpop.f32.mrf.mxu0 }
 0x599   : > { %v4854_v51 = vadd.f32 %v7840_v13, %v4818_v54 }
 0x59a   : > { %5032 = vperm.xlu2 %6000, %v4970_v33  }
 0x59b   : > { %v4886_v20 = vmax.f32 %v4854_v51, 0.0 }
 0x59c   : > { %v8078_v40 = vpop.permute.xlu2 %4977 }
 0x59d   : > { %4934 = vxpose.xlu1.b32.cont [8/16] %v4886_v20, 128  ;;  %v5208_v52 = vadd.f32 %v5207_v2, %v4886_v20  ;;  %v5055_v43 = vmul.f32 %v8078_v40, %v4911_v4  ;;  %v4913_v54 = vpop.trf.xlu0 }
 0x59e   : > { %v4775_v8 = vpop.f32.mrf.mxu1 }
 0x59f   : > { %v4819_v50 = vadd.f32 %v4775_v8, %v4569_v11  ;;  %v4287_v11 = vpop.f32.mrf.mxu3  ;;  %v4039_v60 = vpop.f32.mrf.mxu2 }
 0x5a0   : > { %v4074_v4 = vadd.f32 %v4039_v60, %v7827_v0 }
 0x5a1   : > { %v4855_v63 = vadd.f32 %v7840_v13, %v4819_v50  ;;  %v4073_v50 = vadd.f32 %v4036_v47, %v7824_v1  ;;  %v4540_v1 = vpop.f32.mrf.mxu0 }
 0x5a2   : > { %5037 = vperm.xlu2 %6000, %v4971_v62  }
 0x5a3   : > { %v4887_v24 = vmax.f32 %v4855_v63, 0.0  ;;  %v4324_v57 = vadd.f32 %v4287_v11, %v4073_v50 }
 0x5a4   : > { %v8089_v10 = vpop.permute.xlu2 %4982 }
 0x5a5   : > { %4935 = vxpose.xlu1.b32.cont [9/16] %v4887_v24, 128  ;;  %v5209_v59 = vadd.f32 %v5208_v52, %v4887_v24  ;;  %v5057_v31 = vmul.f32 %v8089_v10, %v4912_v28  ;;  %v4573_v52 = vadd.f32 %v4535_v18, %v4323_v41  ;;  %v6005_v18 = vpop.eup %6004 }
 0x5a6   : > { %v4777_v37 = vpop.f32.mrf.mxu1  ;;  %v5224_v14 = vmul.f32 256.0, %v6005_v18  ;;  %vm5228_vm6 = vweird.f32 %v6005_v18 }
 0x5a7   : > { %v4820_v44 = vadd.f32 %v4777_v37, %v4570_v16  ;;  %v5087_v21 = vadd.f32 %v5057_v31, %v5055_v43  ;;  %v4914_v16 = vpop.trf.xlu0  ;;  %v4290_v17 = vpop.f32.mrf.mxu3 }
 0x5a8   : > { %v4041_v9 = vpop.f32.mrf.mxu2 }
 0x5a9   : > { %v4856_v48 = vadd.f32 %v7840_v13, %v4820_v44  ;;  %v4075_v28 = vadd.f32 %v4041_v9, %v7835_v19  ;;  %v4542_v15 = vpop.f32.mrf.mxu0 }
 0x5aa   : > { %5042 = vperm.xlu2 %6000, %v4972_v32  }
 0x5ab   : > { %v4888_v27 = vmax.f32 %v4856_v48, 0.0  ;;  %v4974_v48 = vld [vmem:[%s8230_s5 + $0x78] sm:$0xff] }
 0x5ac   : > { %v8100_v38 = vpop.permute.xlu2 %4987 }
 0x5ad   : > { %4936 = vxpose.xlu1.b32.cont [10/16] %v4888_v27, 128  ;;  %v5210_v34 = vadd.f32 %v5209_v59, %v4888_v27  ;;  %v5059_v45 = vmul.f32 %v8100_v38, %v4913_v54  ;;  %v4574_v59 = vadd.f32 %v4537_v56, %v4324_v57  ;;  %v5225_v54 = vsub.f32 1.0, %v5224_v14 }
 0x5ae   : > { %v4780_v22 = vpop.f32.mrf.mxu1 }
 0x5af   : > { %v4821_v12 = vadd.f32 %v4780_v22, %v4571_v30  ;;  %v5088_v49 = vadd.f32 %v5087_v21, %v5059_v45  ;;  %v4915_v30 = vpop.trf.xlu0  ;;  %v5226_v45 = vmul.f32 %v6005_v18, %v5225_v54 }
 0x5b1   : > { %v4857_v35 = vadd.f32 %v7840_v13, %v4821_v12  ;;  %v5227_v41 = vadd.f32 %v6005_v18, %v5226_v45 }
 0x5b2   : > { %5047 = vperm.xlu2 %6000, %v4973_v53  }
 0x5b3   : > { %v4889_v58 = vmax.f32 %v4857_v35, 0.0  ;;  %v4292_v35 = vpop.f32.mrf.mxu3 }
 0x5b4   : > { %v8113_v24 = vpop.permute.xlu2 %4992  ;;  %v4326_v46 = vadd.f32 %v4292_v35, %v4075_v28 }
 0x5b5   : > { %4937 = vxpose.xlu1.b32.cont [11/16] %v4889_v58, 128  ;;  %v5211_v39 = vadd.f32 %v5210_v34, %v4889_v58  ;;  %v5061_v27 = vmul.f32 %v8113_v24, %v4914_v16 }
 0x5b6   : > { %v4782_v2 = vpop.f32.mrf.mxu1 }
 0x5b7   : > { %v4822_v36 = vadd.f32 %v4782_v2, %v4572_v61  ;;  %v5089_v22 = vadd.f32 %v5088_v49, %v5061_v27  ;;  %v4576_v61 = vadd.f32 %v4542_v15, %v4326_v46  ;;  %v4916_v50 = vpop.trf.xlu0 }
 0x5b9   : > { %v4858_v51 = vadd.f32 %v7840_v13, %v4822_v36 }
 0x5ba   : > { %5052 = vperm.xlu2 %6000, %v4974_v48  }
 0x5bb   : > { %v4890_v20 = vmax.f32 %v4858_v51, 0.0 }
 0x5bc   : > { %v8121_v5 = vpop.permute.xlu2 %4997 }
 0x5bd   : > { %4938 = vxpose.xlu1.b32.cont [12/16] %v4890_v20, 128  ;;  %v5212_v8 = vadd.f32 %v5211_v39, %v4890_v20  ;;  %v5063_v43 = vmul.f32 %v8121_v5, %v4915_v30 }
 0x5be   : > { %v4785_v23 = vpop.f32.mrf.mxu1 }
 0x5bf   : > { %v4823_v33 = vadd.f32 %v4785_v23, %v4573_v52  ;;  %v8128_v31 = vadd.f32 %v5089_v22, %v5063_v43  ;;  %v5229_v52 = vsel %vm5228_vm6, %v6005_v18, %v5227_v41  ;;  %v4917_v60 = vpop.trf.xlu0 }
 0x5c1   : > { %v4859_v63 = vadd.f32 %v7840_v13, %v4823_v33 }
 0x5c3   : > { %v4891_v29 = vmax.f32 %v4859_v63, 0.0 }
 0x5c4   : > { %6001 = vset.pattern.permute.xlu0 %v6081_v25  ;;  %v4325_v25 = vadd.f32 %v4290_v17, %v4074_v4  ;;  %v8135_v23 = vpop.permute.xlu2 %5002 }
 0x5c5   : > { %4939 = vxpose.xlu1.b32.cont [13/16] %v4891_v29, 128  ;;  %v5213_v37 = vadd.f32 %v5212_v8, %v4891_v29 }
 0x5c6   : > { %v4787_v44 = vpop.f32.mrf.mxu1  ;;  %v4575_v0 = vadd.f32 %v4540_v1, %v4325_v25 }
 0x5c7   : > { %v4824_v62 = vadd.f32 %v4787_v44, %v4574_v59  ;;  %v4918_v29 = vpop.trf.xlu0  ;;  %v5270_v44 = vld [vmem:[%s8234_s9 + $0x8] sm:$0xff] }
 0x5c9   : > { %v4860_v3 = vadd.f32 %v7840_v13, %v4824_v62 }
 0x5cb   : > { %v4892_v7 = vmax.f32 %v4860_v3, 0.0  ;;  %5132 = vperm.xlu0 %6001, %v5129_v42  }
 0x5cc   : > { %v8137_v33 = vpop.permute.xlu2 %5007 }
 0x5cd   : > { %4940 = vxpose.xlu1.b32.cont [14/16] %v4892_v7, 128  ;;  %v5214_v34 = vadd.f32 %v5213_v37, %v4892_v7 }
 0x5ce   : > { %v4790_v12 = vpop.f32.mrf.mxu1 }
 0x5cf   : > { %v4825_v32 = vadd.f32 %v4790_v12, %v4575_v0  ;;  %v4919_v62 = vpop.trf.xlu0 }
 0x5d1   : > { %v4861_v21 = vadd.f32 %v7840_v13, %v4825_v32  ;;  %v5067_v32 = vmul.f32 %v8137_v33, %v4917_v60 }
 0x5d3   : > { %v4893_v58 = vmax.f32 %v4861_v21, 0.0 }
 0x5d4   : > { %v8139_v57 = vpop.permute.xlu2 %5012 }
 0x5d5   : > { %4941 = vxpose.xlu1.b32.cont [15/16] %v4893_v58, 128  ;;  %v5215_v39 = vadd.f32 %v5214_v34, %v4893_v58  ;;  %v5069_v21 = vmul.f32 %v8139_v57, %v4918_v29 }
 0x5d6   : > { %v4792_v47 = vpop.f32.mrf.mxu1 }
 0x5d7   : > { %v4826_v2 = vadd.f32 %v4792_v47, %v4576_v61  ;;  %v4920_v25 = vpop.trf.xlu0 }
 0x5d9   : > { %v4862_v19 = vadd.f32 %v7840_v13, %v4826_v2  ;;  %v5271_v13 = vld [vmem:[%s8234_s9 + $0x10] sm:$0xff] }
 0x5da   : > { %5294 = vmatpush.msrb.mxu3 %v5271_v13 }
 0x5db   : > { %v4894_v36 = vmax.f32 %v4862_v19, 0.0 }
 0x5dc   : > { %5295 = vmatpush.msrb.mxu3 %v5270_v44  ;;  %v8146_v4 = vpop.permute.xlu2 %5017 }
 0x5dd   : > { %4942 = vxpose.xlu1.b32.end [16/16] %v4894_v36, 128  ;;  %v5216_v53 = vadd.f32 %v5215_v39, %v4894_v36  ;;  %v5071_v58 = vmul.f32 %v8146_v4, %v4919_v62 }
 0x5df   : > { %v5217_v26 = vrot.slane %v5216_v53, 4  ;;  %v4921_v0 = vpop.trf.xlu0 }
 0x5e1   : > { %v5218_v51 = vadd.f32 %v5217_v26, %v5216_v53 }
 0x5e3   : > { %v5219_v49 = vrot.slane %v5218_v51, 2 }
 0x5e4   : > { %v8149_v48 = vpop.permute.xlu2 %5022 }
 0x5e5   : > { %v5220_v20 = vadd.f32 %v5219_v49, %v5218_v51  ;;  %v5073_v61 = vmul.f32 %v8149_v48, %v4920_v25 }
 0x5e7   : > { %v5221_v11 = vrot.slane %v5220_v20, 1  ;;  %v4922_v55 = vpop.trf.xlu0 }
 0x5e9   : > { %v5222_v8 = vadd.f32 %v5221_v11, %v5220_v20 }
 0x5eb   : > { %v5230_v56 = vmul.f32 %v5229_v52, %v5222_v8 }
 0x5ec   : > { %v8152_v27 = vpop.permute.xlu2 %5027 }
 0x5ed   : > { %5264 = vmatmul.f32.vlgmr.msrb.gmra.mxu2 %v5230_v56  ;;  %v5075_v14 = vmul.f32 %v8152_v27, %v4921_v0 }
 0x5f4   : > { %v8155_v43 = vpop.permute.xlu2 %5032 }
 0x5f5   : > { %v5077_v36 = vmul.f32 %v8155_v43, %v4922_v55 }
 0x5fc   : > { %v5038_v6 = vpop.permute.xlu2 %5037 }
 0x609   : > { %v4943_v63 = vpop.trf.xlu1 }
 0x60a   : > { %v5056_v16 = vmul.f32 %v8078_v40, %v4943_v63 }
 0x611   : > { %v4944_v59 = vpop.trf.xlu1 }
 0x612   : > { %v5058_v37 = vmul.f32 %v8089_v10, %v4944_v59 }
 0x614   : > { %v5108_v17 = vadd.f32 %v5058_v37, %v5056_v16 }
 0x619   : > { %v4945_v1 = vpop.trf.xlu1 }
 0x61a   : > { %v5060_v42 = vmul.f32 %v8100_v38, %v4945_v1  ;;  %v5065_v38 = vmul.f32 %v8135_v23, %v4916_v50 }
 0x61c   : > { %v5109_v3 = vadd.f32 %v5108_v17, %v5060_v42  ;;  %v5091_v28 = vadd.f32 %v8128_v31, %v5065_v38  ;;  %v5043_v31 = vpop.permute.xlu2 %5042  ;;  %v5247_v42 = vld [vmem:[%s8233_s8] sm:$0x1] }
 0x61e   : > { %v5092_v35 = vadd.f32 %v5091_v28, %v5067_v32 }
 0x620   : > { %v5093_v46 = vadd.f32 %v5092_v35, %v5069_v21 }
 0x621   : > { %v4946_v40 = vpop.trf.xlu1 }
 0x622   : > { %v5062_v9 = vmul.f32 %v8113_v24, %v4946_v40  ;;  %v5269_v24 = vld [vmem:[%s8234_s9] sm:$0xff]  ;;  %v5094_v18 = vadd.f32 %v5093_v46, %v5071_v58 }
 0x623   : > { %5296 = vmatpush.msrb.mxu3 %v5269_v24 }
 0x624   : > { %v5110_v10 = vadd.f32 %v5109_v3, %v5062_v9  ;;  %v5095_v2 = vadd.f32 %v5094_v18, %v5073_v61  ;;  %v5048_v53 = vpop.permute.xlu2 %5047 }
 0x626   : > { %v5096_v19 = vadd.f32 %v5095_v2, %v5075_v14 }
 0x628   : > { %v5097_v45 = vadd.f32 %v5096_v19, %v5077_v36 }
 0x629   : > { %v4947_v7 = vpop.trf.xlu1 }
 0x62a   : > { %v5064_v30 = vmul.f32 %v8121_v5, %v4947_v7  ;;  %v4923_v5 = vpop.trf.xlu0 }
 0x62b   : > { %v5079_v51 = vmul.f32 %v5038_v6, %v4923_v5 }
 0x62c   : > { %v5111_v34 = vadd.f32 %v5110_v10, %v5064_v30  ;;  %v5053_v8 = vpop.permute.xlu2 %5052 }
 0x62d   : > { %v5098_v49 = vadd.f32 %v5097_v45, %v5079_v51 }
 0x631   : > { %v4948_v22 = vpop.trf.xlu1 }
 0x632   : > { %v4924_v39 = vpop.trf.xlu0  ;;  %v5066_v63 = vmul.f32 %v8135_v23, %v4948_v22 }
 0x633   : > { %v5081_v41 = vmul.f32 %v5043_v31, %v4924_v39 }
 0x634   : > { %v5112_v16 = vadd.f32 %v5111_v34, %v5066_v63 }
 0x635   : > { %v5099_v11 = vadd.f32 %v5098_v49, %v5081_v41 }
 0x639   : > { %v4949_v12 = vpop.trf.xlu1 }
 0x63a   : > { %v4925_v26 = vpop.trf.xlu0  ;;  %v5068_v59 = vmul.f32 %v8137_v33, %v4949_v12 }
 0x63b   : > { %v5083_v52 = vmul.f32 %v5048_v53, %v4925_v26 }
 0x63c   : > { %v5113_v44 = vadd.f32 %v5112_v16, %v5068_v59  ;;  %v5181_v59 = vlaneseq }
 0x63d   : > { %v5100_v13 = vadd.f32 %v5099_v11, %v5083_v52 }
 0x63e   : > { %vm5183_vm15 = vcmp.lt.s32.totalorder %v5181_v59, 256 }
 0x641   : > { %v4950_v15 = vpop.trf.xlu1 }
 0x642   : > { %v4926_v56 = vpop.trf.xlu0  ;;  %v5070_v1 = vmul.f32 %v8139_v57, %v4950_v15 }
 0x643   : > { %v5085_v50 = vmul.f32 %v5053_v8, %v4926_v56 }
 0x644   : > { %v5114_v25 = vadd.f32 %v5113_v44, %v5070_v1 }
 0x645   : > { %v5101_v29 = vadd.f32 %v5100_v13, %v5085_v50 }
 0x647   : > { %v5102_v37 = vrot.slane %v5101_v29, 4 }
 0x649   : > { %v4951_v47 = vpop.trf.xlu1  ;;  %v5103_v62 = vadd.f32 %v5102_v37, %v5101_v29 }
 0x64a   : > { %v5072_v40 = vmul.f32 %v8146_v4, %v4951_v47  ;;  %v5133_v38 = vpop.permute.xlu0 %5132 }
 0x64b   : > { %v5104_v3 = vrot.slane %v5103_v62, 2  ;;  %v5135_v24 = vperm.slane %v5133_v38, 0 }
 0x64c   : > { %v5115_v30 = vadd.f32 %v5114_v25, %v5072_v40 }
 0x64d   : > { %v5105_v33 = vadd.f32 %v5104_v3, %v5103_v62 }
 0x64f   : > { %v5106_v34 = vrot.slane %v5105_v33, 1 }
 0x651   : > { %v4952_v54 = vpop.trf.xlu1  ;;  %v5107_v32 = vadd.f32 %v5106_v34, %v5105_v33 }
 0x652   : > { %v5074_v0 = vmul.f32 %v8149_v48, %v4952_v54 }
 0x653   : > { %v5136_v46 = vadd.f32 %v5135_v24, %v5107_v32 }
 0x654   : > { %v5116_v22 = vadd.f32 %v5115_v30, %v5074_v0 }
 0x659   : > { %v4953_v20 = vpop.trf.xlu1 }
 0x65a   : > { %v5076_v57 = vmul.f32 %v8152_v27, %v4953_v20  ;;  %v5913_v27 = vmul.f32 -1.442695, %v5136_v46 }
 0x65c   : > { %v5117_v28 = vadd.f32 %v5116_v22, %v5076_v57  ;;  %6006 = vpow2.f32 %v5913_v27 }
 0x661   : > { %v4954_v60 = vpop.trf.xlu1 }
 0x662   : > { %v5078_v55 = vmul.f32 %v8155_v43, %v4954_v60  ;;  %v6007_v19 = vpop.eup %6006 }
 0x663   : > { %v5144_v54 = vadd.f32 1.0, %v6007_v19 }
 0x664   : > { %v5118_v5 = vadd.f32 %v5117_v28, %v5078_v55 }
 0x665   : > { %6008 = vrcp.f32 %v5144_v54  ;;  %vm5151_vm7 = vweird.f32 %v5144_v54  ;;  %v5155_v56 = vand.u32 2147483647, %v5144_v54  ;;  %v5157_v13 = vand.u32 2147483648, %v5144_v54 }
 0x667   : > { %vm5156_vm13 = vcmp.eq.f32.partialorder %v5155_v56, 8.507059e+37 }
 0x669   : > { %v4955_v17 = vpop.trf.xlu1 }
 0x66a   : > { %v5080_v4 = vmul.f32 %v5038_v6, %v4955_v17  ;;  %v5158_v17 = vor.u32 1.1754944e-38, %v5157_v13 }
 0x66c   : > { %v5119_v21 = vadd.f32 %v5118_v5, %v5080_v4 }
 0x670   : > { %v5265_v9 = vpop.f32.mrf.mxu2 }
 0x671   : > { %v5266_v23 = vadd.f32 %v5265_v9, %v5247_v42  ;;  %v4956_v10 = vpop.trf.xlu1  ;;  %v5277_v9 = vld [vmem:[%s8235_s10] sm:$0x1] }
 0x672   : > { %v5082_v35 = vmul.f32 %v5043_v31, %v4956_v10 }
 0x673   : > { %v5268_v7 = vmax.f32 %v5266_v23, 0.0 }
 0x674   : > { %v5120_v48 = vadd.f32 %v5119_v21, %v5082_v35 }
 0x675   : > { %5915 = vmatmul.msk.f32.vlgmr.msrb.gmra.mxu3 %vm2552_vm4, %v5268_v7 }
 0x679   : > { %v4957_v12 = vpop.trf.xlu1 }
 0x67a   : > { %v5084_v15 = vmul.f32 %v5048_v53, %v4957_v12  ;;  %v6009_v53 = vpop.eup %6008 }
 0x67b   : > { %v5147_v49 = vmul.f32 %v6009_v53, %v5144_v54  ;;  %vm5152_vm8 = vweird.f32 %v6009_v53 }
 0x67c   : > { %v5121_v18 = vadd.f32 %v5120_v48, %v5084_v15  ;;  %vm8179_vm10 = vmor %vm5151_vm7, %vm5152_vm8 }
 0x67d   : > { %v5148_v41 = vsub.f32 1.0, %v5147_v49 }
 0x67f   : > { %v5149_v11 = vmul.f32 %v6009_v53, %v5148_v41 }
 0x681   : > { %v4958_v58 = vpop.trf.xlu1  ;;  %v5150_v60 = vadd.f32 %v6009_v53, %v5149_v11 }
 0x682   : > { %v5086_v61 = vmul.f32 %v5053_v8, %v4958_v58 }
 0x683   : > { %v5154_v62 = vsel %vm8179_vm10, %v6009_v53, %v5150_v60 }
 0x684   : > { %v5122_v39 = vadd.f32 %v5121_v18, %v5086_v61  ;;  %v5159_v25 = vsel %vm5156_vm13, %v5158_v17, %v5154_v62 }
 0x686   : > { %v5123_v47 = vrot.slane %v5122_v39, 4 }
 0x688   : > { %v5124_v43 = vadd.f32 %v5123_v47, %v5122_v39 }
 0x68a   : > { %v5125_v2 = vrot.slane %v5124_v43, 2 }
 0x68c   : > { %v5126_v14 = vadd.f32 %v5125_v2, %v5124_v43 }
 0x68e   : > { %v5127_v6 = vrot.slane %v5126_v14, 1 }
 0x690   : > { %v5128_v36 = vadd.f32 %v5127_v6, %v5126_v14 }
 0x692   : > { %v5137_v26 = vadd.f32 %v5135_v24, %v5128_v36 }
 0x694   : > { %v5914_v31 = vmul.f32 -1.442695, %v5137_v26 }
 0x696   : > { %6010 = vpow2.f32 %v5914_v31 }
 0x69c   : > { %v6011_v45 = vpop.eup %6010 }
 0x69d   : > { %v5145_v51 = vadd.f32 1.0, %v6011_v45 }
 0x69f   : > { %6012 = vrcp.f32 %v5145_v51  ;;  %v5172_v50 = vand.u32 2147483648, %v5145_v51  ;;  %v5170_v29 = vand.u32 2147483647, %v5145_v51  ;;  %vm5166_vm11 = vweird.f32 %v5145_v51 }
 0x6a1   : > { %v5173_v44 = vor.u32 1.1754944e-38, %v5172_v50  ;;  %vm5171_vm14 = vcmp.eq.f32.partialorder %v5170_v29, 8.507059e+37 }
 0x6a5   : > { %v6013_v20 = vpop.eup %6012 }
 0x6a6   : > { %v5162_v52 = vmul.f32 %v6013_v20, %v5145_v51  ;;  %vm5167_vm9 = vweird.f32 %v6013_v20 }
 0x6a7   : > { %vm5168_vm12 = vmor %vm5166_vm11, %vm5167_vm9 }
 0x6a8   : > { %v5163_v8 = vsub.f32 1.0, %v5162_v52 }
 0x6aa   : > { %v5164_v63 = vmul.f32 %v6013_v20, %v5163_v8 }
 0x6ac   : > { %v5165_v37 = vadd.f32 %v6013_v20, %v5164_v63 }
 0x6ae   : > { %v5169_v1 = vsel %vm5168_vm12, %v6013_v20, %v5165_v37 }
 0x6af   : > { %v5174_v42 = vsel %vm5171_vm14, %v5173_v44, %v5169_v1 }
 0x6b0   : > { %v5178_v3 = vrot.slane %v5174_v42, 7 }
 0x6b2   : > { %v5179_v40 = vsel %vm693_vm0, %v5159_v25, %v5178_v3 }
 0x6b3   : > { %5185 = vst.msk [vmem:[%s423_s27] sm:$0x3] %vm5183_vm15, %v5179_v40  ;;  %s6031_s27 = scalar_lea.hbm %s6030_s21, 1 }
 0x6b4   : > { %p6032_p11 = scmp.ne.s32.totalorder %s6030_s21, %s6031_s27  ;;  %p6037_p1 = scmp.lt.s32.totalorder %s6035_s30, %s6031_s27 }
 0x6b6   : > { %p6033_p12 = pnand %p6032_p11, %p6189_p5  ;;  %p6038_p2 = por %p6037_p1, %p6036_p0 }
 0x6b8   : > { %p6034_p13 = pneg %p6033_p12 }
 0x6ba   : > { %p6039_p3 = pnand %p6038_p2, %p6034_p13 }
 0x6f8   : > { %v5298_v23 = vpop.f32.mrf.mxu3 }
 0x6f9   : > { %v5299_v10 = vadd.f32 %v5298_v23, %v5277_v9 }
 0x6fb   : > { %5302 = vst.msk [vmem:[%s414_s0] sm:$0x1] %vm5301_vm1, %v5299_v10 }
 0x6fc   : > { %6042 = shalt.err (!%p6039_p3)
}
 0x6fd   : > { %5957 = dma.vmem_to_hbm [thread:$0]  (%p6189_p5), %s5322_s1, 16, %s5324_s20, %s5308_s19  }
 0x6fe PF: > { %p5963_p4 = scmp.ge.s32.totalorder %s6077_s26, 2  ;;  %s5342_s0 = sand.u32 1, %s6065_s23  }
 0x6ff   : > { %s5343_s22 = scalar_lea.sflag [#allocation6], %s5342_s0 }
 0x700   : > { %p5960_p7 = pnand %p5963_p4, %p6193_p6 }
 0x702   : > { %p5961_p8 = pneg %p5960_p7 }
 0x704   : > { %6060 = dma.done.wait (%p5961_p8), %s5343_s22, 16  }
 0x705   : > { %6062 = vsyncadd (%p5961_p8), %s5343_s22, 4294967280  ;;  %p25_p9 = scmp.ge.s32.totalorder %s6176_s28, 4   ;;  %s8284_s23 = smov %s6069_s24 }
 0x706   : > { %s8285_s24 = smov %s6073_s25  ;;  %s8286_s25 = smov %s6187_s13 }
 0x707   : > { %s8287_s26 = smov %s6176_s28  ;;  %27 = sbr.rel (!%p25_p9) target bundleno = 6 (0x6), region = 131 }
 0x70c   :  { %5348 = vsyncpa [#allocation6], 1 }
 0x70d   :  { %5350 = vsyncpa [#allocation6 + $0x1], 1 }

</bundles_post_ra>
